<compile_context>
chip_gen: v7x
topology: tpu7x:2x2x1
jax: 0.10.0
libtpu: 0.0.40
codegen_flags: <defaults>
</compile_context>

<pallas_src>
import functools

import jax
import jax.numpy as jnp
import numpy as np
from jax.experimental import pallas as pl
from jax.experimental.pallas import tpu as pltpu


# ----------------------------------------------------------------------------
# Pallas kernel: one group of Nb images per grid step, fully fused in VMEM.
# Layout everywhere: channel-first, lane-dense (C, L) with L = Nb * H2 * W2.
# ----------------------------------------------------------------------------
def _up_kernel(x1_ref, x2_ref, u_ref, mask_ref,
               w1_ref, b1_ref, w2_ref, b2_ref,
               out_ref, x_ref, p1_ref, *, W2, L, C2, Cin):
    f32 = jnp.float32
    hp = jax.lax.Precision.HIGHEST   # match the f32 reference; bf16 operands in prod

    # ---- bilinear upsample (align_corners=True) + F.pad: ONE lane-dense matmul
    # u_ref is block-diagonal kron(ry_pad^T, rx_pad^T) across the Nb images, so
    # padding and per-image boundaries are already folded into the matrix.
    up = jnp.dot(x1_ref[...], u_ref[...], precision=hp,
                 preferred_element_type=f32)                  # (C1, L)

    # ---- torch.cat([x2, x1_up], dim=1): combined ONCE into a (Cin, L) scratch
    x_ref[0:C2, :] = x2_ref[...]
    x_ref[C2:Cin, :] = up          # single sub-tile store (offset C2), done once
    x = x_ref[...]                                            # (Cin, L)
    masks = mask_ref[...]                                     # (9, L)

    # ---- conv1 im2col: nine sublane-aligned Cin(=8)-row stores --------------
    # row order = [tap k][input channel c], matching the weight column order.
    for k in range(9):
        dy, dx = divmod(k, 3)
        shift = (dy - 1) * W2 + (dx - 1)
        if shift == 0:
            p1_ref[k * Cin:(k + 1) * Cin, :] = x
        else:
            p1_ref[k * Cin:(k + 1) * Cin, :] = (
                pltpu.roll(x, (-shift) % L, axis=1) * masks[k:k + 1, :])

    # ---- conv1 (BN scale pre-folded into w1) + bias + ReLU: ONE matmul ------
    h = jnp.dot(w1_ref[...], p1_ref[...], precision=hp,
                preferred_element_type=f32)                   # (Cmid, L)
    h = jnp.maximum(h + b1_ref[...], 0.0)

    # ---- conv2: no materialized patch -- 9 accumulating per-tap matmuls -----
    # (avoids the 9x im2col scratch blow-up flagged for v7x's 64 MiB VMEM)
    y = jnp.dot(w2_ref[4], h, precision=hp, preferred_element_type=f32)  # center tap
    for k in range(9):
        if k == 4:
            continue
        dy, dx = divmod(k, 3)
        shift = (dy - 1) * W2 + (dx - 1)
        hk = pltpu.roll(h, (-shift) % L, axis=1) * masks[k:k + 1, :]
        y = y + jnp.dot(w2_ref[k], hk, precision=hp, preferred_element_type=f32)

    # ---- bias + ReLU, wide lane-dense (Cout, L) store ------------------------
    out_ref[...] = jnp.maximum(y + b2_ref[...], 0.0)


# ----------------------------------------------------------------------------
# Glue: interpolation matrices, BN folding, masks, pallas_call wrapper.
# ----------------------------------------------------------------------------
def _interp_matrix(out_size, in_size):
    """align_corners=True bilinear interpolation matrix (out_size, in_size)."""
    if in_size == 1:
        return np.ones((out_size, 1), np.float32)
    src = np.arange(out_size, dtype=np.float64) * (in_size - 1) / (out_size - 1)
    i0 = np.clip(np.floor(src).astype(np.int64), 0, in_size - 1)
    i1 = np.minimum(i0 + 1, in_size - 1)
    w = (src - i0).astype(np.float32)
    m = np.zeros((out_size, in_size), np.float32)
    m[np.arange(out_size), i0] += 1.0 - w
    m[np.arange(out_size), i1] += w
    return m


def _fold_bn(gamma, beta, mean, var, eps=1e-5):
    scale = gamma / jnp.sqrt(var + eps)
    bias = beta - mean * scale
    return scale, bias


def up_forward_pallas(x1_nchw, x2_nchw, params):
    """Forward pass of `Up` (bilinear=True). Inputs/outputs are NCHW."""
    x1 = x1_nchw.astype(jnp.float32)
    x2 = x2_nchw.astype(jnp.float32)
    N, C1, H1, W1 = x1.shape
    _, C2, H2, W2 = x2.shape
    Hup, Wup = 2 * H1, 2 * W1
    diffY, diffX = H2 - Hup, W2 - Wup
    assert diffY >= 0 and diffX >= 0  # TODO(synk): negative F.pad (crop) path unsupported
    pad_t, pad_l = diffY // 2, diffX // 2
    HW = H2 * W2
    H1W1 = H1 * W1
    Cin = C1 + C2

    # ---- BN scale folded into the conv weights (bias-only epilogue in kernel)
    w1_oihw, w2_oihw = params["w1"], params["w2"]
    Cmid, Cout = w1_oihw.shape[0], w2_oihw.shape[0]
    s1, b1 = _fold_bn(params["g1"], params["be1"], params["m1"], params["v1"])
    s2, b2 = _fold_bn(params["g2"], params["be2"], params["m2"], params["v2"])
    # conv1: (O,I,KH,KW) -> (O,KH,KW,I) -> (O, 9*I); column = (kh*3+kw)*I + i,
    # matching the kernel's tap-major / channel-minor patch row order.
    w1m = jnp.transpose(w1_oihw, (0, 2, 3, 1)).reshape(Cmid, 9 * Cin).astype(jnp.float32)
    w1f = w1m * s1[:, None]
    # conv2: per-tap (9, Cout, Cmid) so the kernel can index w2_ref[k] directly.
    w2t = jnp.transpose(w2_oihw, (2, 3, 0, 1)).reshape(9, Cout, Cmid).astype(jnp.float32)
    w2f = w2t * s2[None, :, None]
    b1c = b1.reshape(Cmid, 1).astype(jnp.float32)
    b2c = b2.reshape(Cout, 1).astype(jnp.float32)

    # ---- images per grid step (lane-axis batching) ---------------------------
    # Largest group (<=8) whose lane dims satisfy the (8,128) block constraint.
    Nb = 1
    for d in range(min(N, 8), 0, -1):
        if N % d == 0 and (d == N or (d * H1W1) % 128 == 0):
            Nb = d
            break
    G = N // Nb
    L = Nb * HW

    # ---- bilinear(align_corners=True) + F.pad as ONE kron matrix -------------
    ry_pad = np.zeros((H2, H1), np.float32)
    ry_pad[pad_t:pad_t + Hup, :] = _interp_matrix(Hup, H1)
    rx_pad = np.zeros((W2, W1), np.float32)
    rx_pad[pad_l:pad_l + Wup, :] = _interp_matrix(Wup, W1)
    u_img = np.kron(ry_pad.T, rx_pad.T)                       # (H1*W1, H2*W2)
    # block-diagonal across the Nb images that share a grid step.
    # TODO(synk): U scales as (Nb*H1*W1)x(Nb*H2*W2); use separable interp for
    # large spatial sizes / large Nb.
    u_blk = jnp.asarray(np.kron(np.eye(Nb, dtype=np.float32), u_img))

    # ---- 3x3 tap-validity masks, tiled PER IMAGE along the lane axis ---------
    yy, xx = np.meshgrid(np.arange(H2), np.arange(W2), indexing="ij")
    masks_np = np.zeros((9, HW), np.float32)
    for k in range(9):
        dy, dx = divmod(k, 3)
        valid = ((yy + dy - 1 >= 0) & (yy + dy - 1 < H2) &
                 (xx + dx - 1 >= 0) & (xx + dx - 1 < W2))
        masks_np[k] = valid.reshape(-1).astype(np.float32)
    masks = jnp.asarray(np.tile(masks_np, (1, Nb)))           # (9, L)

    # channel-first, image-major lane layout: (C, N*H*W)
    x1t = jnp.transpose(x1, (1, 0, 2, 3)).reshape(C1, N * H1W1)
    x2t = jnp.transpose(x2, (1, 0, 2, 3)).reshape(C2, N * HW)

    kernel = functools.partial(_up_kernel, W2=W2, L=L, C2=C2, Cin=Cin)

    grid_spec = pltpu.PrefetchScalarGridSpec(
        num_scalar_prefetch=0,
        grid=(G,),                                 # serial on v5e/v6e, 2 TCs on v7x
        in_specs=[
            pl.BlockSpec((C1, Nb * H1W1), lambda g: (0, g)),
            pl.BlockSpec((C2, L), lambda g: (0, g)),
            pl.BlockSpec((Nb * H1W1, L), lambda g: (0, 0)),
            pl.BlockSpec((9, L), lambda g: (0, 0)),
            pl.BlockSpec((Cmid, 9 * Cin), lambda g: (0, 0)),
            pl.BlockSpec((Cmid, 1), lambda g: (0, 0)),
            pl.BlockSpec((9, Cout, Cmid), lambda g: (0, 0, 0)),
            pl.BlockSpec((Cout, 1), lambda g: (0, 0)),
        ],
        out_specs=pl.BlockSpec((Cout, L), lambda g: (0, g)),
        scratch_shapes=[
            pltpu.VMEM((Cin, L), jnp.float32),       # concatenated conv1 input
            pltpu.VMEM((9 * Cin, L), jnp.float32),   # conv1 im2col patch
        ],
    )

    out = pl.pallas_call(
        kernel,
        out_shape=jax.ShapeDtypeStruct((Cout, N * HW), jnp.float32),
        grid_spec=grid_spec,
        compiler_params=pltpu.CompilerParams(
            dimension_semantics=("parallel",)),
    )(x1t, x2t, u_blk, masks, w1f, b1c, w2f, b2c)

    # channel-first (Cout, N*HW) -> NCHW (small transpose in the wrapper).
    return jnp.transpose(out.reshape(Cout, N, H2, W2), (1, 0, 2, 3))


# ----------------------------------------------------------------------------
# Pure-JAX reference (same math, XLA ops, HIGHEST precision) for correctness.
# ----------------------------------------------------------------------------
def up_forward_ref(x1, x2, params):
    x1 = x1.astype(jnp.float32)
    x2 = x2.astype(jnp.float32)
    N, C1, H1, W1 = x1.shape
    _, C2, H2, W2 = x2.shape
    Hup, Wup = 2 * H1, 2 * W1
    diffY, diffX = H2 - Hup, W2 - Wup
    pad_t, pad_l = diffY // 2, diffX // 2
    hp = jax.lax.Precision.HIGHEST

    ry = jnp.asarray(_interp_matrix(Hup, H1))
    rx = jnp.asarray(_interp_matrix(Wup, W1))
    up = jnp.einsum('yh,nchw->ncyw', ry, x1, precision=hp)
    up = jnp.einsum('xw,ncyw->ncyx', rx, up, precision=hp)
    up = jnp.pad(up, ((0, 0), (0, 0), (pad_t, diffY - pad_t),
                      (pad_l, diffX - pad_l)))
    x = jnp.concatenate([x2, up], axis=1)

    s1, b1 = _fold_bn(params["g1"], params["be1"], params["m1"], params["v1"])
    s2, b2 = _fold_bn(params["g2"], params["be2"], params["m2"], params["v2"])
    dn = ('NCHW', 'OIHW', 'NCHW')
    h = jax.lax.conv_general_dilated(x, params["w1"], (1, 1), 'SAME',
                                     dimension_numbers=dn, precision=hp)
    h = jnp.maximum(h * s1[None, :, None, None] + b1[None, :, None, None], 0.0)
    y = jax.lax.conv_general_dilated(h, params["w2"], (1, 1), 'SAME',
                                     dimension_numbers=dn, precision=hp)
    y = jnp.maximum(y * s2[None, :, None, None] + b2[None, :, None, None], 0.0)
    return y


# ----------------------------------------------------------------------------
if __name__ == "__main__":
    # Up(in_channels=8, out_channels=4, bilinear=True):
    #   x1: deeper feature (N, 4, 8, 8)   -> upsampled to 16x16
    #   x2: skip connection (N, 4, 16, 16)
    #   concat -> 8 channels == in_channels, DoubleConv(8, 4, mid=4)
    N, C1, H1, W1 = 2, 4, 8, 8
    C2, H2, W2 = 4, 16, 16
    in_channels, out_channels = C1 + C2, 4
    mid_channels = in_channels // 2

    key = jax.random.PRNGKey(0)
    ks = jax.random.split(key, 12)
    x1 = jax.random.normal(ks[0], (N, C1, H1, W1), jnp.float32)
    x2 = jax.random.normal(ks[1], (N, C2, H2, W2), jnp.float32)

    params = {
        "w1": 0.1 * jax.random.normal(ks[2], (mid_channels, in_channels, 3, 3),
                                      jnp.float32),
        "w2": 0.1 * jax.random.normal(ks[3], (out_channels, mid_channels, 3, 3),
                                      jnp.float32),
        "g1": 1.0 + 0.1 * jax.random.normal(ks[4], (mid_channels,), jnp.float32),
        "be1": 0.1 * jax.random.normal(ks[5], (mid_channels,), jnp.float32),
        "m1": 0.1 * jax.random.normal(ks[6], (mid_channels,), jnp.float32),
        "v1": 1.0 + 0.1 * jnp.abs(jax.random.normal(ks[7], (mid_channels,),
                                                    jnp.float32)),
        "g2": 1.0 + 0.1 * jax.random.normal(ks[8], (out_channels,), jnp.float32),
        "be2": 0.1 * jax.random.normal(ks[9], (out_channels,), jnp.float32),
        "m2": 0.1 * jax.random.normal(ks[10], (out_channels,), jnp.float32),
        "v2": 1.0 + 0.1 * jnp.abs(jax.random.normal(ks[11], (out_channels,),
                                                    jnp.float32)),
    }

    out = up_forward_pallas(x1, x2, params)
    out = jax.block_until_ready(out)

    ref = jax.block_until_ready(up_forward_ref(x1, x2, params))
    np.testing.assert_allclose(np.asarray(out), np.asarray(ref),
                               rtol=2e-4, atol=2e-5)
    assert out.shape == (N, out_channels, H2, W2)
    print("KERNEL_OK")
</pallas_src>

<mosaic_0001>
module attributes {stable_mosaic.version = 11 : i64} {
  func.func @_up_kernel(%arg0: i32, %arg1: memref<4x128xf32, #tpu.memory_space<vmem>>, %arg2: memref<4x512xf32, #tpu.memory_space<vmem>>, %arg3: memref<128x512xf32, #tpu.memory_space<vmem>>, %arg4: memref<9x512xf32, #tpu.memory_space<vmem>>, %arg5: memref<4x72xf32, #tpu.memory_space<vmem>>, %arg6: memref<4x1xf32, #tpu.memory_space<vmem>>, %arg7: memref<9x4x4xf32, #tpu.memory_space<vmem>>, %arg8: memref<4x1xf32, #tpu.memory_space<vmem>>, %arg9: memref<4x512xf32, #tpu.memory_space<vmem>>, %arg10: memref<8x512xf32, #tpu.memory_space<vmem>>, %arg11: memref<72x512xf32, #tpu.memory_space<vmem>>) attributes {dimension_semantics = [#tpu.dimension_semantics<parallel>], iteration_bounds = array<i64: 1>, scalar_prefetch = 0 : i64, scratch_operands = 2 : i64, tpu.core_type = #tpu.core_type<tc>, window_params = [{transform_indices = @transform_0, window_bounds = array<i64: 4, 128>}, {transform_indices = @transform_1, window_bounds = array<i64: 4, 512>}, {pipeline_mode = #tpu.pipeline_mode<synchronous>, transform_indices = @transform_2, window_bounds = array<i64: 128, 512>}, {pipeline_mode = #tpu.pipeline_mode<synchronous>, transform_indices = @transform_3, window_bounds = array<i64: 9, 512>}, {pipeline_mode = #tpu.pipeline_mode<synchronous>, transform_indices = @transform_4, window_bounds = array<i64: 4, 72>}, {pipeline_mode = #tpu.pipeline_mode<synchronous>, transform_indices = @transform_5, window_bounds = array<i64: 4, 1>}, {pipeline_mode = #tpu.pipeline_mode<synchronous>, transform_indices = @transform_6, window_bounds = array<i64: 9, 4, 4>}, {pipeline_mode = #tpu.pipeline_mode<synchronous>, transform_indices = @transform_7, window_bounds = array<i64: 4, 1>}, {transform_indices = @transform_8, window_bounds = array<i64: 4, 512>}]} {
    %c0 = arith.constant 0 : index
    %c0_0 = arith.constant 0 : index
    %0 = vector.load %arg1[%c0, %c0_0] : memref<4x128xf32, #tpu.memory_space<vmem>>, vector<4x128xf32>
    %c0_1 = arith.constant 0 : index
    %c0_2 = arith.constant 0 : index
    %1 = vector.load %arg3[%c0_1, %c0_2] : memref<128x512xf32, #tpu.memory_space<vmem>>, vector<128x512xf32>
    %cst = arith.constant dense<0.000000e+00> : vector<4x512xf32>
    %2 = tpu.matmul %0, %1, %cst {dimension_numbers = #tpu.dot_dimension_numbers<[1], [0], [0], [1], [0, 0, 1, 1], [], []>, precision = #tpu.contract_precision<fp32>} : vector<4x128xf32>, vector<128x512xf32>, vector<4x512xf32> -> vector<4x512xf32>
    %c0_3 = arith.constant 0 : index
    %c0_4 = arith.constant 0 : index
    %3 = vector.load %arg2[%c0_3, %c0_4] : memref<4x512xf32, #tpu.memory_space<vmem>>, vector<4x512xf32>
    %c0_5 = arith.constant 0 : index
    %c0_6 = arith.constant 0 : index
    %4 = vector.load %arg10[%c0_5, %c0_6] : memref<8x512xf32, #tpu.memory_space<vmem>>, vector<4x512xf32>
    tpu.vector_store %arg10[%c0_5, %c0_6], %3 {strides = array<i32>} : memref<8x512xf32, #tpu.memory_space<vmem>>, vector<4x512xf32>,
    %c4 = arith.constant 4 : index
    %c0_7 = arith.constant 0 : index
    %5 = vector.load %arg10[%c4, %c0_7] : memref<8x512xf32, #tpu.memory_space<vmem>>, vector<4x512xf32>
    tpu.vector_store %arg10[%c4, %c0_7], %2 {strides = array<i32>} : memref<8x512xf32, #tpu.memory_space<vmem>>, vector<4x512xf32>,
    %c0_8 = arith.constant 0 : index
    %c0_9 = arith.constant 0 : index
    %6 = vector.load %arg10[%c0_8, %c0_9] : memref<8x512xf32, #tpu.memory_space<vmem>>, vector<8x512xf32>
    %c0_10 = arith.constant 0 : index
    %c0_11 = arith.constant 0 : index
    %7 = vector.load %arg4[%c0_10, %c0_11] : memref<9x512xf32, #tpu.memory_space<vmem>>, vector<9x512xf32>
    %c17_i32 = arith.constant 17 : i32
    %8 = tpu.dynamic_rotate %6 by %c17_i32 dim 1 : vector<8x512xf32>, i32 -> vector<8x512xf32>
    %9 = vector.extract_strided_slice %7 {offsets = [0, 0], sizes = [1, 512], strides = [1, 1]} : vector<9x512xf32> to vector<1x512xf32>
    %10 = vector.broadcast %9 : vector<1x512xf32> to vector<8x512xf32>
    %11 = arith.mulf %8, %10 : vector<8x512xf32>
    %c0_12 = arith.constant 0 : index
    %c0_13 = arith.constant 0 : index
    %12 = vector.load %arg11[%c0_12, %c0_13] : memref<72x512xf32, #tpu.memory_space<vmem>>, vector<8x512xf32>
    tpu.vector_store %arg11[%c0_12, %c0_13], %11 {strides = array<i32>} : memref<72x512xf32, #tpu.memory_space<vmem>>, vector<8x512xf32>,
    %c16_i32 = arith.constant 16 : i32
    %13 = tpu.dynamic_rotate %6 by %c16_i32 dim 1 : vector<8x512xf32>, i32 -> vector<8x512xf32>
    %14 = vector.extract_strided_slice %7 {offsets = [1, 0], sizes = [1, 512], strides = [1, 1]} : vector<9x512xf32> to vector<1x512xf32>
    %15 = vector.broadcast %14 : vector<1x512xf32> to vector<8x512xf32>
    %16 = arith.mulf %13, %15 : vector<8x512xf32>
    %c8 = arith.constant 8 : index
    %c0_14 = arith.constant 0 : index
    %17 = vector.load %arg11[%c8, %c0_14] : memref<72x512xf32, #tpu.memory_space<vmem>>, vector<8x512xf32>
    tpu.vector_store %arg11[%c8, %c0_14], %16 {strides = array<i32>} : memref<72x512xf32, #tpu.memory_space<vmem>>, vector<8x512xf32>,
    %c15_i32 = arith.constant 15 : i32
    %18 = tpu.dynamic_rotate %6 by %c15_i32 dim 1 : vector<8x512xf32>, i32 -> vector<8x512xf32>
    %19 = vector.extract_strided_slice %7 {offsets = [2, 0], sizes = [1, 512], strides = [1, 1]} : vector<9x512xf32> to vector<1x512xf32>
    %20 = vector.broadcast %19 : vector<1x512xf32> to vector<8x512xf32>
    %21 = arith.mulf %18, %20 : vector<8x512xf32>
    %c16 = arith.constant 16 : index
    %c0_15 = arith.constant 0 : index
    %22 = vector.load %arg11[%c16, %c0_15] : memref<72x512xf32, #tpu.memory_space<vmem>>, vector<8x512xf32>
    tpu.vector_store %arg11[%c16, %c0_15], %21 {strides = array<i32>} : memref<72x512xf32, #tpu.memory_space<vmem>>, vector<8x512xf32>,
    %c1_i32 = arith.constant 1 : i32
    %23 = tpu.dynamic_rotate %6 by %c1_i32 dim 1 : vector<8x512xf32>, i32 -> vector<8x512xf32>
    %24 = vector.extract_strided_slice %7 {offsets = [3, 0], sizes = [1, 512], strides = [1, 1]} : vector<9x512xf32> to vector<1x512xf32>
    %25 = vector.broadcast %24 : vector<1x512xf32> to vector<8x512xf32>
    %26 = arith.mulf %23, %25 : vector<8x512xf32>
    %c24 = arith.constant 24 : index
    %c0_16 = arith.constant 0 : index
    %27 = vector.load %arg11[%c24, %c0_16] : memref<72x512xf32, #tpu.memory_space<vmem>>, vector<8x512xf32>
    tpu.vector_store %arg11[%c24, %c0_16], %26 {strides = array<i32>} : memref<72x512xf32, #tpu.memory_space<vmem>>, vector<8x512xf32>,
    %c32 = arith.constant 32 : index
    %c0_17 = arith.constant 0 : index
    %28 = vector.load %arg11[%c32, %c0_17] : memref<72x512xf32, #tpu.memory_space<vmem>>, vector<8x512xf32>
    tpu.vector_store %arg11[%c32, %c0_17], %6 {strides = array<i32>} : memref<72x512xf32, #tpu.memory_space<vmem>>, vector<8x512xf32>,
    %c511_i32 = arith.constant 511 : i32
    %29 = tpu.dynamic_rotate %6 by %c511_i32 dim 1 : vector<8x512xf32>, i32 -> vector<8x512xf32>
    %30 = vector.extract_strided_slice %7 {offsets = [5, 0], sizes = [1, 512], strides = [1, 1]} : vector<9x512xf32> to vector<1x512xf32>
    %31 = vector.broadcast %30 : vector<1x512xf32> to vector<8x512xf32>
    %32 = arith.mulf %29, %31 : vector<8x512xf32>
    %c40 = arith.constant 40 : index
    %c0_18 = arith.constant 0 : index
    %33 = vector.load %arg11[%c40, %c0_18] : memref<72x512xf32, #tpu.memory_space<vmem>>, vector<8x512xf32>
    tpu.vector_store %arg11[%c40, %c0_18], %32 {strides = array<i32>} : memref<72x512xf32, #tpu.memory_space<vmem>>, vector<8x512xf32>,
    %c497_i32 = arith.constant 497 : i32
    %34 = tpu.dynamic_rotate %6 by %c497_i32 dim 1 : vector<8x512xf32>, i32 -> vector<8x512xf32>
    %35 = vector.extract_strided_slice %7 {offsets = [6, 0], sizes = [1, 512], strides = [1, 1]} : vector<9x512xf32> to vector<1x512xf32>
    %36 = vector.broadcast %35 : vector<1x512xf32> to vector<8x512xf32>
    %37 = arith.mulf %34, %36 : vector<8x512xf32>
    %c48 = arith.constant 48 : index
    %c0_19 = arith.constant 0 : index
    %38 = vector.load %arg11[%c48, %c0_19] : memref<72x512xf32, #tpu.memory_space<vmem>>, vector<8x512xf32>
    tpu.vector_store %arg11[%c48, %c0_19], %37 {strides = array<i32>} : memref<72x512xf32, #tpu.memory_space<vmem>>, vector<8x512xf32>,
    %c496_i32 = arith.constant 496 : i32
    %39 = tpu.dynamic_rotate %6 by %c496_i32 dim 1 : vector<8x512xf32>, i32 -> vector<8x512xf32>
    %40 = vector.extract_strided_slice %7 {offsets = [7, 0], sizes = [1, 512], strides = [1, 1]} : vector<9x512xf32> to vector<1x512xf32>
    %41 = vector.broadcast %40 : vector<1x512xf32> to vector<8x512xf32>
    %42 = arith.mulf %39, %41 : vector<8x512xf32>
    %c56 = arith.constant 56 : index
    %c0_20 = arith.constant 0 : index
    %43 = vector.load %arg11[%c56, %c0_20] : memref<72x512xf32, #tpu.memory_space<vmem>>, vector<8x512xf32>
    tpu.vector_store %arg11[%c56, %c0_20], %42 {strides = array<i32>} : memref<72x512xf32, #tpu.memory_space<vmem>>, vector<8x512xf32>,
    %c495_i32 = arith.constant 495 : i32
    %44 = tpu.dynamic_rotate %6 by %c495_i32 dim 1 : vector<8x512xf32>, i32 -> vector<8x512xf32>
    %45 = vector.extract_strided_slice %7 {offsets = [8, 0], sizes = [1, 512], strides = [1, 1]} : vector<9x512xf32> to vector<1x512xf32>
    %46 = vector.broadcast %45 : vector<1x512xf32> to vector<8x512xf32>
    %47 = arith.mulf %44, %46 : vector<8x512xf32>
    %c64 = arith.constant 64 : index
    %c0_21 = arith.constant 0 : index
    %48 = vector.load %arg11[%c64, %c0_21] : memref<72x512xf32, #tpu.memory_space<vmem>>, vector<8x512xf32>
    tpu.vector_store %arg11[%c64, %c0_21], %47 {strides = array<i32>} : memref<72x512xf32, #tpu.memory_space<vmem>>, vector<8x512xf32>,
    %c0_22 = arith.constant 0 : index
    %c0_23 = arith.constant 0 : index
    %49 = vector.load %arg5[%c0_22, %c0_23] : memref<4x72xf32, #tpu.memory_space<vmem>>, vector<4x72xf32>
    %c0_24 = arith.constant 0 : index
    %c0_25 = arith.constant 0 : index
    %50 = vector.load %arg11[%c0_24, %c0_25] : memref<72x512xf32, #tpu.memory_space<vmem>>, vector<72x512xf32>
    %cst_26 = arith.constant dense<0.000000e+00> : vector<4x512xf32>
    %51 = tpu.matmul %49, %50, %cst_26 {dimension_numbers = #tpu.dot_dimension_numbers<[1], [0], [0], [1], [0, 0, 1, 1], [], []>, precision = #tpu.contract_precision<fp32>} : vector<4x72xf32>, vector<72x512xf32>, vector<4x512xf32> -> vector<4x512xf32>
    %c0_27 = arith.constant 0 : index
    %c0_28 = arith.constant 0 : index
    %52 = vector.load %arg6[%c0_27, %c0_28] : memref<4x1xf32, #tpu.memory_space<vmem>>, vector<4x1xf32>
    %53 = vector.broadcast %52 : vector<4x1xf32> to vector<4x512xf32>
    %54 = arith.addf %51, %53 : vector<4x512xf32>
    %cst_29 = arith.constant 0.000000e+00 : f32
    %55 = vector.broadcast %cst_29 : f32 to vector<4x512xf32>
    %56 = arith.maximumf %54, %55 : vector<4x512xf32>
    %c4_30 = arith.constant 4 : index
    %c0_31 = arith.constant 0 : index
    %c0_32 = arith.constant 0 : index
    %57 = vector.load %arg7[%c4_30, %c0_31, %c0_32] : memref<9x4x4xf32, #tpu.memory_space<vmem>>, vector<1x4x4xf32>
    %58 = vector.shape_cast %57 : vector<1x4x4xf32> to vector<4x4xf32>
    %cst_33 = arith.constant dense<0.000000e+00> : vector<4x512xf32>
    %59 = tpu.matmul %58, %56, %cst_33 {dimension_numbers = #tpu.dot_dimension_numbers<[1], [0], [0], [1], [0, 0, 1, 1], [], []>, precision = #tpu.contract_precision<fp32>} : vector<4x4xf32>, vector<4x512xf32>, vector<4x512xf32> -> vector<4x512xf32>
    %c17_i32_34 = arith.constant 17 : i32
    %60 = tpu.dynamic_rotate %56 by %c17_i32_34 dim 1 : vector<4x512xf32>, i32 -> vector<4x512xf32>
    %61 = vector.extract_strided_slice %7 {offsets = [0, 0], sizes = [1, 512], strides = [1, 1]} : vector<9x512xf32> to vector<1x512xf32>
    %62 = vector.broadcast %61 : vector<1x512xf32> to vector<4x512xf32>
    %63 = arith.mulf %60, %62 : vector<4x512xf32>
    %c0_35 = arith.constant 0 : index
    %c0_36 = arith.constant 0 : index
    %c0_37 = arith.constant 0 : index
    %64 = vector.load %arg7[%c0_35, %c0_36, %c0_37] : memref<9x4x4xf32, #tpu.memory_space<vmem>>, vector<1x4x4xf32>
    %65 = vector.shape_cast %64 : vector<1x4x4xf32> to vector<4x4xf32>
    %cst_38 = arith.constant dense<0.000000e+00> : vector<4x512xf32>
    %66 = tpu.matmul %65, %63, %cst_38 {dimension_numbers = #tpu.dot_dimension_numbers<[1], [0], [0], [1], [0, 0, 1, 1], [], []>, precision = #tpu.contract_precision<fp32>} : vector<4x4xf32>, vector<4x512xf32>, vector<4x512xf32> -> vector<4x512xf32>
    %67 = arith.addf %59, %66 : vector<4x512xf32>
    %c16_i32_39 = arith.constant 16 : i32
    %68 = tpu.dynamic_rotate %56 by %c16_i32_39 dim 1 : vector<4x512xf32>, i32 -> vector<4x512xf32>
    %69 = vector.extract_strided_slice %7 {offsets = [1, 0], sizes = [1, 512], strides = [1, 1]} : vector<9x512xf32> to vector<1x512xf32>
    %70 = vector.broadcast %69 : vector<1x512xf32> to vector<4x512xf32>
    %71 = arith.mulf %68, %70 : vector<4x512xf32>
    %c1 = arith.constant 1 : index
    %c0_40 = arith.constant 0 : index
    %c0_41 = arith.constant 0 : index
    %72 = vector.load %arg7[%c1, %c0_40, %c0_41] : memref<9x4x4xf32, #tpu.memory_space<vmem>>, vector<1x4x4xf32>
    %73 = vector.shape_cast %72 : vector<1x4x4xf32> to vector<4x4xf32>
    %cst_42 = arith.constant dense<0.000000e+00> : vector<4x512xf32>
    %74 = tpu.matmul %73, %71, %cst_42 {dimension_numbers = #tpu.dot_dimension_numbers<[1], [0], [0], [1], [0, 0, 1, 1], [], []>, precision = #tpu.contract_precision<fp32>} : vector<4x4xf32>, vector<4x512xf32>, vector<4x512xf32> -> vector<4x512xf32>
    %75 = arith.addf %67, %74 : vector<4x512xf32>
    %c15_i32_43 = arith.constant 15 : i32
    %76 = tpu.dynamic_rotate %56 by %c15_i32_43 dim 1 : vector<4x512xf32>, i32 -> vector<4x512xf32>
    %77 = vector.extract_strided_slice %7 {offsets = [2, 0], sizes = [1, 512], strides = [1, 1]} : vector<9x512xf32> to vector<1x512xf32>
    %78 = vector.broadcast %77 : vector<1x512xf32> to vector<4x512xf32>
    %79 = arith.mulf %76, %78 : vector<4x512xf32>
    %c2 = arith.constant 2 : index
    %c0_44 = arith.constant 0 : index
    %c0_45 = arith.constant 0 : index
    %80 = vector.load %arg7[%c2, %c0_44, %c0_45] : memref<9x4x4xf32, #tpu.memory_space<vmem>>, vector<1x4x4xf32>
    %81 = vector.shape_cast %80 : vector<1x4x4xf32> to vector<4x4xf32>
    %cst_46 = arith.constant dense<0.000000e+00> : vector<4x512xf32>
    %82 = tpu.matmul %81, %79, %cst_46 {dimension_numbers = #tpu.dot_dimension_numbers<[1], [0], [0], [1], [0, 0, 1, 1], [], []>, precision = #tpu.contract_precision<fp32>} : vector<4x4xf32>, vector<4x512xf32>, vector<4x512xf32> -> vector<4x512xf32>
    %83 = arith.addf %75, %82 : vector<4x512xf32>
    %c1_i32_47 = arith.constant 1 : i32
    %84 = tpu.dynamic_rotate %56 by %c1_i32_47 dim 1 : vector<4x512xf32>, i32 -> vector<4x512xf32>
    %85 = vector.extract_strided_slice %7 {offsets = [3, 0], sizes = [1, 512], strides = [1, 1]} : vector<9x512xf32> to vector<1x512xf32>
    %86 = vector.broadcast %85 : vector<1x512xf32> to vector<4x512xf32>
    %87 = arith.mulf %84, %86 : vector<4x512xf32>
    %c3 = arith.constant 3 : index
    %c0_48 = arith.constant 0 : index
    %c0_49 = arith.constant 0 : index
    %88 = vector.load %arg7[%c3, %c0_48, %c0_49] : memref<9x4x4xf32, #tpu.memory_space<vmem>>, vector<1x4x4xf32>
    %89 = vector.shape_cast %88 : vector<1x4x4xf32> to vector<4x4xf32>
    %cst_50 = arith.constant dense<0.000000e+00> : vector<4x512xf32>
    %90 = tpu.matmul %89, %87, %cst_50 {dimension_numbers = #tpu.dot_dimension_numbers<[1], [0], [0], [1], [0, 0, 1, 1], [], []>, precision = #tpu.contract_precision<fp32>} : vector<4x4xf32>, vector<4x512xf32>, vector<4x512xf32> -> vector<4x512xf32>
    %91 = arith.addf %83, %90 : vector<4x512xf32>
    %c511_i32_51 = arith.constant 511 : i32
    %92 = tpu.dynamic_rotate %56 by %c511_i32_51 dim 1 : vector<4x512xf32>, i32 -> vector<4x512xf32>
    %93 = vector.extract_strided_slice %7 {offsets = [5, 0], sizes = [1, 512], strides = [1, 1]} : vector<9x512xf32> to vector<1x512xf32>
    %94 = vector.broadcast %93 : vector<1x512xf32> to vector<4x512xf32>
    %95 = arith.mulf %92, %94 : vector<4x512xf32>
    %c5 = arith.constant 5 : index
    %c0_52 = arith.constant 0 : index
    %c0_53 = arith.constant 0 : index
    %96 = vector.load %arg7[%c5, %c0_52, %c0_53] : memref<9x4x4xf32, #tpu.memory_space<vmem>>, vector<1x4x4xf32>
    %97 = vector.shape_cast %96 : vector<1x4x4xf32> to vector<4x4xf32>
    %cst_54 = arith.constant dense<0.000000e+00> : vector<4x512xf32>
    %98 = tpu.matmul %97, %95, %cst_54 {dimension_numbers = #tpu.dot_dimension_numbers<[1], [0], [0], [1], [0, 0, 1, 1], [], []>, precision = #tpu.contract_precision<fp32>} : vector<4x4xf32>, vector<4x512xf32>, vector<4x512xf32> -> vector<4x512xf32>
    %99 = arith.addf %91, %98 : vector<4x512xf32>
    %c497_i32_55 = arith.constant 497 : i32
    %100 = tpu.dynamic_rotate %56 by %c497_i32_55 dim 1 : vector<4x512xf32>, i32 -> vector<4x512xf32>
    %101 = vector.extract_strided_slice %7 {offsets = [6, 0], sizes = [1, 512], strides = [1, 1]} : vector<9x512xf32> to vector<1x512xf32>
    %102 = vector.broadcast %101 : vector<1x512xf32> to vector<4x512xf32>
    %103 = arith.mulf %100, %102 : vector<4x512xf32>
    %c6 = arith.constant 6 : index
    %c0_56 = arith.constant 0 : index
    %c0_57 = arith.constant 0 : index
    %104 = vector.load %arg7[%c6, %c0_56, %c0_57] : memref<9x4x4xf32, #tpu.memory_space<vmem>>, vector<1x4x4xf32>
    %105 = vector.shape_cast %104 : vector<1x4x4xf32> to vector<4x4xf32>
    %cst_58 = arith.constant dense<0.000000e+00> : vector<4x512xf32>
    %106 = tpu.matmul %105, %103, %cst_58 {dimension_numbers = #tpu.dot_dimension_numbers<[1], [0], [0], [1], [0, 0, 1, 1], [], []>, precision = #tpu.contract_precision<fp32>} : vector<4x4xf32>, vector<4x512xf32>, vector<4x512xf32> -> vector<4x512xf32>
    %107 = arith.addf %99, %106 : vector<4x512xf32>
    %c496_i32_59 = arith.constant 496 : i32
    %108 = tpu.dynamic_rotate %56 by %c496_i32_59 dim 1 : vector<4x512xf32>, i32 -> vector<4x512xf32>
    %109 = vector.extract_strided_slice %7 {offsets = [7, 0], sizes = [1, 512], strides = [1, 1]} : vector<9x512xf32> to vector<1x512xf32>
    %110 = vector.broadcast %109 : vector<1x512xf32> to vector<4x512xf32>
    %111 = arith.mulf %108, %110 : vector<4x512xf32>
    %c7 = arith.constant 7 : index
    %c0_60 = arith.constant 0 : index
    %c0_61 = arith.constant 0 : index
    %112 = vector.load %arg7[%c7, %c0_60, %c0_61] : memref<9x4x4xf32, #tpu.memory_space<vmem>>, vector<1x4x4xf32>
    %113 = vector.shape_cast %112 : vector<1x4x4xf32> to vector<4x4xf32>
    %cst_62 = arith.constant dense<0.000000e+00> : vector<4x512xf32>
    %114 = tpu.matmul %113, %111, %cst_62 {dimension_numbers = #tpu.dot_dimension_numbers<[1], [0], [0], [1], [0, 0, 1, 1], [], []>, precision = #tpu.contract_precision<fp32>} : vector<4x4xf32>, vector<4x512xf32>, vector<4x512xf32> -> vector<4x512xf32>
    %115 = arith.addf %107, %114 : vector<4x512xf32>
    %c495_i32_63 = arith.constant 495 : i32
    %116 = tpu.dynamic_rotate %56 by %c495_i32_63 dim 1 : vector<4x512xf32>, i32 -> vector<4x512xf32>
    %117 = vector.extract_strided_slice %7 {offsets = [8, 0], sizes = [1, 512], strides = [1, 1]} : vector<9x512xf32> to vector<1x512xf32>
    %118 = vector.broadcast %117 : vector<1x512xf32> to vector<4x512xf32>
    %119 = arith.mulf %116, %118 : vector<4x512xf32>
    %c8_64 = arith.constant 8 : index
    %c0_65 = arith.constant 0 : index
    %c0_66 = arith.constant 0 : index
    %120 = vector.load %arg7[%c8_64, %c0_65, %c0_66] : memref<9x4x4xf32, #tpu.memory_space<vmem>>, vector<1x4x4xf32>
    %121 = vector.shape_cast %120 : vector<1x4x4xf32> to vector<4x4xf32>
    %cst_67 = arith.constant dense<0.000000e+00> : vector<4x512xf32>
    %122 = tpu.matmul %121, %119, %cst_67 {dimension_numbers = #tpu.dot_dimension_numbers<[1], [0], [0], [1], [0, 0, 1, 1], [], []>, precision = #tpu.contract_precision<fp32>} : vector<4x4xf32>, vector<4x512xf32>, vector<4x512xf32> -> vector<4x512xf32>
    %123 = arith.addf %115, %122 : vector<4x512xf32>
    %c0_68 = arith.constant 0 : index
    %c0_69 = arith.constant 0 : index
    %124 = vector.load %arg8[%c0_68, %c0_69] : memref<4x1xf32, #tpu.memory_space<vmem>>, vector<4x1xf32>
    %125 = vector.broadcast %124 : vector<4x1xf32> to vector<4x512xf32>
    %126 = arith.addf %123, %125 : vector<4x512xf32>
    %cst_70 = arith.constant 0.000000e+00 : f32
    %127 = vector.broadcast %cst_70 : f32 to vector<4x512xf32>
    %128 = arith.maximumf %126, %127 : vector<4x512xf32>
    %c0_71 = arith.constant 0 : index
    %c0_72 = arith.constant 0 : index
    %129 = vector.load %arg9[%c0_71, %c0_72] : memref<4x512xf32, #tpu.memory_space<vmem>>, vector<4x512xf32>
    tpu.vector_store %arg9[%c0_71, %c0_72], %128 {strides = array<i32>} : memref<4x512xf32, #tpu.memory_space<vmem>>, vector<4x512xf32>,
    return
  }
  func.func @transform_0(%arg0: i32) -> (i32, i32) {
    %c0_i32 = arith.constant 0 : i32
    %c0_i32_0 = arith.constant 0 : i32
    return %c0_i32, %arg0 : i32, i32
  }
  func.func @transform_1(%arg0: i32) -> (i32, i32) {
    %c0_i32 = arith.constant 0 : i32
    %c0_i32_0 = arith.constant 0 : i32
    return %c0_i32, %arg0 : i32, i32
  }
  func.func @transform_2(%arg0: i32) -> (i32, i32) {
    %c0_i32 = arith.constant 0 : i32
    %c0_i32_0 = arith.constant 0 : i32
    %c0_i32_1 = arith.constant 0 : i32
    return %c0_i32, %c0_i32_0 : i32, i32
  }
  func.func @transform_3(%arg0: i32) -> (i32, i32) {
    %c0_i32 = arith.constant 0 : i32
    %c0_i32_0 = arith.constant 0 : i32
    %c0_i32_1 = arith.constant 0 : i32
    return %c0_i32, %c0_i32_0 : i32, i32
  }
  func.func @transform_4(%arg0: i32) -> (i32, i32) {
    %c0_i32 = arith.constant 0 : i32
    %c0_i32_0 = arith.constant 0 : i32
    %c0_i32_1 = arith.constant 0 : i32
    return %c0_i32, %c0_i32_0 : i32, i32
  }
  func.func @transform_5(%arg0: i32) -> (i32, i32) {
    %c0_i32 = arith.constant 0 : i32
    %c0_i32_0 = arith.constant 0 : i32
    %c0_i32_1 = arith.constant 0 : i32
    return %c0_i32, %c0_i32_0 : i32, i32
  }
  func.func @transform_6(%arg0: i32) -> (i32, i32, i32) {
    %c0_i32 = arith.constant 0 : i32
    %c0_i32_0 = arith.constant 0 : i32
    %c0_i32_1 = arith.constant 0 : i32
    %c0_i32_2 = arith.constant 0 : i32
    return %c0_i32, %c0_i32_0, %c0_i32_1 : i32, i32, i32
  }
  func.func @transform_7(%arg0: i32) -> (i32, i32) {
    %c0_i32 = arith.constant 0 : i32
    %c0_i32_0 = arith.constant 0 : i32
    %c0_i32_1 = arith.constant 0 : i32
    return %c0_i32, %c0_i32_0 : i32, i32
  }
  func.func @transform_8(%arg0: i32) -> (i32, i32) {
    %c0_i32 = arith.constant 0 : i32
    %c0_i32_0 = arith.constant 0 : i32
    return %c0_i32, %arg0 : i32, i32
  }
}

</mosaic_0001>

<bundles_post_ra>
// kernel: tpu_custom_call.1
= control target key start
LH: loop header
LB: loop body
LE: loop exit
PB: predicated region body
PF: predicated region fallthrough
CT: control target
= control target key end

     0   :  { %13 = vsyncpa [#allocation5], 0  ;;  %s16034_s0 = inlined_call_operand.vmem [shape: f32[4,128], index: 0, kind: input, shape index: {}]   ;;  %s16035_s1 = inlined_call_operand.hbm [shape: f32[4,512], index: 1, kind: input, shape index: {}]   ;;  %s16036_s2 = inlined_call_operand.hbm [shape: f32[128,512], index: 2, kind: input, shape index: {}]   ;;  %s16037_s3 = inlined_call_operand.vmem [shape: f32[9,512], index: 3, kind: input, shape index: {}]   ;;  %s16038_s4 = inlined_call_operand.hbm [shape: f32[4,72], index: 4, kind: input, shape index: {}]   ;;  %s16039_s5 = inlined_call_operand.vmem [shape: f32[4,1], index: 5, kind: input, shape index: {}]   ;;  %s16040_s6 = inlined_call_operand.vmem [shape: f32[9,4,4], index: 6, kind: input, shape index: {}]   ;;  %s16041_s7 = inlined_call_operand.vmem [shape: f32[4,1], index: 7, kind: input, shape index: {}]   ;;  %s16042_s8 = inlined_call_operand.hbm [shape: f32[4,512], index: 8, kind: output, shape index: {}]  }
   0x1   :  { %14 = vsyncpa [#allocation8], 0 }
   0x2   :  { %15 = vsyncpa [#allocation6], 0  ;;  %s13262_s27 = smov [#allocation7]   ;;  %s13168_s9 = scalar_lea.hbm %s16036_s2, 8192 }
   0x3   :  { %s33_s28 = sshll.u32 %s13262_s27, 4  ;;  %p13169_p0 = scmp.ne.s32.totalorder %s16036_s2, %s13168_s9  ;;  %s34_s28 = int_to_ptr.vmem [resolvable:$true] %s33_s28 }
   0x4   :  { %p13172_p1 = scmp.lt.u32.totalorder %s13168_s9, %s16036_s2 }
   0x6   :  { %p13174_p2 = pnand %p13172_p1, %p13169_p0 }
   0x8   :  { %13177 = shalt.err (!%p13174_p2)
}
   0x9   :  { %s13178_s14 = scalar_lea.vmem %s34_s28, 8192  ;;  %p13183_p4 = scmp.lt.s32.totalorder %s34_s28, %s34_s28 }
   0xa   :  { %p13179_p3 = scmp.ne.s32.totalorder %s34_s28, %s13178_s14  ;;  %p13184_p5 = scmp.lt.s32.totalorder %s13178_s14, %s13178_s14 }
   0xc   :  { %p13185_p6 = por %p13184_p5, %p13183_p4 }
   0xe   :  { %p13186_p7 = pnand %p13185_p6, %p13179_p3 }
  0x10   :  { %13189 = shalt.err (!%p13186_p7)
}
  0x11   :  { %s13263_s15 = smov 512   ;;  %s13264_s16 = smov 32  }
  0x12   :  { %39 = dma.hbm_to_vmem [thread:$0]  %s16036_s2, 8192, %s34_s28, [#allocation8], %s13263_s15, %s13263_s15, %s13264_s16  }
  0x13   :  { %s13265_s19 = smov [#allocation4]   ;;  %s13266_s21 = smov [#allocation9]  }
  0x14   :  { %s24_s20 = sshll.u32 %s13265_s19, 4  ;;  %s48_s22 = sshll.u32 %s13266_s21, 4  ;;  %s25_s20 = int_to_ptr.vmem [resolvable:$true] %s24_s20  ;;  %s49_s22 = int_to_ptr.vmem [resolvable:$true] %s48_s22 }
  0x15   :  { %s13190_s25 = scalar_lea.hbm %s16035_s1, 256 }
  0x16   :  { %p13191_p8 = scmp.ne.s32.totalorder %s16035_s1, %s13190_s25  ;;  %p13194_p9 = scmp.lt.u32.totalorder %s13190_s25, %s16035_s1 }
  0x18   :  { %p13196_p10 = pnand %p13194_p9, %p13191_p8 }
  0x1a   :  { %13199 = shalt.err (!%p13196_p10)
}
  0x1b   :  { %s13200_s2 = scalar_lea.vmem %s25_s20, 256  ;;  %p13205_p12 = scmp.lt.s32.totalorder %s25_s20, %s25_s20 }
  0x1c   :  { %p13201_p11 = scmp.ne.s32.totalorder %s25_s20, %s13200_s2  ;;  %p13206_p13 = scmp.lt.s32.totalorder %s13200_s2, %s13200_s2 }
  0x1e   :  { %p13207_p0 = por %p13206_p13, %p13205_p12 }
  0x20   :  { %p13208_p1 = pnand %p13207_p0, %p13201_p11 }
  0x22   :  { %13211 = shalt.err (!%p13208_p1)
}
  0x23   :  { %27 = dma.hbm_to_vmem [thread:$0]  %s16035_s1, 256, %s25_s20, [#allocation5]  }
  0x24   :  { %s13212_s12 = scalar_lea.hbm %s16038_s4, 64 }
  0x25   :  { %p13213_p2 = scmp.ne.s32.totalorder %s16038_s4, %s13212_s12  ;;  %p13216_p3 = scmp.lt.u32.totalorder %s13212_s12, %s16038_s4 }
  0x27   :  { %p13218_p4 = pnand %p13216_p3, %p13213_p2 }
  0x29   :  { %13221 = shalt.err (!%p13218_p4)
}
  0x2a   :  { %s13222_s17 = scalar_lea.vmem %s49_s22, 64  ;;  %p13227_p6 = scmp.lt.s32.totalorder %s49_s22, %s49_s22 }
  0x2b   :  { %p13223_p5 = scmp.ne.s32.totalorder %s49_s22, %s13222_s17  ;;  %p13228_p7 = scmp.lt.s32.totalorder %s13222_s17, %s13222_s17 }
  0x2d   :  { %p13229_p8 = por %p13228_p7, %p13227_p6 }
  0x2f   :  { %p13230_p9 = pnand %p13229_p8, %p13223_p5 }
  0x31   :  { %13233 = shalt.err (!%p13230_p9)
}
  0x32   :  { %51 = dma.hbm_to_vmem [thread:$0]  %s16038_s4, 64, %s49_s22, [#allocation8]  }
  0x33   :  { %13256 = dma.done.wait [#allocation5], 256  }
  0x34   :  { %13257 = vsyncadd [#allocation5], 4294967040 }
  0x35   :  { %13258 = dma.done.wait [#allocation8], 8256  }
  0x36   :  { %13259 = vsyncadd [#allocation8], 4294959040  ;;  %v16043_v0 = vmov 0.0   ;;  %v69_v1 = vld [vmem:[#allocation7 + $0x8] sm:$0xff]  ;;  %v71_v3 = vld [vmem:[#allocation7 + $0x18] sm:$0xff]  ;;  %s13269_s20 = smov 16  }
  0x37   :  { %228 = vmatprep.mubr.f32.mxu0 %v16043_v0  ;;  %1083 = vmatprep.mubr.f32.mxu1 %v16043_v0  ;;  %v73_v2 = vld [vmem:[#allocation7 + $0x28] sm:$0xff]  ;;  %v132_v4 = vand.u32 4294901760, %v69_v1  ;;  %v75_v6 = vld [vmem:[#allocation7 + $0x38] sm:$0xff]  ;;  %v987_v7 = vand.u32 4294901760, %v71_v3  ;;  %v68_v8 = vld [vmem:[#allocation7] sm:$0xff]  ;;  %s13270_s21 = smov 15  }
  0x38   :  { %v136_v5 = vand.u32 4294901760, %v73_v2  ;;  %v72_v9 = vld [vmem:[#allocation7 + $0x20] sm:$0xff]  ;;  %v991_v10 = vand.u32 4294901760, %v75_v6  ;;  %v134_v11 = vand.u32 4294901760, %v68_v8  ;;  %v70_v13 = vld [vmem:[#allocation7 + $0x10] sm:$0xff]  ;;  %v77_v15 = vld [vmem:[#allocation7 + $0x48] sm:$0xff] }
  0x39   :  { %v138_v12 = vand.u32 4294901760, %v72_v9  ;;  %v74_v14 = vld [vmem:[#allocation7 + $0x30] sm:$0xff]  ;;  %v13363_v17 = vsub.f32 %v69_v1, %v132_v4  ;;  %v13367_v19 = vsub.f32 %v71_v3, %v987_v7  ;;  %v81_v20 = vld [vmem:[#allocation7 + $0x68] sm:$0xff]  ;;  %v79_v21 = vld [vmem:[#allocation7 + $0x58] sm:$0xff]  ;;  %v989_v29 = vand.u32 4294901760, %v70_v13  ;;  %s13271_s22 = smov 1  }
  0x3a   :  { %v13361_v16 = vpack.c.bf16 %v136_v5, %v132_v4  ;;  %v13365_v18 = vsub.f32 %v73_v2, %v136_v5  ;;  %v83_v22 = vld [vmem:[#allocation7 + $0x78] sm:$0xff]  ;;  %v13369_v23 = vpack.c.bf16 %v991_v10, %v987_v7  ;;  %v13371_v24 = vsub.f32 %v75_v6, %v991_v10  ;;  %v76_v27 = vld [vmem:[#allocation7 + $0x40] sm:$0xff]  ;;  %v78_v37 = vld [vmem:[#allocation7 + $0x50] sm:$0xff]  ;;  %s13272_s23 = smov 127   ;;  %s13273_s24 = smov 113  }
  0x3b   :  { %16356 = vst [vmem:[#allocation15_spill] sm:$0xff] %v13363_v17  ;;  %16358 = vst [vmem:[#allocation17_spill] sm:$0xff] %v13367_v19  ;;  %v13373_v25 = vpack.c.bf16 %v138_v12, %v134_v11  ;;  %v13375_v26 = vsub.f32 %v68_v8, %v134_v11  ;;  %v13378_v28 = vsub.f32 %v72_v9, %v138_v12  ;;  %v993_v30 = vand.u32 4294901760, %v74_v14  ;;  %v80_v32 = vld [vmem:[#allocation7 + $0x60] sm:$0xff]  ;;  %v82_v38 = vld [vmem:[#allocation7 + $0x70] sm:$0xff]  ;;  %s13274_s25 = smov 112  }
  0x3c   :  { %16355 = vst [vmem:[#allocation14_spill] sm:$0xff] %v13361_v16  ;;  %16357 = vst [vmem:[#allocation16_spill] sm:$0xff] %v13365_v18  ;;  %12314 = vmatprep.subr.bf16.mxu0 %v13361_v16  ;;  %v140_v31 = vand.u32 4294901760, %v77_v15  ;;  %12506 = vmatprep.subr.bf16.mxu1 %v13369_v23  ;;  %v144_v33 = vand.u32 4294901760, %v81_v20  ;;  %v995_v34 = vand.u32 4294901760, %v79_v21  ;;  %v999_v35 = vand.u32 4294901760, %v83_v22 }
  0x3d   :  { %16359 = vst [vmem:[#allocation18_spill] sm:$0xff] %v13369_v23  ;;  %16360 = vst [vmem:[#allocation19_spill] sm:$0xff] %v13371_v24  ;;  %12316 = vmatpush1.bf16.msra.mxu0 %v13373_v25  ;;  %v142_v36 = vand.u32 4294901760, %v76_v27  ;;  %v13382_v39 = vpack.c.bf16 %v993_v30, %v989_v29  ;;  %v13384_v40 = vsub.f32 %v70_v13, %v989_v29  ;;  %v85_v43 = vld [vmem:[#allocation7 + $0x88] sm:$0xff]  ;;  %v87_v45 = vld [vmem:[#allocation7 + $0x98] sm:$0xff]  ;;  %v146_v52 = vand.u32 4294901760, %v80_v32 }
  0x3e   :  { %16361 = vst [vmem:[#allocation20_spill] sm:$0xff] %v13373_v25  ;;  %16362 = vst [vmem:[#allocation21_spill] sm:$0xff] %v13378_v28  ;;  %v13386_v41 = vsub.f32 %v74_v14, %v993_v30  ;;  %v13388_v42 = vsub.f32 %v77_v15, %v140_v31  ;;  %v89_v44 = vld [vmem:[#allocation7 + $0xa8] sm:$0xff]  ;;  %v13390_v46 = vpack.c.bf16 %v144_v33, %v140_v31  ;;  %v91_v50 = vld [vmem:[#allocation7 + $0xb8] sm:$0xff]  ;;  %v997_v54 = vand.u32 4294901760, %v78_v37  ;;  %s13275_s26 = smov 111  }
  0x3f   :  { %16363 = vst [vmem:[#allocation22_spill] sm:$0xff] %v13382_v39  ;;  %v13392_v47 = vsub.f32 %v81_v20, %v144_v33  ;;  %v13394_v48 = vpack.c.bf16 %v999_v35, %v995_v34  ;;  %v13396_v49 = vsub.f32 %v79_v21, %v995_v34  ;;  %12508 = vmatpush1.bf16.msra.mxu1 %v13382_v39  ;;  %v1001_v55 = vand.u32 4294901760, %v82_v38  ;;  %v84_v59 = vld [vmem:[#allocation7 + $0x80] sm:$0xff]  ;;  %v86_v2 = vld [vmem:[#allocation7 + $0x90] sm:$0xff]  ;;  %v93_v4 = vld [vmem:[#allocation7 + $0xc8] sm:$0xff] }
  0x40   :  { %16364 = vst [vmem:[#allocation23_spill] sm:$0xff] %v13390_v46  ;;  %v13399_v51 = vsub.f32 %v83_v22, %v999_v35  ;;  %v13401_v53 = vsub.f32 %v76_v27, %v142_v36  ;;  %12318 = vmatprep.subr.bf16.mxu0 %v13390_v46  ;;  %v148_v56 = vand.u32 4294901760, %v85_v43  ;;  %v152_v57 = vand.u32 4294901760, %v89_v44  ;;  %v88_v60 = vld [vmem:[#allocation7 + $0xa0] sm:$0xff]  ;;  %v90_v3 = vld [vmem:[#allocation7 + $0xb0] sm:$0xff]  ;;  %v97_v9 = vld [vmem:[#allocation7 + $0xe8] sm:$0xff] }
  0x41   :  { %16365 = vst [vmem:[#allocation24_spill] sm:$0xff] %v13394_v48  ;;  %12510 = vmatprep.subr.bf16.mxu1 %v13394_v48  ;;  %v1003_v58 = vand.u32 4294901760, %v87_v45  ;;  %v13405_v61 = vpack.c.bf16 %v146_v52, %v142_v36  ;;  %v13407_v62 = vsub.f32 %v80_v32, %v146_v52  ;;  %v13409_v63 = vsub.f32 %v78_v37, %v997_v54  ;;  %v95_v10 = vld [vmem:[#allocation7 + $0xd8] sm:$0xff]  ;;  %v92_v33 = vld [vmem:[#allocation7 + $0xc0] sm:$0xff]  ;;  %v110_v39 = vld [vmem:[#allocation7 + $0x150] sm:$0xff] }
  0x42   :  { %v1007_v1 = vand.u32 4294901760, %v91_v50  ;;  %v13411_v5 = vpack.c.bf16 %v1001_v55, %v997_v54  ;;  %v13413_v6 = vsub.f32 %v82_v38, %v1001_v55  ;;  %v13415_v7 = vpack.c.bf16 %v152_v57, %v148_v56  ;;  %v99_v11 = vld [vmem:[#allocation7 + $0xf8] sm:$0xff]  ;;  %v96_v38 = vld [vmem:[#allocation7 + $0xe0] sm:$0xff]  ;;  %v101_v55 = vld [vmem:[#allocation7 + $0x108] sm:$0xff] }
  0x43   :  { %16366 = vst [vmem:[#allocation25_spill] sm:$0xff] %v13405_v61  ;;  %v13417_v8 = vsub.f32 %v85_v43, %v148_v56  ;;  %12320 = vmatpush1.bf16.msra.mxu0 %v13405_v61  ;;  %v13420_v12 = vsub.f32 %v89_v44, %v152_v57  ;;  %v13424_v14 = vsub.f32 %v87_v45, %v1003_v58  ;;  %v150_v20 = vand.u32 4294901760, %v84_v59  ;;  %v94_v43 = vld [vmem:[#allocation7 + $0xd0] sm:$0xff]  ;;  %v105_v56 = vld [vmem:[#allocation7 + $0x128] sm:$0xff]  ;;  %v103_v57 = vld [vmem:[#allocation7 + $0x118] sm:$0xff] }
  0x44   :  { %16367 = vst [vmem:[#allocation26_spill] sm:$0xff] %v13411_v5  ;;  %16368 = vst [vmem:[#allocation27_spill] sm:$0xff] %v13415_v7  ;;  %v13422_v13 = vpack.c.bf16 %v1007_v1, %v1003_v58  ;;  %v13426_v15 = vsub.f32 %v91_v50, %v1007_v1  ;;  %12512 = vmatpush1.bf16.msra.mxu1 %v13411_v5  ;;  %12322 = vmatprep.subr.bf16.mxu0 %v13415_v7  ;;  %v154_v21 = vand.u32 4294901760, %v88_v60  ;;  %v98_v44 = vld [vmem:[#allocation7 + $0xf0] sm:$0xff]  ;;  %v104_v0 = vld [vmem:[#allocation7 + $0x120] sm:$0xff]  ;;  %vm2227_vm2 = vcmask 588800  }
  0x45   :  { %v1005_v22 = vand.u32 4294901760, %v86_v2  ;;  %v1009_v27 = vand.u32 4294901760, %v90_v3  ;;  %v156_v29 = vand.u32 4294901760, %v93_v4  ;;  %v160_v30 = vand.u32 4294901760, %v97_v9  ;;  %v111_v48 = vld [vmem:[#allocation7 + $0x158] sm:$0xff]  ;;  %v114_v16 = vld [vmem:[#allocation7 + $0x170] sm:$0xff] }
  0x46   :  { %16369 = vst [vmem:[#allocation28_spill] sm:$0xff] %v13422_v13  ;;  %12514 = vmatprep.subr.bf16.mxu1 %v13422_v13  ;;  %v1011_v31 = vand.u32 4294901760, %v95_v10  ;;  %v1015_v32 = vand.u32 4294901760, %v99_v11  ;;  %v13431_v34 = vpack.c.bf16 %v154_v21, %v150_v20  ;;  %v13433_v35 = vsub.f32 %v84_v59, %v150_v20  ;;  %v113_v13 = vld [vmem:[#allocation7 + $0x168] sm:$0xff] }
  0x47   :  { %v13435_v36 = vsub.f32 %v88_v60, %v154_v21  ;;  %v13437_v37 = vpack.c.bf16 %v1009_v27, %v1005_v22  ;;  %v13439_v45 = vsub.f32 %v86_v2, %v1005_v22  ;;  %v13441_v50 = vsub.f32 %v90_v3, %v1009_v27  ;;  %v107_v21 = vld [vmem:[#allocation7 + $0x138] sm:$0xff] }
  0x48   :  { %16370 = vst [vmem:[#allocation29_spill] sm:$0xff] %v13431_v34  ;;  %v13443_v52 = vpack.c.bf16 %v160_v30, %v156_v29  ;;  %v13445_v54 = vsub.f32 %v93_v4, %v156_v29  ;;  %12324 = vmatpush1.bf16.msra.mxu0 %v13431_v34  ;;  %v13449_v58 = vsub.f32 %v97_v9, %v160_v30  ;;  %v158_v1 = vand.u32 4294901760, %v92_v33  ;;  %v100_v30 = vld [vmem:[#allocation7 + $0x100] sm:$0xff]  ;;  %v109_v34 = vld [vmem:[#allocation7 + $0x148] sm:$0xff] }
  0x49   :  { %16371 = vst [vmem:[#allocation30_spill] sm:$0xff] %v13437_v37  ;;  %12516 = vmatpush1.bf16.msra.mxu1 %v13437_v37  ;;  %v13451_v59 = vpack.c.bf16 %v1015_v32, %v1011_v31  ;;  %v13453_v60 = vsub.f32 %v95_v10, %v1011_v31  ;;  %v13456_v2 = vsub.f32 %v99_v11, %v1015_v32  ;;  %v162_v3 = vand.u32 4294901760, %v96_v38  ;;  %v102_v10 = vld [vmem:[#allocation7 + $0x110] sm:$0xff] }
  0x4a   :  { %16372 = vst [vmem:[#allocation31_spill] sm:$0xff] %v13443_v52  ;;  %12326 = vmatprep.subr.bf16.mxu0 %v13443_v52  ;;  %v1013_v4 = vand.u32 4294901760, %v94_v43  ;;  %v1017_v20 = vand.u32 4294901760, %v98_v44  ;;  %v13459_v22 = vsub.f32 %v92_v33, %v158_v1  ;;  %v164_v27 = vand.u32 4294901760, %v101_v55  ;;  %v106_v52 = vld [vmem:[#allocation7 + $0x130] sm:$0xff] }
  0x4b   :  { %16373 = vst [vmem:[#allocation32_spill] sm:$0xff] %v13451_v59  ;;  %12518 = vmatprep.subr.bf16.mxu1 %v13451_v59  ;;  %v168_v9 = vand.u32 4294901760, %v105_v56  ;;  %v1019_v29 = vand.u32 4294901760, %v103_v57  ;;  %v13461_v31 = vpack.c.bf16 %v162_v3, %v158_v1  ;;  %v13463_v37 = vsub.f32 %v96_v38, %v162_v3 }
  0x4c   :  { %v13465_v11 = vpack.c.bf16 %v1017_v20, %v1013_v4  ;;  %v13467_v32 = vsub.f32 %v94_v43, %v1013_v4  ;;  %v13469_v59 = vsub.f32 %v98_v44, %v1017_v20  ;;  %v13473_v5 = vsub.f32 %v101_v55, %v164_v27  ;;  %v115_v55 = vld [vmem:[#allocation7 + $0x178] sm:$0xff] }
  0x4d   :  { %16374 = vst [vmem:[#allocation33_spill] sm:$0xff] %v13461_v31  ;;  %v13471_v33 = vpack.c.bf16 %v168_v9, %v164_v27  ;;  %v13475_v7 = vsub.f32 %v105_v56, %v168_v9  ;;  %12328 = vmatpush1.bf16.msra.mxu0 %v13461_v31  ;;  %v1023_v38 = vand.u32 4294901760, %v107_v21  ;;  %v13479_v1 = vsub.f32 %v103_v57, %v1019_v29  ;;  %v108_v57 = vld [vmem:[#allocation7 + $0x140] sm:$0xff] }
  0x4e   :  { %16375 = vst [vmem:[#allocation34_spill] sm:$0xff] %v13465_v11  ;;  %16376 = vst [vmem:[#allocation35_spill] sm:$0xff] %v13467_v32  ;;  %12520 = vmatpush1.bf16.msra.mxu1 %v13465_v11  ;;  %v166_v43 = vand.u32 4294901760, %v100_v30  ;;  %v170_v3 = vand.u32 4294901760, %v104_v0  ;;  %v1021_v4 = vand.u32 4294901760, %v102_v10  ;;  %v1025_v44 = vand.u32 4294901760, %v106_v52 }
  0x4f   :  { %16377 = vst [vmem:[#allocation36_spill] sm:$0xff] %v13469_v59  ;;  %16378 = vst [vmem:[#allocation37_spill] sm:$0xff] %v13471_v33  ;;  %12330 = vmatprep.subr.bf16.mxu0 %v13471_v33  ;;  %v172_v20 = vand.u32 4294901760, %v109_v34  ;;  %v176_v61 = vand.u32 4294901760, %v113_v13  ;;  %v13482_v27 = vpack.c.bf16 %v1023_v38, %v1019_v29  ;;  %v13484_v56 = vsub.f32 %v107_v21, %v1023_v38  ;;  %v112_v31 = vld [vmem:[#allocation7 + $0x160] sm:$0xff]  ;;  %v117_v29 = vld [vmem:[#allocation7 + $0x188] sm:$0xff] }
  0x50   :  { %16379 = vst [vmem:[#allocation38_spill] sm:$0xff] %v13473_v5  ;;  %16380 = vst [vmem:[#allocation39_spill] sm:$0xff] %v13475_v7  ;;  %v13486_v9 = vpack.c.bf16 %v170_v3, %v166_v43  ;;  %v13488_v11 = vsub.f32 %v100_v30, %v166_v43  ;;  %v13490_v46 = vsub.f32 %v104_v0, %v170_v3  ;;  %v1027_v0 = vand.u32 4294901760, %v111_v48 }
  0x51   :  { %16381 = vst [vmem:[#allocation40_spill] sm:$0xff] %v13479_v1  ;;  %16382 = vst [vmem:[#allocation41_spill] sm:$0xff] %v13482_v27  ;;  %v13492_v33 = vpack.c.bf16 %v1025_v44, %v1021_v4  ;;  %v13494_v25 = vsub.f32 %v102_v10, %v1021_v4  ;;  %v13496_v23 = vsub.f32 %v106_v52, %v1025_v44  ;;  %v121_v1 = vld [vmem:[#allocation7 + $0x1a8] sm:$0xff]  ;;  %12522 = vmatprep.subr.bf16.mxu1 %v13482_v27  ;;  %vm3600_vm9 = vcmask 31744  }
  0x52   :  { %16383 = vst [vmem:[#allocation42_spill] sm:$0xff] %v13484_v56  ;;  %16384 = vst [vmem:[#allocation43_spill] sm:$0xff] %v13486_v9  ;;  %12332 = vmatpush1.bf16.msra.mxu0 %v13486_v9  ;;  %v13500_v21 = vpack.c.bf16 %v176_v61, %v172_v20  ;;  %v13502_v30 = vsub.f32 %v109_v34, %v172_v20  ;;  %v13504_v38 = vsub.f32 %v113_v13, %v176_v61  ;;  %v129_v56 = vld [vmem:[#allocation7 + $0x1e8] sm:$0xff]  ;;  %vm3604_vm10 = vcmask 1043456  }
  0x53   :  { %16385 = vst [vmem:[#allocation44_spill] sm:$0xff] %v13488_v11  ;;  %16386 = vst [vmem:[#allocation45_spill] sm:$0xff] %v13490_v46  ;;  %12524 = vmatpush1.bf16.msra.mxu1 %v13492_v33  ;;  %v1031_v10 = vand.u32 4294901760, %v115_v55  ;;  %v174_v43 = vand.u32 4294901760, %v108_v57  ;;  %v178_v52 = vand.u32 4294901760, %v112_v31  ;;  %v1029_v3 = vand.u32 4294901760, %v110_v39 }
  0x54   :  { %16387 = vst [vmem:[#allocation46_spill] sm:$0xff] %v13492_v33  ;;  %16388 = vst [vmem:[#allocation47_spill] sm:$0xff] %v13494_v25  ;;  %12334 = vmatprep.subr.bf16.mxu0 %v13500_v21  ;;  %v13508_v4 = vsub.f32 %v111_v48, %v1027_v0  ;;  %v1033_v44 = vand.u32 4294901760, %v114_v16  ;;  %v180_v27 = vand.u32 4294901760, %v117_v29  ;;  %v184_v9 = vand.u32 4294901760, %v121_v1  ;;  %v123_v25 = vld [vmem:[#allocation7 + $0x1b8] sm:$0xff] }
  0x55   :  { %16389 = vst [vmem:[#allocation48_spill] sm:$0xff] %v13496_v23  ;;  %16390 = vst [vmem:[#allocation49_spill] sm:$0xff] %v13500_v21  ;;  %v119_v23 = vld [vmem:[#allocation7 + $0x198] sm:$0xff]  ;;  %v13510_v34 = vpack.c.bf16 %v1031_v10, %v1027_v0  ;;  %v13512_v61 = vsub.f32 %v115_v55, %v1031_v10  ;;  %v13514_v13 = vpack.c.bf16 %v178_v52, %v174_v43  ;;  %v116_v33 = vld [vmem:[#allocation7 + $0x180] sm:$0xff] }
  0x56   :  { %16391 = vst [vmem:[#allocation50_spill] sm:$0xff] %v13502_v30  ;;  %16392 = vst [vmem:[#allocation51_spill] sm:$0xff] %v13504_v38  ;;  %v13516_v20 = vsub.f32 %v108_v57, %v174_v43  ;;  %v120_v38 = vld [vmem:[#allocation7 + $0x1a0] sm:$0xff]  ;;  %v118_v30 = vld [vmem:[#allocation7 + $0x190] sm:$0xff]  ;;  %v13518_v46 = vsub.f32 %v112_v31, %v178_v52  ;;  %v13520_v48 = vpack.c.bf16 %v1033_v44, %v1029_v3  ;;  %v1035_v31 = vand.u32 4294901760, %v119_v23 }
  0x57   :  { %16393 = vst [vmem:[#allocation52_spill] sm:$0xff] %v13508_v4  ;;  %16394 = vst [vmem:[#allocation53_spill] sm:$0xff] %v13510_v34  ;;  %v13522_v21 = vsub.f32 %v110_v39, %v1029_v3  ;;  %v13524_v4 = vsub.f32 %v114_v16, %v1033_v44  ;;  %v122_v11 = vld [vmem:[#allocation7 + $0x1b0] sm:$0xff]  ;;  %v125_v0 = vld [vmem:[#allocation7 + $0x1c8] sm:$0xff]  ;;  %12526 = vmatprep.subr.bf16.mxu1 %v13510_v34  ;;  %12336 = vmatpush1.bf16.msra.mxu0 %v13514_v13  ;;  %v1039_v39 = vand.u32 4294901760, %v123_v25 }
  0x58   :  { %16395 = vst [vmem:[#allocation54_spill] sm:$0xff] %v13512_v61  ;;  %16396 = vst [vmem:[#allocation55_spill] sm:$0xff] %v13514_v13  ;;  %v13528_v55 = vpack.c.bf16 %v184_v9, %v180_v27  ;;  %v13530_v57 = vsub.f32 %v117_v29, %v180_v27  ;;  %v13532_v10 = vsub.f32 %v121_v1, %v184_v9  ;;  %12528 = vmatpush1.bf16.msra.mxu1 %v13520_v48 }
  0x59   :  { %16397 = vst [vmem:[#allocation56_spill] sm:$0xff] %v13516_v20  ;;  %16398 = vst [vmem:[#allocation57_spill] sm:$0xff] %v13518_v46  ;;  %v182_v43 = vand.u32 4294901760, %v116_v33  ;;  %v186_v16 = vand.u32 4294901760, %v120_v38  ;;  %v1037_v52 = vand.u32 4294901760, %v118_v30  ;;  %v13536_v3 = vsub.f32 %v119_v23, %v1035_v31  ;;  %v130_v20 = vld [vmem:[#allocation7 + $0x1f0] sm:$0xff] }
  0x5a   :  { %16399 = vst [vmem:[#allocation58_spill] sm:$0xff] %v13520_v48  ;;  %16400 = vst [vmem:[#allocation59_spill] sm:$0xff] %v13522_v21  ;;  %12338 = vmatprep.subr.bf16.mxu0 %v13528_v55  ;;  %v1041_v44 = vand.u32 4294901760, %v122_v11  ;;  %v188_v34 = vand.u32 4294901760, %v125_v0  ;;  %v192_v13 = vand.u32 4294901760, %v129_v56  ;;  %v131_v21 = vld [vmem:[#allocation7 + $0x1f8] sm:$0xff]  ;;  %v13538_v27 = vpack.c.bf16 %v1039_v39, %v1035_v31 }
  0x5b   :  { %16401 = vst [vmem:[#allocation60_spill] sm:$0xff] %v13524_v4  ;;  %16402 = vst [vmem:[#allocation61_spill] sm:$0xff] %v13528_v55  ;;  %v127_v4 = vld [vmem:[#allocation7 + $0x1d8] sm:$0xff]  ;;  %v13540_v1 = vsub.f32 %v123_v25, %v1039_v39  ;;  %v13542_v9 = vpack.c.bf16 %v186_v16, %v182_v43  ;;  %v13544_v29 = vsub.f32 %v116_v33, %v182_v43  ;;  %v124_v48 = vld [vmem:[#allocation7 + $0x1c0] sm:$0xff] }
  0x5c   :  { %16403 = vst [vmem:[#allocation62_spill] sm:$0xff] %v13530_v57  ;;  %16404 = vst [vmem:[#allocation63_spill] sm:$0xff] %v13532_v10  ;;  %v128_v10 = vld [vmem:[#allocation7 + $0x1e0] sm:$0xff]  ;;  %v126_v57 = vld [vmem:[#allocation7 + $0x1d0] sm:$0xff]  ;;  %v13546_v46 = vsub.f32 %v120_v38, %v186_v16  ;;  %v13548_v23 = vpack.c.bf16 %v1041_v44, %v1037_v52  ;;  %v13550_v55 = vsub.f32 %v118_v30, %v1037_v52  ;;  %12530 = vmatprep.subr.bf16.mxu1 %v13538_v27 }
  0x5d   :  { %16405 = vst [vmem:[#allocation64_spill] sm:$0xff] %v13536_v3  ;;  %16406 = vst [vmem:[#allocation65_spill] sm:$0xff] %v13538_v27  ;;  %v13552_v3 = vsub.f32 %v122_v11, %v1041_v44  ;;  %12340 = vmatpush1.bf16.msra.mxu0 %v13542_v9  ;;  %v13556_v25 = vpack.c.bf16 %v192_v13, %v188_v34  ;;  %v13558_v33 = vsub.f32 %v125_v0, %v188_v34 }
  0x5e   :  { %16407 = vst [vmem:[#allocation66_spill] sm:$0xff] %v13542_v9  ;;  %16408 = vst [vmem:[#allocation67_spill] sm:$0xff] %v13548_v23  ;;  %v13560_v31 = vsub.f32 %v129_v56, %v192_v13  ;;  %v1043_v39 = vand.u32 4294901760, %v127_v4  ;;  %12532 = vmatpush1.bf16.msra.mxu1 %v13548_v23  ;;  %v1047_v38 = vand.u32 4294901760, %v131_v21  ;;  %v190_v43 = vand.u32 4294901760, %v124_v48 }
  0x5f   :  { %16409 = vst [vmem:[#allocation68_spill] sm:$0xff] %v13556_v25  ;;  %v194_v30 = vand.u32 4294901760, %v128_v10  ;;  %v1045_v16 = vand.u32 4294901760, %v126_v57  ;;  %12342 = vmatprep.subr.bf16.mxu0 %v13556_v25  ;;  %v1049_v52 = vand.u32 4294901760, %v130_v20  ;;  %v16119_v9 = vand.u32 4294901760, %v13365_v18 }
  0x60   :  { %16410 = vst [vmem:[#allocation69_spill] sm:$0xff] %v13560_v31  ;;  %v13564_v11 = vsub.f32 %v127_v4, %v1043_v39  ;;  %v13568_v34 = vpack.c.bf16 %v1047_v38, %v1043_v39  ;;  %v13570_v56 = vsub.f32 %v131_v21, %v1047_v38  ;;  %v13574_v0 = vsub.f32 %v124_v48, %v190_v43  ;;  %v67_v23 = vld [vmem:[%s16034_s0] sm:$0xf]  ;;  %s13268_s0 = smov 17  }
  0x61   :  { %v13572_v13 = vpack.c.bf16 %v194_v30, %v190_v43  ;;  %v13579_v25 = vsub.f32 %v128_v10, %v194_v30  ;;  %v13581_v4 = vpack.c.bf16 %v1049_v52, %v1045_v16  ;;  %v13583_v27 = vsub.f32 %v126_v57, %v1045_v16 }
  0x62   :  { %16411 = vst [vmem:[#allocation70_spill] sm:$0xff] %v13564_v11  ;;  %16412 = vst [vmem:[#allocation71_spill] sm:$0xff] %v13568_v34  ;;  %v13585_v44 = vsub.f32 %v130_v20, %v1049_v52  ;;  %12534 = vmatprep.subr.bf16.mxu1 %v13568_v34  ;;  %v16420_v21 = vand.u32 4294901760, %v13363_v17  ;;  %v255_v39 = vsub.f32 %v13365_v18, %v16119_v9  ;;  %v16124_v10 = vand.u32 4294901760, %v13367_v19 }
  0x63   :  { %16413 = vst [vmem:[#allocation72_spill] sm:$0xff] %v13570_v56  ;;  %16414 = vst [vmem:[#allocation73_spill] sm:$0xff] %v13572_v13  ;;  %12344 = vmatpush1.bf16.msra.mxu0 %v13572_v13  ;;  %v16129_v38 = vand.u32 4294901760, %v13371_v24  ;;  %12536 = vmatpush1.bf16.msra.mxu1 %v13581_v4  ;;  %v13598_v20 = vand.u32 4294901760, %v67_v23  ;;  %v16136_v57 = vand.u32 4294901760, %v13375_v26  ;;  %v16137_v43 = vand.u32 4294901760, %v13378_v28 }
  0x64   :  { %16415 = vst [vmem:[#allocation74_spill] sm:$0xff] %v13574_v0  ;;  %16416 = vst [vmem:[#allocation75_spill] sm:$0xff] %v13579_v25  ;;  %v243_v48 = vsub.f32 %v13363_v17, %v16420_v21  ;;  %v16143_v30 = vand.u32 4294901760, %v13384_v40  ;;  %v256_v52 = vand.u32 4294901760, %v255_v39  ;;  %v1098_v21 = vsub.f32 %v13367_v19, %v16124_v10 }
  0x65   :  { %16417 = vst [vmem:[#allocation76_spill] sm:$0xff] %v13581_v4  ;;  %16418 = vst [vmem:[#allocation77_spill] sm:$0xff] %v13583_v27  ;;  %v1110_v9 = vsub.f32 %v13371_v24, %v16129_v38  ;;  %v13610_v4 = vsub.f32 %v67_v23, %v13598_v20  ;;  %v249_v13 = vsub.f32 %v13375_v26, %v16136_v57  ;;  %v16140_v38 = vand.u32 4294901760, %v13386_v41 }
  0x66   :  { %16419 = vst [vmem:[#allocation78_spill] sm:$0xff] %v13585_v44  ;;  %16421 = vst [vmem:[#allocation79_spill] sm:$0xff] %v13598_v20  ;;  %v244_v16 = vand.u32 4294901760, %v243_v48  ;;  %v261_v48 = vsub.f32 %v13378_v28, %v16137_v43  ;;  %v1104_v39 = vsub.f32 %v13384_v40, %v16143_v30  ;;  %v1099_v34 = vand.u32 4294901760, %v1098_v21 }
  0x67   :  { %16422 = vst [vmem:[#allocation80_spill] sm:$0xff] %v13610_v4  ;;  %v1111_v19 = vand.u32 4294901760, %v1110_v9  ;;  %v13623_v23 = vand.u32 4294901760, %v13610_v4  ;;  %v250_v20 = vand.u32 4294901760, %v249_v13  ;;  %v1116_v43 = vsub.f32 %v13386_v41, %v16140_v38 }
  0x68   :  { %v12345_v10 = vpack.c.bf16 %v256_v52, %v244_v16  ;;  %v262_v24 = vand.u32 4294901760, %v261_v48  ;;  %v1105_v18 = vand.u32 4294901760, %v1104_v39  ;;  %v16141_v28 = vand.u32 4294901760, %v13388_v42 }
  0x69   :  { %16423 = vst [vmem:[#allocation81_spill] sm:$0xff] %v13623_v23  ;;  %v12537_v57 = vpack.c.bf16 %v1111_v19, %v1099_v34  ;;  %v16142_v16 = vand.u32 4294901760, %v13392_v47  ;;  %v232_v9 = vsub.f32 %v13610_v4, %v13623_v23  ;;  %v16144_v21 = vand.u32 4294901760, %v13396_v49 }
  0x6a   :  { %12346 = vmatprep.subr.bf16.mxu0 %v12345_v10  ;;  %v12347_v52 = vpack.c.bf16 %v262_v24, %v250_v20  ;;  %v16147_v13 = vand.u32 4294901760, %v13399_v51  ;;  %v1117_v48 = vand.u32 4294901760, %v1116_v43  ;;  %v267_v19 = vsub.f32 %v13388_v42, %v16141_v28 }
  0x6b   :  { %12538 = vmatprep.subr.bf16.mxu1 %v12537_v57  ;;  %v279_v34 = vsub.f32 %v13392_v47, %v16142_v16  ;;  %v16148_v10 = vand.u32 4294901760, %v13401_v53  ;;  %v233_v39 = vand.u32 4294901760, %v232_v9  ;;  %v1122_v24 = vsub.f32 %v13396_v49, %v16144_v21 }
  0x6c   :  { %v1134_v20 = vsub.f32 %v13399_v51, %v16147_v13  ;;  %v16153_v57 = vand.u32 4294901760, %v13407_v62  ;;  %v12539_v43 = vpack.c.bf16 %v1117_v48, %v1105_v18  ;;  %v268_v38 = vand.u32 4294901760, %v267_v19 }
  0x6d   :  { %v280_v28 = vand.u32 4294901760, %v279_v34  ;;  %v273_v16 = vsub.f32 %v13401_v53, %v16148_v10  ;;  %234 = vmatmul.mubr.f32.vlgmr.msra.gmra.mrb[0].mxu0 %v233_v39  ;;  %1089 = vmatmul.mubr.f32.vlgmr.msra.gmra.mrb[0].mxu1 %v233_v39  ;;  %v1123_v9 = vand.u32 4294901760, %v1122_v24  ;;  %v16149_v23 = vand.u32 4294901760, %v13409_v63 }
  0x6e   :  { %v1135_v30 = vand.u32 4294901760, %v1134_v20  ;;  %v285_v21 = vsub.f32 %v13407_v62, %v16153_v57  ;;  %12348 = vmatpush1.bf16.msra.mxu0 %v12347_v52  ;;  %12540 = vmatpush1.bf16.msra.mxu1 %v12539_v43  ;;  %v16150_v48 = vand.u32 4294901760, %v13413_v6  ;;  %v16151_v19 = vand.u32 4294901760, %v13417_v8 }
  0x6f   :  { %v12349_v13 = vpack.c.bf16 %v280_v28, %v268_v38  ;;  %v274_v18 = vand.u32 4294901760, %v273_v16  ;;  %v1128_v39 = vsub.f32 %v13409_v63, %v16149_v23  ;;  %v16152_v24 = vand.u32 4294901760, %v13420_v12 }
  0x70   :  { %v12541_v34 = vpack.c.bf16 %v1135_v30, %v1123_v9  ;;  %v286_v10 = vand.u32 4294901760, %v285_v21  ;;  %v16424_v20 = vmov 0.0   ;;  %v1140_v28 = vsub.f32 %v13413_v6, %v16150_v48 }
  0x71   :  { %464 = vmatprep.mubr.f32.mxu0 %v16424_v20  ;;  %1319 = vmatprep.mubr.f32.mxu1 %v16424_v20  ;;  %v291_v38 = vsub.f32 %v13417_v8, %v16151_v19  ;;  %v16154_v30 = vand.u32 4294901760, %v13424_v14  ;;  %v16165_v16 = vand.u32 4294901760, %v13426_v15  ;;  %v1129_v21 = vand.u32 4294901760, %v1128_v39 }
  0x72   :  { %12350 = vmatprep.subr.bf16.mxu0 %v12349_v13  ;;  %12542 = vmatprep.subr.bf16.mxu1 %v12541_v34  ;;  %v12351_v52 = vpack.c.bf16 %v286_v10, %v274_v18  ;;  %v303_v43 = vsub.f32 %v13420_v12, %v16152_v24  ;;  %v16157_v13 = vand.u32 4294901760, %v13433_v35  ;;  %v1141_v9 = vand.u32 4294901760, %v1140_v28 }
  0x73   :  { %v292_v23 = vand.u32 4294901760, %v291_v38  ;;  %v1146_v48 = vsub.f32 %v13424_v14, %v16154_v30  ;;  %v1158_v19 = vsub.f32 %v13426_v15, %v16165_v16  ;;  %v16158_v18 = vand.u32 4294901760, %v13435_v36 }
  0x74   :  { %12352 = vmatpush1.bf16.msra.mxu0 %v12351_v52  ;;  %v304_v34 = vand.u32 4294901760, %v303_v43  ;;  %v297_v10 = vsub.f32 %v13433_v35, %v16157_v13  ;;  %v16162_v39 = vand.u32 4294901760, %v13439_v45  ;;  %v12543_v28 = vpack.c.bf16 %v1141_v9, %v1129_v21 }
  0x75   :  { %v1147_v38 = vand.u32 4294901760, %v1146_v48  ;;  %v1159_v24 = vand.u32 4294901760, %v1158_v19  ;;  %v16159_v57 = vand.u32 4294901760, %v13441_v50  ;;  %v309_v52 = vsub.f32 %v13435_v36, %v16158_v18 }
  0x76   :  { %v12353_v30 = vpack.c.bf16 %v304_v34, %v292_v23  ;;  %v298_v4 = vand.u32 4294901760, %v297_v10  ;;  %v1152_v43 = vsub.f32 %v13439_v45, %v16162_v39  ;;  %12544 = vmatpush1.bf16.msra.mxu1 %v12543_v28  ;;  %v16160_v48 = vand.u32 4294901760, %v13445_v54 }
  0x77   :  { %v12545_v13 = vpack.c.bf16 %v1159_v24, %v1147_v38  ;;  %v1164_v21 = vsub.f32 %v13441_v50, %v16159_v57  ;;  %v16161_v19 = vand.u32 4294901760, %v13449_v58  ;;  %v310_v23 = vand.u32 4294901760, %v309_v52 }
  0x78   :  { %12354 = vmatprep.subr.bf16.mxu0 %v12353_v30  ;;  %v1153_v9 = vand.u32 4294901760, %v1152_v43  ;;  %v16163_v34 = vand.u32 4294901760, %v13453_v60  ;;  %v16164_v10 = vand.u32 4294901760, %v13456_v2  ;;  %v315_v24 = vsub.f32 %v13445_v54, %v16160_v48 }
  0x79   :  { %12546 = vmatprep.subr.bf16.mxu1 %v12545_v13  ;;  %v1165_v18 = vand.u32 4294901760, %v1164_v21  ;;  %v327_v28 = vsub.f32 %v13449_v58, %v16161_v19  ;;  %v16168_v38 = vand.u32 4294901760, %v13459_v22  ;;  %v12355_v57 = vpack.c.bf16 %v310_v23, %v298_v4 }
  0x7a   :  { %v1170_v30 = vsub.f32 %v13453_v60, %v16163_v34  ;;  %v1182_v13 = vsub.f32 %v13456_v2, %v16164_v10  ;;  %v16167_v52 = vand.u32 4294901760, %v13463_v37  ;;  %v316_v21 = vand.u32 4294901760, %v315_v24 }
  0x7b   :  { %v12547_v43 = vpack.c.bf16 %v1165_v18, %v1153_v9  ;;  %v328_v48 = vand.u32 4294901760, %v327_v28  ;;  %v321_v19 = vsub.f32 %v13459_v22, %v16168_v38  ;;  %12356 = vmatpush1.bf16.msra.mxu0 %v12355_v57  ;;  %v16166_v34 = vand.u32 4294901760, %v13467_v32 }
  0x7c   :  { %v1171_v39 = vand.u32 4294901760, %v1170_v30  ;;  %v1183_v4 = vand.u32 4294901760, %v1182_v13  ;;  %v333_v23 = vsub.f32 %v13463_v37, %v16167_v52  ;;  %v16171_v18 = vand.u32 4294901760, %v13469_v59 }
  0x7d   :  { %12548 = vmatpush1.bf16.msra.mxu1 %v12547_v43  ;;  %v12357_v10 = vpack.c.bf16 %v328_v48, %v316_v21  ;;  %v322_v16 = vand.u32 4294901760, %v321_v19  ;;  %v16172_v9 = vand.u32 4294901760, %v13473_v5  ;;  %v1176_v57 = vsub.f32 %v13467_v32, %v16166_v34  ;;  %v16425_v19 = vld [vmem:[#allocation40_spill] sm:$0xff]  ;;  %v16426_v21 = vld [vmem:[#allocation42_spill] sm:$0xff] }
  0x7e   :  { %v12549_v24 = vpack.c.bf16 %v1183_v4, %v1171_v39  ;;  %v334_v28 = vand.u32 4294901760, %v333_v23  ;;  %v16173_v30 = vand.u32 4294901760, %v13475_v7  ;;  %v1188_v13 = vsub.f32 %v13469_v59, %v16171_v18 }
  0x7f   :  { %12358 = vmatprep.subr.bf16.mxu0 %v12357_v10  ;;  %v339_v48 = vsub.f32 %v13473_v5, %v16172_v9  ;;  %v16181_v43 = vand.u32 4294901760, %v16425_v19  ;;  %v16184_v39 = vand.u32 4294901760, %v16426_v21  ;;  %v1177_v23 = vand.u32 4294901760, %v1176_v57  ;;  %v16427_v10 = vld [vmem:[#allocation44_spill] sm:$0xff] }
  0x80   :  { %12550 = vmatprep.subr.bf16.mxu1 %v12549_v24  ;;  %v12359_v4 = vpack.c.bf16 %v334_v28, %v322_v16  ;;  %v351_v34 = vsub.f32 %v13475_v7, %v16173_v30  ;;  %v16183_v52 = vand.u32 4294901760, %v16427_v10  ;;  %v1189_v38 = vand.u32 4294901760, %v1188_v13  ;;  %v16428_v28 = vld [vmem:[#allocation45_spill] sm:$0xff]  ;;  %v16429_v30 = vld [vmem:[#allocation47_spill] sm:$0xff]  ;;  %v16430_v7 = vld [vmem:[#allocation48_spill] sm:$0xff] }
  0x81   :  { %v340_v32 = vand.u32 4294901760, %v339_v48  ;;  %v1194_v18 = vsub.f32 %v16425_v19, %v16181_v43  ;;  %v1206_v9 = vsub.f32 %v16426_v21, %v16184_v39  ;;  %v16186_v57 = vand.u32 4294901760, %v16428_v28 }
  0x82   :  { %12360 = vmatpush1.bf16.msra.mxu0 %v12359_v4  ;;  %v352_v24 = vand.u32 4294901760, %v351_v34  ;;  %v345_v16 = vsub.f32 %v16427_v10, %v16183_v52  ;;  %v16189_v59 = vand.u32 4294901760, %v16429_v30  ;;  %v12551_v13 = vpack.c.bf16 %v1189_v38, %v1177_v23  ;;  %v16432_v23 = vld [vmem:[#allocation51_spill] sm:$0xff] }
  0x83   :  { %v1195_v48 = vand.u32 4294901760, %v1194_v18  ;;  %v1207_v20 = vand.u32 4294901760, %v1206_v9  ;;  %v16188_v5 = vand.u32 4294901760, %v16430_v7  ;;  %v357_v4 = vsub.f32 %v16428_v28, %v16186_v57  ;;  %v16431_v18 = vld [vmem:[#allocation50_spill] sm:$0xff] }
  0x84   :  { %v12361_v43 = vpack.c.bf16 %v352_v24, %v340_v32  ;;  %v346_v19 = vand.u32 4294901760, %v345_v16  ;;  %v1200_v34 = vsub.f32 %v16429_v30, %v16189_v59  ;;  %12552 = vmatpush1.bf16.msra.mxu1 %v12551_v13  ;;  %v16191_v9 = vand.u32 4294901760, %v16431_v18  ;;  %v16433_v16 = vld [vmem:[#allocation52_spill] sm:$0xff] }
  0x85   :  { %v12553_v52 = vpack.c.bf16 %v1207_v20, %v1195_v48  ;;  %v1212_v38 = vsub.f32 %v16430_v7, %v16188_v5  ;;  %v16192_v39 = vand.u32 4294901760, %v16432_v23  ;;  %v358_v32 = vand.u32 4294901760, %v357_v4  ;;  %v16434_v48 = vld [vmem:[#allocation56_spill] sm:$0xff]  ;;  %v16435_v4 = vld [vmem:[#allocation57_spill] sm:$0xff] }
  0x86   :  { %12362 = vmatprep.subr.bf16.mxu0 %v12361_v43  ;;  %v1201_v24 = vand.u32 4294901760, %v1200_v34  ;;  %v16194_v10 = vand.u32 4294901760, %v16433_v16  ;;  %v16196_v57 = vand.u32 4294901760, %v13512_v61  ;;  %v363_v20 = vsub.f32 %v16431_v18, %v16191_v9  ;;  %v16437_v18 = vld [vmem:[#allocation60_spill] sm:$0xff] }
  0x87   :  { %12554 = vmatprep.subr.bf16.mxu1 %v12553_v52  ;;  %v1213_v28 = vand.u32 4294901760, %v1212_v38  ;;  %v375_v13 = vsub.f32 %v16432_v23, %v16192_v39  ;;  %v16203_v5 = vand.u32 4294901760, %v16434_v48  ;;  %v12363_v59 = vpack.c.bf16 %v358_v32, %v346_v19 }
  0x88   :  { %v1218_v43 = vsub.f32 %v16433_v16, %v16194_v10  ;;  %v1230_v52 = vsub.f32 %v13512_v61, %v16196_v57  ;;  %v16201_v34 = vand.u32 4294901760, %v16435_v4  ;;  %v364_v7 = vand.u32 4294901760, %v363_v20  ;;  %v16436_v10 = vld [vmem:[#allocation59_spill] sm:$0xff] }
  0x89   :  { %v12555_v38 = vpack.c.bf16 %v1213_v28, %v1201_v24  ;;  %v376_v9 = vand.u32 4294901760, %v375_v13  ;;  %v369_v39 = vsub.f32 %v16434_v48, %v16203_v5  ;;  %12364 = vmatpush1.bf16.msra.mxu0 %v12363_v59  ;;  %v16202_v16 = vand.u32 4294901760, %v16436_v10  ;;  %v16438_v24 = vld [vmem:[#allocation62_spill] sm:$0xff] }
  0x8a   :  { %v1219_v23 = vand.u32 4294901760, %v1218_v43  ;;  %v1231_v19 = vand.u32 4294901760, %v1230_v52  ;;  %v381_v32 = vsub.f32 %v16435_v4, %v16201_v34  ;;  %v16204_v28 = vand.u32 4294901760, %v16437_v18  ;;  %v16439_v43 = vld [vmem:[#allocation63_spill] sm:$0xff] }
  0x8b   :  { %12556 = vmatpush1.bf16.msra.mxu1 %v12555_v38  ;;  %v12365_v57 = vpack.c.bf16 %v376_v9, %v364_v7  ;;  %v370_v61 = vand.u32 4294901760, %v369_v39  ;;  %v16205_v20 = vand.u32 4294901760, %v16438_v24  ;;  %v1224_v59 = vsub.f32 %v16436_v10, %v16202_v16  ;;  %v16440_v39 = vld [vmem:[#allocation64_spill] sm:$0xff] }
  0x8c   :  { %v12557_v13 = vpack.c.bf16 %v1231_v19, %v1219_v23  ;;  %v382_v30 = vand.u32 4294901760, %v381_v32  ;;  %v16206_v52 = vand.u32 4294901760, %v16439_v43  ;;  %v1236_v34 = vsub.f32 %v16437_v18, %v16204_v28 }
  0x8d   :  { %12366 = vmatprep.subr.bf16.mxu0 %v12365_v57  ;;  %v387_v7 = vsub.f32 %v16438_v24, %v16205_v20  ;;  %v16208_v9 = vand.u32 4294901760, %v16440_v39  ;;  %v16218_v23 = vand.u32 4294901760, %v13540_v1  ;;  %v1225_v19 = vand.u32 4294901760, %v1224_v59 }
  0x8e   :  { %12558 = vmatprep.subr.bf16.mxu1 %v12557_v13  ;;  %v12367_v38 = vpack.c.bf16 %v382_v30, %v370_v61  ;;  %v399_v32 = vsub.f32 %v16439_v43, %v16206_v52  ;;  %v16210_v57 = vand.u32 4294901760, %v13544_v29  ;;  %v1237_v16 = vand.u32 4294901760, %v1236_v34 }
  0x8f   :  { %v388_v5 = vand.u32 4294901760, %v387_v7  ;;  %v1242_v28 = vsub.f32 %v16440_v39, %v16208_v9  ;;  %v1254_v20 = vsub.f32 %v13540_v1, %v16218_v23  ;;  %v16211_v30 = vand.u32 4294901760, %v13546_v46 }
  0x90   :  { %12368 = vmatpush1.bf16.msra.mxu0 %v12367_v38  ;;  %v400_v13 = vand.u32 4294901760, %v399_v32  ;;  %v393_v61 = vsub.f32 %v13544_v29, %v16210_v57  ;;  %v16215_v59 = vand.u32 4294901760, %v13550_v55  ;;  %v12559_v34 = vpack.c.bf16 %v1237_v16, %v1225_v19 }
  0x91   :  { %v1243_v7 = vand.u32 4294901760, %v1242_v28  ;;  %v1255_v52 = vand.u32 4294901760, %v1254_v20  ;;  %v16212_v43 = vand.u32 4294901760, %v13552_v3  ;;  %v405_v38 = vsub.f32 %v13546_v46, %v16211_v30 }
  0x92   :  { %v12369_v9 = vpack.c.bf16 %v400_v13, %v388_v5  ;;  %v394_v39 = vand.u32 4294901760, %v393_v61  ;;  %v1248_v32 = vsub.f32 %v13550_v55, %v16215_v59  ;;  %12560 = vmatpush1.bf16.msra.mxu1 %v12559_v34  ;;  %v16213_v28 = vand.u32 4294901760, %v13558_v33 }
  0x93   :  { %v12561_v57 = vpack.c.bf16 %v1255_v52, %v1243_v7  ;;  %v1260_v16 = vsub.f32 %v13552_v3, %v16212_v43  ;;  %v16214_v20 = vand.u32 4294901760, %v13560_v31  ;;  %v406_v5 = vand.u32 4294901760, %v405_v38 }
  0x94   :  { %12370 = vmatprep.subr.bf16.mxu0 %v12369_v9  ;;  %v1249_v19 = vand.u32 4294901760, %v1248_v32  ;;  %v16216_v13 = vand.u32 4294901760, %v13564_v11  ;;  %v16217_v61 = vand.u32 4294901760, %v13570_v56  ;;  %v411_v52 = vsub.f32 %v13558_v33, %v16213_v28 }
  0x95   :  { %12562 = vmatprep.subr.bf16.mxu1 %v12561_v57  ;;  %v1261_v30 = vand.u32 4294901760, %v1260_v16  ;;  %v423_v34 = vsub.f32 %v13560_v31, %v16214_v20  ;;  %v16222_v7 = vand.u32 4294901760, %v13574_v0  ;;  %v12371_v43 = vpack.c.bf16 %v406_v5, %v394_v39 }
  0x96   :  { %v1266_v9 = vsub.f32 %v13564_v11, %v16216_v13  ;;  %v1278_v57 = vsub.f32 %v13570_v56, %v16217_v61  ;;  %v16219_v38 = vand.u32 4294901760, %v13579_v25  ;;  %v412_v16 = vand.u32 4294901760, %v411_v52 }
  0x97   :  { %v12563_v32 = vpack.c.bf16 %v1261_v30, %v1249_v19  ;;  %v424_v28 = vand.u32 4294901760, %v423_v34  ;;  %v417_v20 = vsub.f32 %v13574_v0, %v16222_v7  ;;  %12372 = vmatpush1.bf16.msra.mxu0 %v12371_v43  ;;  %v16220_v13 = vand.u32 4294901760, %v13583_v27  ;;  %v16447_v7 = vld [vmem:[#allocation39_spill] sm:$0xff] }
  0x98   :  { %v1267_v59 = vand.u32 4294901760, %v1266_v9  ;;  %v1279_v39 = vand.u32 4294901760, %v1278_v57  ;;  %v429_v5 = vsub.f32 %v13579_v25, %v16219_v38  ;;  %v16221_v30 = vand.u32 4294901760, %v13585_v44  ;;  %v16441_v9 = vld [vmem:[#allocation16_spill] sm:$0xff] }
  0x99   :  { %12564 = vmatpush1.bf16.msra.mxu1 %v12563_v32  ;;  %v12373_v61 = vpack.c.bf16 %v424_v28, %v412_v16  ;;  %v418_v23 = vand.u32 4294901760, %v417_v20  ;;  %v1272_v34 = vsub.f32 %v13583_v27, %v16220_v13  ;;  %v12377_v57 = vpack.c.bf16 %v16441_v9, %v13363_v17  ;;  %v16442_v16 = vld [vmem:[#allocation17_spill] sm:$0xff] }
  0x9a   :  { %v12565_v19 = vpack.c.bf16 %v1279_v39, %v1267_v59  ;;  %v430_v52 = vand.u32 4294901760, %v429_v5  ;;  %v1284_v43 = vsub.f32 %v13585_v44, %v16221_v30  ;;  %v16443_v59 = vld [vmem:[#allocation19_spill] sm:$0xff]  ;;  %v16444_v5 = vld [vmem:[#allocation21_spill] sm:$0xff]  ;;  %v16448_v9 = vmov 0.0  }
  0x9b   :  { %12374 = vmatprep.subr.bf16.mxu0 %v12373_v61  ;;  %v1273_v28 = vand.u32 4294901760, %v1272_v34  ;;  %v12569_v39 = vpack.c.bf16 %v16443_v59, %v16442_v16  ;;  %v12379_v38 = vpack.c.bf16 %v16444_v5, %v13375_v26  ;;  %v12381_v61 = vpack.c.bf16 %v13392_v47, %v13388_v42  ;;  %v16445_v30 = vld [vmem:[#allocation79_spill] sm:$0xff] }
  0x9c   :  { %12566 = vmatprep.subr.bf16.mxu1 %v12565_v19  ;;  %v12375_v32 = vpack.c.bf16 %v430_v52, %v418_v23  ;;  %v1285_v20 = vand.u32 4294901760, %v1284_v43  ;;  %v12571_v23 = vpack.c.bf16 %v13386_v41, %v13384_v40  ;;  %v12573_v19 = vpack.c.bf16 %v13399_v51, %v13396_v49 }
  0x9d   :  { %v12383_v52 = vpack.c.bf16 %v13407_v62, %v13401_v53  ;;  %v12575_v34 = vpack.c.bf16 %v13413_v6, %v13409_v63  ;;  %v12385_v43 = vpack.c.bf16 %v13420_v12, %v13417_v8  ;;  %v16449_v17 = vand.u32 4294901760, %v16442_v16 }
  0x9e   :  { %12376 = vmatpush1.bf16.msra.mxu0 %v12375_v32  ;;  %v12567_v13 = vpack.c.bf16 %v1285_v20, %v1273_v28  ;;  %v12579_v32 = vpack.c.bf16 %v13441_v50, %v13439_v45  ;;  %v12389_v28 = vpack.c.bf16 %v13449_v58, %v13445_v54  ;;  %v12391_v20 = vpack.c.bf16 %v13463_v37, %v13459_v22 }
  0x9f   :  { %12378 = vmatprep.subr.bf16.mxu0 %v12377_v57  ;;  %v12387_v57 = vpack.c.bf16 %v13435_v36, %v13433_v35  ;;  %v16450_v44 = vand.u32 4294901760, %v16443_v59  ;;  %v16451_v25 = vand.u32 4294901760, %v13375_v26  ;;  %v16453_v56 = vand.u32 4294901760, %v13384_v40 }
  0xa0   :  { %12568 = vmatpush1.bf16.msra.mxu1 %v12567_v13  ;;  %v12577_v13 = vpack.c.bf16 %v13426_v15, %v13424_v14  ;;  %v16454_v11 = vand.u32 4294901760, %v13386_v41  ;;  %v16455_v16 = vand.u32 4294901760, %v13388_v42  ;;  %v16457_v26 = vand.u32 4294901760, %v13396_v49 }
  0xa1   :  { %466 = vmatmul.mubr.f32.vlgmr.msra.gmra.mrb[0].mxu0 %v16445_v30  ;;  %12570 = vmatprep.subr.bf16.mxu1 %v12569_v39  ;;  %v16446_v39 = vld [vmem:[#allocation38_spill] sm:$0xff]  ;;  %v13895_v27 = vpack.c.bf16 %v16450_v44, %v16449_v17  ;;  %v16456_v17 = vand.u32 4294901760, %v13392_v47  ;;  %v16458_v59 = vand.u32 4294901760, %v13399_v51  ;;  %v16459_v40 = vand.u32 4294901760, %v13401_v53 }
  0xa2   :  { %12380 = vmatpush1.bf16.msra.mxu0 %v12379_v38  ;;  %v12581_v38 = vpack.c.bf16 %v13456_v2, %v13453_v60  ;;  %600 = vmatprep.mubr.f32.mxu0 %v16448_v9  ;;  %v13908_v31 = vpack.c.bf16 %v16454_v11, %v16453_v56  ;;  %v16460_v41 = vand.u32 4294901760, %v13407_v62  ;;  %v16461_v42 = vand.u32 4294901760, %v13409_v63 }
  0xa3   :  { %12382 = vmatprep.subr.bf16.mxu0 %v12381_v61  ;;  %1321 = vmatmul.mubr.f32.vlgmr.msra.gmra.mrb[0].mxu1 %v16445_v30  ;;  %v12393_v61 = vpack.c.bf16 %v16447_v7, %v16446_v39  ;;  %v16452_v30 = vand.u32 4294901760, %v16444_v5  ;;  %v13914_v44 = vpack.c.bf16 %v16456_v17, %v16455_v16  ;;  %v16462_v47 = vand.u32 4294901760, %v13413_v6 }
  0xa4   :  { %12572 = vmatpush1.bf16.msra.mxu1 %v12571_v23  ;;  %1455 = vmatprep.mubr.f32.mxu1 %v16448_v9  ;;  %v13926_v11 = vpack.c.bf16 %v16460_v41, %v16459_v40  ;;  %v16464_v49 = vand.u32 4294901760, %v13420_v12  ;;  %v16465_v5 = vand.u32 4294901760, %v13424_v14  ;;  %v16466_v53 = vand.u32 4294901760, %v13426_v15  ;;  %v16483_v41 = vld [vmem:[#allocation40_spill] sm:$0xff] }
  0xa5   :  { %v13902_v0 = vpack.c.bf16 %v16452_v30, %v16451_v25  ;;  %12574 = vmatprep.subr.bf16.mxu1 %v12573_v19  ;;  %v13920_v25 = vpack.c.bf16 %v16458_v59, %v16457_v26  ;;  %v13932_v56 = vpack.c.bf16 %v16462_v47, %v16461_v42  ;;  %v16463_v30 = vand.u32 4294901760, %v13417_v8  ;;  %v16479_v59 = vld [vmem:[#allocation36_spill] sm:$0xff] }
  0xa6   :  { %12384 = vmatpush1.bf16.msra.mxu0 %v12383_v52  ;;  %v13944_v62 = vpack.c.bf16 %v16466_v53, %v16465_v5  ;;  %v16467_v23 = vand.u32 4294901760, %v13433_v35  ;;  %v16468_v63 = vand.u32 4294901760, %v13435_v36  ;;  %v16469_v19 = vand.u32 4294901760, %v13439_v45  ;;  %v16486_v47 = vld [vmem:[#allocation44_spill] sm:$0xff] }
  0xa7   :  { %12386 = vmatprep.subr.bf16.mxu0 %v12385_v43  ;;  %v13938_v51 = vpack.c.bf16 %v16464_v49, %v16463_v30  ;;  %v16470_v8 = vand.u32 4294901760, %v13441_v50  ;;  %v16471_v12 = vand.u32 4294901760, %v13445_v54  ;;  %v16472_v14 = vand.u32 4294901760, %v13449_v58  ;;  %v16477_v50 = vld [vmem:[#allocation35_spill] sm:$0xff]  ;;  %v16488_v49 = vld [vmem:[#allocation45_spill] sm:$0xff] }
  0xa8   :  { %v13950_v6 = vpack.c.bf16 %v16468_v63, %v16467_v23  ;;  %v16473_v15 = vand.u32 4294901760, %v13453_v60  ;;  %v16474_v35 = vand.u32 4294901760, %v13456_v2  ;;  %v16475_v36 = vand.u32 4294901760, %v13459_v22  ;;  %12576 = vmatpush1.bf16.msra.mxu1 %v12575_v34  ;;  %v16491_v23 = vld [vmem:[#allocation47_spill] sm:$0xff]  ;;  %v16493_v63 = vld [vmem:[#allocation48_spill] sm:$0xff] }
  0xa9   :  { %v13956_v52 = vpack.c.bf16 %v16470_v8, %v16469_v19  ;;  %v13962_v43 = vpack.c.bf16 %v16472_v14, %v16471_v12  ;;  %v16476_v45 = vand.u32 4294901760, %v13463_v37  ;;  %v16478_v26 = vand.u32 4294901760, %v16477_v50  ;;  %12578 = vmatprep.subr.bf16.mxu1 %v12577_v13  ;;  %v16498_v12 = vld [vmem:[#allocation51_spill] sm:$0xff] }
  0xaa   :  { %v13968_v16 = vpack.c.bf16 %v16474_v35, %v16473_v15  ;;  %v16480_v54 = vand.u32 4294901760, %v16479_v59  ;;  %v16481_v58 = vand.u32 4294901760, %v16446_v39  ;;  %v16482_v60 = vand.u32 4294901760, %v16447_v7  ;;  %12388 = vmatpush1.bf16.msra.mxu0 %v12387_v57  ;;  %v16496_v7 = vld [vmem:[#allocation50_spill] sm:$0xff]  ;;  %v16501_v35 = vld [vmem:[#allocation52_spill] sm:$0xff] }
  0xab   :  { %v13974_v17 = vpack.c.bf16 %v16476_v45, %v16475_v36  ;;  %v16484_v42 = vand.u32 4294901760, %v16483_v41  ;;  %v16485_v22 = vand.u32 4294901760, %v16426_v21  ;;  %v16487_v30 = vand.u32 4294901760, %v16486_v47  ;;  %v16503_v45 = vld [vmem:[#allocation54_spill] sm:$0xff]  ;;  %12390 = vmatprep.subr.bf16.mxu0 %v12389_v28 }
  0xac   :  { %v13980_v40 = vpack.c.bf16 %v16480_v54, %v16478_v26  ;;  %v13986_v2 = vpack.c.bf16 %v16482_v60, %v16481_v58  ;;  %v16489_v5 = vand.u32 4294901760, %v16488_v49  ;;  %v16492_v34 = vand.u32 4294901760, %v16491_v23  ;;  %12580 = vmatpush1.bf16.msra.mxu1 %v12579_v32 }
  0xad   :  { %v13992_v37 = vpack.c.bf16 %v16485_v22, %v16484_v42  ;;  %v16494_v39 = vand.u32 4294901760, %v16493_v63  ;;  %v16497_v8 = vand.u32 4294901760, %v16496_v7  ;;  %v16499_v14 = vand.u32 4294901760, %v16498_v12  ;;  %12582 = vmatprep.subr.bf16.mxu1 %v12581_v38 }
  0xae   :  { %v13998_v53 = vpack.c.bf16 %v16489_v5, %v16487_v30  ;;  %v16502_v36 = vand.u32 4294901760, %v16501_v35  ;;  %v16504_v26 = vand.u32 4294901760, %v16503_v45  ;;  %v16506_v58 = vand.u32 4294901760, %v16434_v48  ;;  %v16513_v5 = vld [vmem:[#allocation63_spill] sm:$0xff]  ;;  %12392 = vmatpush1.bf16.msra.mxu0 %v12391_v20 }
  0xaf   :  { %v14004_v19 = vpack.c.bf16 %v16494_v39, %v16492_v34  ;;  %v14010_v15 = vpack.c.bf16 %v16499_v14, %v16497_v8  ;;  %v16507_v60 = vand.u32 4294901760, %v16435_v4  ;;  %v16509_v13 = vand.u32 4294901760, %v16436_v10  ;;  %v16516_v8 = vld [vmem:[#allocation64_spill] sm:$0xff]  ;;  %12394 = vmatprep.subr.bf16.mxu0 %v12393_v61 }
  0xb0   :  { %16490 = vst [vmem:[#allocation42_spill] sm:$0xff] %v13998_v53  ;;  %v14016_v54 = vpack.c.bf16 %v16504_v26, %v16502_v36  ;;  %v16510_v57 = vand.u32 4294901760, %v16437_v18  ;;  %v16512_v30 = vand.u32 4294901760, %v16438_v24  ;;  %v16514_v34 = vand.u32 4294901760, %v16513_v5 }
  0xb1   :  { %16495 = vst [vmem:[#allocation56_spill] sm:$0xff] %v14004_v19  ;;  %16500 = vst [vmem:[#allocation57_spill] sm:$0xff] %v14010_v15  ;;  %v14022_v42 = vpack.c.bf16 %v16507_v60, %v16506_v58  ;;  %v16517_v14 = vand.u32 4294901760, %v16516_v8  ;;  %v16518_v36 = vand.u32 4294901760, %v13540_v1  ;;  %v16520_v28 = vand.u32 4294901760, %v13544_v29 }
  0xb2   :  { %16505 = vst [vmem:[#allocation59_spill] sm:$0xff] %v14016_v54  ;;  %v14028_v22 = vpack.c.bf16 %v16510_v57, %v16509_v13  ;;  %v14034_v39 = vpack.c.bf16 %v16514_v34, %v16512_v30  ;;  %v16521_v58 = vand.u32 4294901760, %v13546_v46  ;;  %v16523_v13 = vand.u32 4294901760, %v13550_v55  ;;  %v16527_v34 = vld [vmem:[#allocation69_spill] sm:$0xff] }
  0xb3   :  { %16508 = vst [vmem:[#allocation60_spill] sm:$0xff] %v14022_v42  ;;  %v14040_v26 = vpack.c.bf16 %v16518_v36, %v16517_v14  ;;  %v16524_v57 = vand.u32 4294901760, %v13552_v3  ;;  %v16526_v30 = vand.u32 4294901760, %v13558_v33  ;;  %v16530_v14 = vld [vmem:[#allocation70_spill] sm:$0xff]  ;;  %v12397_v32 = vpack.c.bf16 %v16498_v12, %v16496_v7  ;;  %v16552_v7 = vld [vmem:[#allocation28_spill] sm:$0xff]  ;;  %v16553_v12 = vld [vmem:[#allocation29_spill] sm:$0xff] }
  0xb4   :  { %16511 = vst [vmem:[#allocation62_spill] sm:$0xff] %v14028_v22  ;;  %16515 = vst [vmem:[#allocation17_spill] sm:$0xff] %v14034_v39  ;;  %v14046_v60 = vpack.c.bf16 %v16521_v58, %v16520_v28  ;;  %v16528_v39 = vand.u32 4294901760, %v16527_v34  ;;  %v16531_v36 = vand.u32 4294901760, %v16530_v14  ;;  %v16534_v28 = vld [vmem:[#allocation74_spill] sm:$0xff]  ;;  %v12589_v38 = vpack.c.bf16 %v16503_v45, %v16501_v35  ;;  %v16556_v45 = vld [vmem:[#allocation32_spill] sm:$0xff] }
  0xb5   :  { %16519 = vst [vmem:[#allocation19_spill] sm:$0xff] %v14040_v26  ;;  %v14052_v22 = vpack.c.bf16 %v16524_v57, %v16523_v13  ;;  %v16532_v26 = vld [vmem:[#allocation72_spill] sm:$0xff]  ;;  %v16535_v58 = vand.u32 4294901760, %v16534_v28  ;;  %v12583_v13 = vpack.c.bf16 %v16479_v59, %v16477_v50  ;;  %v16538_v57 = vld [vmem:[#allocation77_spill] sm:$0xff]  ;;  %v12587_v50 = vpack.c.bf16 %v16493_v63, %v16491_v23  ;;  %v16550_v23 = vld [vmem:[#allocation27_spill] sm:$0xff] }
  0xb6   :  { %16522 = vst [vmem:[#allocation21_spill] sm:$0xff] %v14046_v60  ;;  %v14058_v42 = vpack.c.bf16 %v16528_v39, %v16526_v30  ;;  %v16533_v54 = vand.u32 4294901760, %v16532_v26  ;;  %v16536_v60 = vld [vmem:[#allocation75_spill] sm:$0xff]  ;;  %v16540_v39 = vld [vmem:[#allocation78_spill] sm:$0xff]  ;;  %v12399_v20 = vpack.c.bf16 %v16435_v4, %v16434_v48  ;;  %v12591_v61 = vpack.c.bf16 %v16437_v18, %v16436_v10 }
  0xb7   :  { %16525 = vst [vmem:[#allocation38_spill] sm:$0xff] %v14052_v22  ;;  %v16537_v15 = vand.u32 4294901760, %v16536_v60  ;;  %v16539_v22 = vand.u32 4294901760, %v16538_v57  ;;  %v16541_v30 = vand.u32 4294901760, %v16540_v39  ;;  %12584 = vmatpush1.bf16.msra.mxu1 %v12583_v13  ;;  %v12593_v59 = vpack.c.bf16 %v13540_v1, %v16516_v8  ;;  %v16542_v1 = vld [vmem:[#allocation14_spill] sm:$0xff]  ;;  %v16566_v13 = vld [vmem:[#allocation61_spill] sm:$0xff] }
  0xb8   :  { %16529 = vst [vmem:[#allocation39_spill] sm:$0xff] %v14058_v42  ;;  %v14064_v19 = vpack.c.bf16 %v16533_v54, %v16531_v36  ;;  %v12585_v54 = vpack.c.bf16 %v16426_v21, %v16483_v41  ;;  %v12395_v36 = vpack.c.bf16 %v16488_v49, %v16486_v47  ;;  %v12401_v21 = vpack.c.bf16 %v16513_v5, %v16438_v24  ;;  %v16547_v24 = vld [vmem:[#allocation22_spill] sm:$0xff]  ;;  %v16548_v47 = vld [vmem:[#allocation24_spill] sm:$0xff]  ;;  %v16549_v49 = vld [vmem:[#allocation25_spill] sm:$0xff] }
  0xb9   :  { %v14070_v53 = vpack.c.bf16 %v16537_v15, %v16535_v58  ;;  %v14078_v42 = vpack.c.bf16 %v16541_v30, %v16539_v22  ;;  %v12403_v41 = vpack.c.bf16 %v13546_v46, %v13544_v29  ;;  %v12405_v48 = vpack.c.bf16 %v16527_v34, %v13558_v33  ;;  %v16543_v29 = vld [vmem:[#allocation80_spill] sm:$0xff]  ;;  %v16546_v33 = vld [vmem:[#allocation23_spill] sm:$0xff]  ;;  %v16551_v63 = vld [vmem:[#allocation26_spill] sm:$0xff] }
  0xba   :  { %12586 = vmatprep.subr.bf16.mxu1 %v12585_v54  ;;  %12396 = vmatpush1.bf16.msra.mxu0 %v12395_v36  ;;  %v12595_v4 = vpack.c.bf16 %v13552_v3, %v13550_v55  ;;  %v12597_v10 = vpack.c.bf16 %v16532_v26, %v16530_v14  ;;  %v12407_v18 = vpack.c.bf16 %v16536_v60, %v16534_v28  ;;  %v16544_v55 = vld [vmem:[#allocation18_spill] sm:$0xff]  ;;  %v16545_v3 = vld [vmem:[#allocation20_spill] sm:$0xff]  ;;  %v16554_v15 = vld [vmem:[#allocation31_spill] sm:$0xff] }
  0xbb   :  { %12398 = vmatprep.subr.bf16.mxu0 %v12397_v32  ;;  %12588 = vmatpush1.bf16.msra.mxu1 %v12587_v50  ;;  %v12599_v46 = vpack.c.bf16 %v16540_v39, %v16538_v57  ;;  %v16555_v35 = vld [vmem:[#allocation30_spill] sm:$0xff]  ;;  %v16557_v22 = vld [vmem:[#allocation33_spill] sm:$0xff]  ;;  %v16561_v60 = vld [vmem:[#allocation43_spill] sm:$0xff] }
  0xbc   :  { %12590 = vmatprep.subr.bf16.mxu1 %v12589_v38  ;;  %v16558_v5 = vld [vmem:[#allocation37_spill] sm:$0xff]  ;;  %v16559_v8 = vld [vmem:[#allocation34_spill] sm:$0xff]  ;;  %v16565_v58 = vld [vmem:[#allocation55_spill] sm:$0xff] }
  0xbd   :  { %v16560_v26 = vld [vmem:[#allocation41_spill] sm:$0xff]  ;;  %v16563_v14 = vld [vmem:[#allocation46_spill] sm:$0xff]  ;;  %v16570_v54 = vld [vmem:[#allocation68_spill] sm:$0xff] }
  0xbe   :  { %12400 = vmatpush1.bf16.msra.mxu0 %v12399_v20  ;;  %v16562_v34 = vld [vmem:[#allocation49_spill] sm:$0xff]  ;;  %v16567_v57 = vld [vmem:[#allocation58_spill] sm:$0xff]  ;;  %v16571_v36 = vld [vmem:[#allocation15_spill] sm:$0xff] }
  0xbf   :  { %12402 = vmatprep.subr.bf16.mxu0 %v12401_v21  ;;  %12592 = vmatpush1.bf16.msra.mxu1 %v12591_v61  ;;  %v16564_v28 = vld [vmem:[#allocation53_spill] sm:$0xff]  ;;  %v16569_v30 = vld [vmem:[#allocation66_spill] sm:$0xff]  ;;  %v16572_v32 = vand.u32 4294901760, %v16571_v36  ;;  %v16573_v50 = vld [vmem:[#allocation16_spill] sm:$0xff] }
  0xc0   :  { %12594 = vmatprep.subr.bf16.mxu1 %v12593_v59  ;;  %v16568_v39 = vld [vmem:[#allocation65_spill] sm:$0xff]  ;;  %v16574_v38 = vand.u32 4294901760, %v16573_v50  ;;  %v16575_v21 = vld [vmem:[#allocation67_spill] sm:$0xff] }
  0xc1   :  { %v16576_v61 = vld [vmem:[#allocation71_spill] sm:$0xff]  ;;  %v16577_v59 = vld [vmem:[#allocation73_spill] sm:$0xff] }
  0xc2   :  { %12404 = vmatpush1.bf16.msra.mxu0 %v12403_v41  ;;  %v12441_v20 = vpack.c.bf16 %v16574_v38, %v16572_v32  ;;  %v16578_v41 = vld [vmem:[#allocation76_spill] sm:$0xff] }
  0xc3   :  { %12406 = vmatprep.subr.bf16.mxu0 %v12405_v48  ;;  %12596 = vmatpush1.bf16.msra.mxu1 %v12595_v4  ;;  %v16579_v48 = vld [vmem:[#allocation81_spill] sm:$0xff] }
  0xc4   :  { %12598 = vmatprep.subr.bf16.mxu1 %v12597_v10 }
  0xc6   :  { %12408 = vmatpush1.bf16.msra.mxu0 %v12407_v18 }
  0xc7   :  { %12410 = vmatprep.subr.bf16.mxu0 %v16542_v1  ;;  %12600 = vmatpush1.bf16.msra.mxu1 %v12599_v46 }
  0xc8   :  { %12602 = vmatprep.subr.bf16.mxu1 %v16544_v55 }
  0xc9   :  { %603 = vmatmul.mubr.f32.vlgmr.msra.gmra.mrb[0].mxu0 %v16543_v29 }
  0xca   :  { %12412 = vmatpush1.bf16.msra.mxu0 %v16545_v3  ;;  %705 = vmatprep.mubr.f32.mxu0 %v16448_v9 }
  0xcb   :  { %12414 = vmatprep.subr.bf16.mxu0 %v16546_v33  ;;  %1458 = vmatmul.mubr.f32.vlgmr.msra.gmra.mrb[0].mxu1 %v16543_v29 }
  0xcc   :  { %12604 = vmatpush1.bf16.msra.mxu1 %v16547_v24  ;;  %1560 = vmatprep.mubr.f32.mxu1 %v16448_v9 }
  0xcd   :  { %12606 = vmatprep.subr.bf16.mxu1 %v16548_v47 }
  0xce   :  { %12416 = vmatpush1.bf16.msra.mxu0 %v16549_v49 }
  0xcf   :  { %12418 = vmatprep.subr.bf16.mxu0 %v16550_v23 }
  0xd0   :  { %12608 = vmatpush1.bf16.msra.mxu1 %v16551_v63 }
  0xd1   :  { %12610 = vmatprep.subr.bf16.mxu1 %v16552_v7 }
  0xd2   :  { %12420 = vmatpush1.bf16.msra.mxu0 %v16553_v12 }
  0xd3   :  { %12422 = vmatprep.subr.bf16.mxu0 %v16554_v15 }
  0xd4   :  { %12612 = vmatpush1.bf16.msra.mxu1 %v16555_v35 }
  0xd5   :  { %12614 = vmatprep.subr.bf16.mxu1 %v16556_v45 }
  0xd6   :  { %12424 = vmatpush1.bf16.msra.mxu0 %v16557_v22 }
  0xd7   :  { %12426 = vmatprep.subr.bf16.mxu0 %v16558_v5 }
  0xd8   :  { %12616 = vmatpush1.bf16.msra.mxu1 %v16559_v8 }
  0xd9   :  { %12618 = vmatprep.subr.bf16.mxu1 %v16560_v26 }
  0xda   :  { %12428 = vmatpush1.bf16.msra.mxu0 %v16561_v60 }
  0xdb   :  { %12430 = vmatprep.subr.bf16.mxu0 %v16562_v34 }
  0xdc   :  { %12620 = vmatpush1.bf16.msra.mxu1 %v16563_v14 }
  0xdd   :  { %12622 = vmatprep.subr.bf16.mxu1 %v16564_v28 }
  0xde   :  { %12432 = vmatpush1.bf16.msra.mxu0 %v16565_v58 }
  0xdf   :  { %12434 = vmatprep.subr.bf16.mxu0 %v16566_v13 }
  0xe0   :  { %12624 = vmatpush1.bf16.msra.mxu1 %v16567_v57 }
  0xe1   :  { %12626 = vmatprep.subr.bf16.mxu1 %v16568_v39 }
  0xe2   :  { %12436 = vmatpush1.bf16.msra.mxu0 %v16569_v30 }
  0xe3   :  { %12438 = vmatprep.subr.bf16.mxu0 %v16570_v54 }
  0xe4   :  { %12628 = vmatpush1.bf16.msra.mxu1 %v16575_v21 }
  0xe5   :  { %12630 = vmatprep.subr.bf16.mxu1 %v16576_v61 }
  0xe6   :  { %12440 = vmatpush1.bf16.msra.mxu0 %v16577_v59 }
  0xe7   :  { %12442 = vmatprep.subr.bf16.mxu0 %v12441_v20  ;;  %v2184_v20 = vld [vmem:[#allocation9] sm:$0xf] }
  0xe8   :  { %12632 = vmatpush1.bf16.msra.mxu1 %v16578_v41 }
  0xe9   :  { %709 = vmatmul.mubr.f32.vlgmr.msra.gmra.mrb[0].mxu0 %v16579_v48  ;;  %12634 = vmatprep.subr.bf16.mxu1 %v13895_v27  ;;  %v16580_v27 = vld [vmem:[#allocation42_spill] sm:$0xff] }
  0xea   :  { %12444 = vmatpush1.bf16.msra.mxu0 %v13902_v0  ;;  %875 = vmatprep.mubr.f32.mxu0 %v16448_v9  ;;  %v16582_v0 = vld [vmem:[#allocation56_spill] sm:$0xff] }
  0xeb   :  { %12446 = vmatprep.subr.bf16.mxu0 %v13914_v44  ;;  %1564 = vmatmul.mubr.f32.vlgmr.msra.gmra.mrb[0].mxu1 %v16579_v48  ;;  %v16583_v44 = vld [vmem:[#allocation59_spill] sm:$0xff] }
  0xec   :  { %12636 = vmatpush1.bf16.msra.mxu1 %v13908_v31  ;;  %1730 = vmatprep.mubr.f32.mxu1 %v16448_v9  ;;  %v16581_v31 = vld [vmem:[#allocation57_spill] sm:$0xff] }
  0xed   :  { %12638 = vmatprep.subr.bf16.mxu1 %v13920_v25  ;;  %v16584_v25 = vld [vmem:[#allocation60_spill] sm:$0xff] }
  0xee   :  { %12448 = vmatpush1.bf16.msra.mxu0 %v13926_v11  ;;  %v16585_v11 = vld [vmem:[#allocation17_spill] sm:$0xff] }
  0xef   :  { %12450 = vmatprep.subr.bf16.mxu0 %v13938_v51  ;;  %v16587_v51 = vld [vmem:[#allocation19_spill] sm:$0xff] }
  0xf0   :  { %12640 = vmatpush1.bf16.msra.mxu1 %v13932_v56  ;;  %v16586_v56 = vld [vmem:[#allocation62_spill] sm:$0xff] }
  0xf1   :  { %12642 = vmatprep.subr.bf16.mxu1 %v13944_v62  ;;  %v16588_v62 = vld [vmem:[#allocation21_spill] sm:$0xff] }
  0xf2   :  { %12452 = vmatpush1.bf16.msra.mxu0 %v13950_v6  ;;  %v16589_v6 = vld [vmem:[#allocation39_spill] sm:$0xff] }
  0xf3   :  { %12454 = vmatprep.subr.bf16.mxu0 %v13962_v43  ;;  %v16591_v43 = vld [vmem:[#allocation79_spill] sm:$0xff] }
  0xf4   :  { %12644 = vmatpush1.bf16.msra.mxu1 %v13956_v52  ;;  %v16590_v52 = vld [vmem:[#allocation38_spill] sm:$0xff] }
  0xf5   :  { %12646 = vmatprep.subr.bf16.mxu1 %v13968_v16  ;;  %v1843_v16 = vld [vmem:[#allocation4 + $0x8] sm:$0xff] }
  0xf6   :  { %12456 = vmatpush1.bf16.msra.mxu0 %v13974_v17  ;;  %v1842_v17 = vld [vmem:[#allocation4] sm:$0xff]  ;;  %1852 = vst [vmem:[#allocation2 + $0x10] sm:$0xf] %v1843_v16 }
  0xf7   :  { %12458 = vmatprep.subr.bf16.mxu0 %v13986_v2  ;;  %1850 = vst [vmem:[#allocation2] sm:$0xf] %v1842_v17  ;;  %v1846_v2 = vcombine.high %v1842_v17, %v1842_v17 }
  0xf8   :  { %12648 = vmatpush1.bf16.msra.mxu1 %v13980_v40  ;;  %v1847_v40 = vcombine.high %v1843_v16, %v1843_v16 }
  0xf9   :  { %12650 = vmatprep.subr.bf16.mxu1 %v13992_v37  ;;  %1851 = vst [vmem:[#allocation2 + $0x8] sm:$0xf] %v1846_v2 }
  0xfa   :  { %12460 = vmatpush1.bf16.msra.mxu0 %v16580_v27  ;;  %1853 = vst [vmem:[#allocation2 + $0x18] sm:$0xf] %v1847_v40 }
  0xfb   :  { %12462 = vmatprep.subr.bf16.mxu0 %v16581_v31 }
  0xfc   :  { %12652 = vmatpush1.bf16.msra.mxu1 %v16582_v0 }
  0xfd   :  { %12654 = vmatprep.subr.bf16.mxu1 %v16583_v44 }
  0xfe   :  { %12464 = vmatpush1.bf16.msra.mxu0 %v16584_v25 }
  0xff   :  { %12466 = vmatprep.subr.bf16.mxu0 %v16585_v11 }
 0x100   :  { %12656 = vmatpush1.bf16.msra.mxu1 %v16586_v56  ;;  %v2229_v56 = vsel %vm2227_vm2, %v2184_v20, 0 }
 0x101   :  { %12658 = vmatprep.subr.bf16.mxu1 %v16587_v51 }
 0x102   :  { %12468 = vmatpush1.bf16.msra.mxu0 %v16588_v62 }
 0x103   :  { %12470 = vmatprep.subr.bf16.mxu0 %v16589_v6 }
 0x104   :  { %12660 = vmatpush1.bf16.msra.mxu1 %v16590_v52 }
 0x105   :  { %12662 = vmatprep.subr.bf16.mxu1 %v14064_v19 }
 0x106   :  { %12472 = vmatpush1.bf16.msra.mxu0 %v14070_v53 }
 0x107   :  { %12474 = vmatprep.subr.bf16.mxu0 %v16542_v1 }
 0x108   :  { %12664 = vmatpush1.bf16.msra.mxu1 %v14078_v42 }
 0x109   :  { %877 = vmatmul.mubr.f32.vlgmr.msra.gmra.mrb[0].mxu0 %v16591_v43  ;;  %12666 = vmatprep.subr.bf16.mxu1 %v16544_v55 }
 0x10a   :  { %12476 = vmatpush1.bf16.msra.mxu0 %v16545_v3  ;;  %979 = vmatprep.mubr.f32.mxu0 %v16448_v9 }
 0x10b   :  { %12478 = vmatprep.subr.bf16.mxu0 %v16546_v33  ;;  %1732 = vmatmul.mubr.f32.vlgmr.msra.gmra.mrb[0].mxu1 %v16591_v43  ;;  %v1890_v33 = vlaneseq }
 0x10c   :  { %12668 = vmatpush1.bf16.msra.mxu1 %v16547_v24  ;;  %1834 = vmatprep.mubr.f32.mxu1 %v16448_v9 }
 0x10d   :  { %12670 = vmatprep.subr.bf16.mxu1 %v16548_v47 }
 0x10e   :  { %12480 = vmatpush1.bf16.msra.mxu0 %v16549_v49 }
 0x10f   :  { %12482 = vmatprep.subr.bf16.mxu0 %v16550_v23 }
 0x110   :  { %12672 = vmatpush1.bf16.msra.mxu1 %v16551_v63  ;;  %v14301_v63 = vshrl.u32 %v1890_v33, 7 }
 0x111   :  { %12674 = vmatprep.subr.bf16.mxu1 %v16552_v7 }
 0x112   :  { %12484 = vmatpush1.bf16.msra.mxu0 %v16553_v12  ;;  %v1973_v36 = vsub.s32 2, %v14301_v63  ;;  %v2010_v44 = vsub.s32 3, %v14301_v63 }
 0x113   :  { %12486 = vmatprep.subr.bf16.mxu0 %v16554_v15 }
 0x114   :  { %12676 = vmatpush1.bf16.msra.mxu1 %v16555_v35 }
 0x115   :  { %12678 = vmatprep.subr.bf16.mxu1 %v16556_v45 }
 0x116   :  { %12488 = vmatpush1.bf16.msra.mxu0 %v16557_v22  ;;  %v14325_v22 = vand.u32 127, %v1890_v33 }
 0x117   :  { %12490 = vmatprep.subr.bf16.mxu0 %v16558_v5  ;;  %v14328_v5 = vsub.s32 0, %v14301_v63 }
 0x118   :  { %12680 = vmatpush1.bf16.msra.mxu1 %v16559_v8  ;;  %16596 = vst [vmem:[#allocation45_spill] sm:$0xff] %v14325_v22  ;;  %vm1892_vm0 = vcmp.lt.s32.totalorder %v14325_v22, 17  ;;  %vm1929_vm1 = vcmp.lt.s32.totalorder %v14325_v22, 16  ;;  %vm1966_vm3 = vcmp.lt.s32.totalorder %v14325_v22, 15  ;;  %vm2003_vm4 = vcmp.lt.s32.totalorder %v14325_v22, 1 }
 0x119   :  { %12682 = vmatprep.subr.bf16.mxu1 %v16560_v26  ;;  %vm2044_vm5 = vcmp.lt.s32.totalorder %v14325_v22, 127  ;;  %vm2081_vm6 = vcmp.lt.s32.totalorder %v14325_v22, 113  ;;  %vm2118_vm7 = vcmp.lt.s32.totalorder %v14325_v22, 112  ;;  %vm2155_vm8 = vcmp.lt.s32.totalorder %v14325_v22, 111 }
 0x11a   :  { %12492 = vmatpush1.bf16.msra.mxu0 %v16561_v60  ;;  %v14336_v60 = vld [vmem:[%s16037_s3] sm:$0xff] }
 0x11b   :  { %12494 = vmatprep.subr.bf16.mxu0 %v16562_v34  ;;  %v14413_v52 = vrot.slane %v14336_v60, %v1973_v36  ;;  %v14441_v33 = vrot.slane %v14336_v60, %v2010_v44 }
 0x11c   :  { %12684 = vmatpush1.bf16.msra.mxu1 %v16563_v14  ;;  %v14342_v14 = vld [vmem:[%s16037_s3 + $0x18] sm:$0xff] }
 0x11d   :  { %12686 = vmatprep.subr.bf16.mxu1 %v16564_v28  ;;  %v14370_v50 = vrot.slane %v14342_v14, %v14328_v5  ;;  %16608 = vst [vmem:[#allocation74_spill] sm:$0xff] %v14413_v52  ;;  %v14421_v2 = vrot.slane %v14342_v14, %v1973_v36  ;;  %16613 = vst [vmem:[#allocation80_spill] sm:$0xff] %v14441_v33  ;;  %v14446_v20 = vrot.slane %v14342_v14, %v2010_v44 }
 0x11e   :  { %12496 = vmatpush1.bf16.msra.mxu0 %v16565_v58  ;;  %v1936_v58 = vsub.s32 1, %v14301_v63 }
 0x11f   :  { %12498 = vmatprep.subr.bf16.mxu0 %v16566_v13  ;;  %16598 = vst [vmem:[#allocation48_spill] sm:$0xff] %v14370_v50  ;;  %16609 = vst [vmem:[#allocation75_spill] sm:$0xff] %v14421_v2 }
 0x120   :  { %12688 = vmatpush1.bf16.msra.mxu1 %v16567_v57  ;;  %v14395_v31 = vrot.slane %v14336_v60, %v1936_v58  ;;  %v14398_v0 = vrot.slane %v14342_v14, %v1936_v58  ;;  %16614 = vst [vmem:[#allocation18_spill] sm:$0xff] %v14446_v20 }
 0x121   :  { %12690 = vmatprep.subr.bf16.mxu1 %v16568_v39  ;;  %v14350_v39 = vld [vmem:[%s16037_s3 + $0x8] sm:$0xff] }
 0x122   :  { %12500 = vmatpush1.bf16.msra.mxu0 %v16569_v30  ;;  %v14355_v30 = vld [vmem:[%s16037_s3 + $0x10] sm:$0xff]  ;;  %16604 = vst [vmem:[#allocation64_spill] sm:$0xff] %v14395_v31  ;;  %16605 = vst [vmem:[#allocation69_spill] sm:$0xff] %v14398_v0  ;;  %v14403_v25 = vrot.slane %v14350_v39, %v1973_v36 }
 0x123   :  { %12502 = vmatprep.subr.bf16.mxu0 %v16570_v54  ;;  %v14360_v54 = vrot.slane %v14336_v60, %v14328_v5  ;;  %v14406_v11 = vrot.slane %v14355_v30, %v1973_v36 }
 0x124   :  { %12692 = vmatpush1.bf16.msra.mxu1 %v16575_v21  ;;  %16606 = vst [vmem:[#allocation70_spill] sm:$0xff] %v14403_v25 }
 0x125   :  { %12694 = vmatprep.subr.bf16.mxu1 %v16576_v61  ;;  %16597 = vst [vmem:[#allocation47_spill] sm:$0xff] %v14360_v54  ;;  %16607 = vst [vmem:[#allocation72_spill] sm:$0xff] %v14406_v11 }
 0x126   :  { %12504 = vmatpush1.bf16.msra.mxu0 %v16577_v59  ;;  %v14379_v59 = vrot.slane %v14350_v39, %v1936_v58 }
 0x128   :  { %12696 = vmatpush1.bf16.msra.mxu1 %v16578_v41  ;;  %16600 = vst [vmem:[#allocation51_spill] sm:$0xff] %v14379_v59  ;;  %v14382_v41 = vrot.slane %v14355_v30, %v1936_v58  ;;  %v2088_v58 = vsub.s32 6, %v14301_v63 }
 0x129   :  { %981 = vmatmul.mubr.f32.vlgmr.msra.gmra.mrb[0].mxu0 %v16591_v43 }
 0x12a   :  { %2313 = vmatprep.mubr.f32.mxu0 %v16448_v9  ;;  %16601 = vst [vmem:[#allocation52_spill] sm:$0xff] %v14382_v41  ;;  %v14480_v16 = vrot.slane %v14336_v60, %v2088_v58 }
 0x12b   :  { %1836 = vmatmul.mubr.f32.vlgmr.msra.gmra.mrb[0].mxu1 %v16591_v43  ;;  %v2051_v43 = vsub.s32 5, %v14301_v63 }
 0x12c   :  { %2986 = vmatprep.mubr.f32.mxu1 %v16448_v9  ;;  %16620 = vst [vmem:[#allocation27_spill] sm:$0xff] %v14480_v16 }
 0x1fc   :  { %v982_v37 = vpop.f32.mrb[0].mxu0 }
 0x1fd   :  { %v1858_v53 = vrot.slane %v982_v37, 4  ;;  %v984_v19 = vpop.f32.mrb[1].mxu0 }
 0x1fe   :  { %v1859_v42 = vrot.slane %v984_v19, 4  ;;  %v1837_v4 = vpop.f32.mrb[0].mxu1 }
 0x1ff   :  { %1866 = vst [vmem:[#allocation2] sm:$0xf0] %v1858_v53  ;;  %v1860_v10 = vrot.slane %v1837_v4, 4  ;;  %v1839_v18 = vpop.f32.mrb[1].mxu1  ;;  %v14431_v4 = vrot.slane %v14355_v30, %v2010_v44 }
 0x200   :  { %1867 = vst [vmem:[#allocation2 + $0x8] sm:$0xf0] %v1859_v42  ;;  %v1861_v46 = vrot.slane %v1839_v18, 4  ;;  %v14428_v42 = vrot.slane %v14350_v39, %v2010_v44 }
 0x201   :  { %1868 = vst [vmem:[#allocation2 + $0x10] sm:$0xf0] %v1860_v10  ;;  %16611 = vst [vmem:[#allocation78_spill] sm:$0xff] %v14431_v4  ;;  %v14433_v10 = vand.u32 4294901760, %v2229_v56 }
 0x202   :  { %1869 = vst [vmem:[#allocation2 + $0x18] sm:$0xf0] %v1861_v46  ;;  %16610 = vst [vmem:[#allocation77_spill] sm:$0xff] %v14428_v42 }
 0x203   :  { %16612 = vst [vmem:[#allocation14_spill] sm:$0xff] %v14433_v10 }
 0x206   :  { %v14225_v1 = vld [vmem:[#allocation2] sm:$0xff] }
 0x207   :  { %1882 = vrot.lane.b32.xlu0 %v14225_v1, %s13268_s0  ;;  %v14241_v3 = vld [vmem:[#allocation2 + $0x8] sm:$0xff]  ;;  %v16246_v47 = vand.u32 4294901760, %v14225_v1 }
 0x208   :  { %v14229_v29 = vld [vmem:[#allocation2 + $0x10] sm:$0xff]  ;;  %v16245_v24 = vand.u32 4294901760, %v14241_v3 }
 0x209   :  { %1886 = vrot.lane.b32.xlu1 %v14229_v29, %s13268_s0  ;;  %v14235_v55 = vld [vmem:[#allocation2 + $0x18] sm:$0xff]  ;;  %v16243_v49 = vand.u32 4294901760, %v14229_v29  ;;  %v14311_v12 = vsub.f32 %v14225_v1, %v16246_v47 }
 0x20a   :  { %v16244_v23 = vand.u32 4294901760, %v14235_v55  ;;  %v14306_v7 = vsub.f32 %v14241_v3, %v16245_v24 }
 0x20b   :  { %1921 = vrot.lane.b32.xlu0 %v14225_v1, %s13269_s20  ;;  %16593 = vst [vmem:[#allocation36_spill] sm:$0xff] %v14311_v12  ;;  %v14318_v35 = vsub.f32 %v14229_v29, %v16243_v49  ;;  %v16240_v34 = vand.u32 4294901760, %v14311_v12 }
 0x20c   :  { %16592 = vst [vmem:[#allocation35_spill] sm:$0xff] %v14306_v7  ;;  %v14323_v45 = vsub.f32 %v14235_v55, %v16244_v23  ;;  %v16242_v8 = vand.u32 4294901760, %v14306_v7 }
 0x20d   :  { %1888 = vrot.lane.b32.xlu1 %v14235_v55, %s13268_s0  ;;  %16594 = vst [vmem:[#allocation40_spill] sm:$0xff] %v14318_v35  ;;  %v16239_v57 = vand.u32 4294901760, %v14318_v35  ;;  %v14376_v21 = vsub.f32 %v14311_v12, %v16240_v34 }
 0x20e   :  { %16595 = vst [vmem:[#allocation44_spill] sm:$0xff] %v14323_v45  ;;  %v16241_v13 = vand.u32 4294901760, %v14323_v45  ;;  %v14366_v32 = vsub.f32 %v14306_v7, %v16242_v8  ;;  %v14462_v8 = vrot.slane %v14355_v30, %v2051_v43 }
 0x20f   :  { %1925 = vrot.lane.b32.xlu0 %v14229_v29, %s13269_s20  ;;  %16599 = vst [vmem:[#allocation50_spill] sm:$0xff] %v14376_v21  ;;  %v14392_v27 = vsub.f32 %v14318_v35, %v16239_v57  ;;  %v14449_v57 = vrot.slane %v14336_v60, %v2051_v43 }
 0x210   :  { %v14387_v48 = vsub.f32 %v14323_v45, %v16241_v13  ;;  %16617 = vst [vmem:[#allocation22_spill] sm:$0xff] %v14462_v8 }
 0x211   :  { %1923 = vrot.lane.b32.xlu1 %v14241_v3, %s13269_s20  ;;  %16603 = vst [vmem:[#allocation63_spill] sm:$0xff] %v14392_v27  ;;  %16615 = vst [vmem:[#allocation20_spill] sm:$0xff] %v14449_v57 }
 0x212   :  { %16602 = vst [vmem:[#allocation54_spill] sm:$0xff] %v14387_v48 }
 0x213   :  { %1958 = vrot.lane.b32.xlu0 %v14225_v1, %s13270_s21 }
 0x215   :  { %1927 = vrot.lane.b32.xlu1 %v14235_v55, %s13269_s20 }
 0x217   :  { %1962 = vrot.lane.b32.xlu0 %v14229_v29, %s13270_s21 }
 0x219   :  { %1960 = vrot.lane.b32.xlu1 %v14241_v3, %s13270_s21 }
 0x21b   :  { %1995 = vrot.lane.b32.xlu0 %v14225_v1, %s13271_s22 }
 0x21d   :  { %1964 = vrot.lane.b32.xlu1 %v14235_v55, %s13270_s21 }
 0x21f   :  { %1999 = vrot.lane.b32.xlu0 %v14229_v29, %s13271_s22 }
 0x221   :  { %1997 = vrot.lane.b32.xlu1 %v14241_v3, %s13271_s22 }
 0x223   :  { %2036 = vrot.lane.b32.xlu0 %v14225_v1, %s13272_s23 }
 0x225   :  { %2001 = vrot.lane.b32.xlu1 %v14235_v55, %s13271_s22 }
 0x227   :  { %2040 = vrot.lane.b32.xlu0 %v14229_v29, %s13272_s23 }
 0x229   :  { %2038 = vrot.lane.b32.xlu1 %v14241_v3, %s13272_s23 }
 0x22b   :  { %2073 = vrot.lane.b32.xlu0 %v14225_v1, %s13273_s24 }
 0x22d   :  { %2042 = vrot.lane.b32.xlu1 %v14235_v55, %s13272_s23 }
 0x22f   :  { %1884 = vrot.lane.b32.xlu0 %v14241_v3, %s13268_s0 }
 0x231   :  { %2075 = vrot.lane.b32.xlu1 %v14241_v3, %s13273_s24 }
 0x233   :  { %2077 = vrot.lane.b32.xlu0 %v14229_v29, %s13273_s24 }
 0x235   :  { %2079 = vrot.lane.b32.xlu1 %v14235_v55, %s13273_s24 }
 0x237   :  { %2110 = vrot.lane.b32.xlu0 %v14225_v1, %s13274_s25 }
 0x239   :  { %2112 = vrot.lane.b32.xlu1 %v14241_v3, %s13274_s25 }
 0x23b   :  { %2114 = vrot.lane.b32.xlu0 %v14229_v29, %s13274_s25 }
 0x23d   :  { %2116 = vrot.lane.b32.xlu1 %v14235_v55, %s13274_s25 }
 0x23f   :  { %2147 = vrot.lane.b32.xlu0 %v14225_v1, %s13275_s26 }
 0x241   :  { %2149 = vrot.lane.b32.xlu1 %v14241_v3, %s13275_s26 }
 0x243   :  { %2151 = vrot.lane.b32.xlu0 %v14229_v29, %s13275_s26 }
 0x245   :  { %2153 = vrot.lane.b32.xlu1 %v14235_v55, %s13275_s26 }
 0x279   :  { %v14313_v15 = vpop.permute.xlu0 %1882 }
 0x27b   :  { %v14331_v26 = vpop.permute.xlu1 %1886 }
 0x27d   :  { %v1922_v28 = vpop.permute.xlu0 %1921 }
 0x27f   :  { %v1889_v38 = vpop.permute.xlu1 %1888 }
 0x280   :  { %v1896_v62 = vsel %vm1892_vm0, %v1889_v38, %v14313_v15  ;;  %v1893_v17 = vsel %vm1892_vm0, %v14331_v26, %v1889_v38 }
 0x281   :  { %v1926_v61 = vpop.permute.xlu0 %1925  ;;  %v14436_v18 = vmul.f32 %v14360_v54, %v1896_v62  ;;  %v1916_v36 = vmul.f32 %v14370_v50, %v1893_v17  ;;  %v14452_v62 = vrot.slane %v14350_v39, %v2051_v43  ;;  %v14526_v50 = vrot.slane %v14350_v39, %v2088_v58 }
 0x283   :  { %v1924_v6 = vpop.permute.xlu1 %1923  ;;  %16616 = vst [vmem:[#allocation23_spill] sm:$0xff] %v14452_v62  ;;  %16631 = vst [vmem:[#allocation34_spill] sm:$0xff] %v14526_v50 }
 0x284   :  { %v1931_v19 = vsel %vm1929_vm1, %v1924_v6, %v1926_v61  ;;  %v1932_v46 = vsel %vm1929_vm1, %v1922_v28, %v1924_v6 }
 0x285   :  { %v1959_v40 = vpop.permute.xlu0 %1958  ;;  %v14455_v34 = vmul.f32 %v14382_v41, %v1931_v19  ;;  %v14465_v44 = vmul.f32 %v14379_v59, %v1932_v46  ;;  %v14472_v19 = vrot.slane %v14342_v14, %v2051_v43  ;;  %v14484_v46 = vrot.slane %v14350_v39, %v14328_v5 }
 0x286   :  { %v14489_v43 = vrot.slane %v14355_v30, %v14328_v5  ;;  %v2125_v5 = vsub.s32 7, %v14301_v63 }
 0x287   :  { %v1928_v38 = vpop.permute.xlu1 %1927  ;;  %16618 = vst [vmem:[#allocation24_spill] sm:$0xff] %v14472_v19  ;;  %16621 = vst [vmem:[#allocation26_spill] sm:$0xff] %v14484_v46 }
 0x288   :  { %v1930_v6 = vsel %vm1929_vm1, %v1926_v61, %v1928_v38  ;;  %v1933_v13 = vsel %vm1929_vm1, %v1928_v38, %v1922_v28  ;;  %v14475_v61 = vsub.f32 %v2229_v56, %v14433_v10  ;;  %16622 = vst [vmem:[#allocation28_spill] sm:$0xff] %v14489_v43  ;;  %v14492_v56 = vrot.slane %v14342_v14, %v2088_v58 }
 0x289   :  { %v1963_v17 = vpop.permute.xlu0 %1962  ;;  %v14468_v53 = vmul.f32 %v14395_v31, %v1933_v13  ;;  %v1953_v38 = vmul.f32 %v14398_v0, %v1930_v6  ;;  %v2904_v13 = vand.u32 4294901760, %v1916_v36  ;;  %v16625_v6 = vand.u32 4294901760, %v14436_v18 }
 0x28a   :  { %16619 = vst [vmem:[#allocation25_spill] sm:$0xff] %v14475_v61  ;;  %16623 = vst [vmem:[#allocation29_spill] sm:$0xff] %v14492_v56  ;;  %v14505_v41 = vand.u32 4294901760, %v14475_v61 }
 0x28b   :  { %v1961_v51 = vpop.permute.xlu1 %1960  ;;  %v2908_v49 = vand.u32 4294901760, %v1953_v38  ;;  %v14510_v31 = vsub.f32 %v14436_v18, %v16625_v6  ;;  %v16627_v0 = vand.u32 4294901760, %v14468_v53  ;;  %v14529_v6 = vrot.slane %v14355_v30, %v2088_v58 }
 0x28c   :  { %v1968_v23 = vsel %vm1966_vm3, %v1961_v51, %v1963_v17  ;;  %v1969_v24 = vsel %vm1966_vm3, %v1959_v40, %v1961_v51  ;;  %16624 = vst [vmem:[#allocation31_spill] sm:$0xff] %v14505_v41  ;;  %v14531_v54 = vsub.f32 %v1916_v36, %v2904_v13 }
 0x28d   :  { %v1996_v47 = vpop.permute.xlu0 %1995  ;;  %v14501_v28 = vmul.f32 %v14403_v25, %v1969_v24  ;;  %16626 = vst [vmem:[#allocation30_spill] sm:$0xff] %v14510_v31  ;;  %v14515_v51 = vsub.f32 %v14468_v53, %v16627_v0  ;;  %v14518_v37 = vmul.f32 %v14406_v11, %v1968_v23  ;;  %v14520_v24 = vpack.c.bf16 %v2908_v49, %v2904_v13 }
 0x28e   :  { %v14522_v25 = vsub.f32 %v1953_v38, %v2908_v49  ;;  %16632 = vst [vmem:[#allocation41_spill] sm:$0xff] %v14529_v6  ;;  %16633 = vst [vmem:[#allocation43_spill] sm:$0xff] %v14531_v54  ;;  %v16634_v0 = vand.u32 4294901760, %v14455_v34  ;;  %v16636_v11 = vand.u32 4294901760, %v14465_v44  ;;  %v16644_v35 = vand.u32 4294901760, %v14510_v31 }
 0x28f   :  { %16628 = vst [vmem:[#allocation32_spill] sm:$0xff] %v14515_v51  ;;  %16629 = vst [vmem:[#allocation33_spill] sm:$0xff] %v14520_v24  ;;  %v1965_v59 = vpop.permute.xlu1 %1964  ;;  %12794 = vmatprep.subr.bf16.mxu1 %v14520_v24  ;;  %v16652_v10 = vand.u32 4294901760, %v14531_v54 }
 0x290   :  { %16630 = vst [vmem:[#allocation37_spill] sm:$0xff] %v14522_v25  ;;  %v14536_v23 = vsub.f32 %v14455_v34, %v16634_v0  ;;  %v1967_v49 = vsel %vm1966_vm3, %v1963_v17, %v1965_v59  ;;  %v1970_v38 = vsel %vm1966_vm3, %v1965_v59, %v1959_v40  ;;  %v14546_v58 = vsub.f32 %v14465_v44, %v16636_v11 }
 0x291   :  { %v2000_v63 = vpop.permute.xlu0 %1999  ;;  %v14550_v13 = vmul.f32 %v14413_v52, %v1970_v38  ;;  %v14553_v0 = vrot.slane %v14336_v60, %v2125_v5  ;;  %v14558_v59 = vrot.slane %v14342_v14, %v2125_v5  ;;  %v2317_v40 = vsub.f32 %v14475_v61, %v14505_v41 }
 0x292   :  { %16635 = vst [vmem:[#allocation49_spill] sm:$0xff] %v14536_v23  ;;  %16637 = vst [vmem:[#allocation46_spill] sm:$0xff] %v14546_v58  ;;  %v16640_v11 = vand.u32 4294901760, %v14501_v28  ;;  %v14568_v38 = vmul.f32 %v14421_v2, %v1967_v49  ;;  %v16642_v2 = vand.u32 4294901760, %v14518_v37  ;;  %v2334_v12 = vsub.f32 %v14510_v31, %v16644_v35 }
 0x293   :  { %16638 = vst [vmem:[#allocation53_spill] sm:$0xff] %v14553_v0  ;;  %16639 = vst [vmem:[#allocation55_spill] sm:$0xff] %v14558_v59  ;;  %v1998_v52 = vpop.permute.xlu1 %1997  ;;  %v14596_v49 = vrot.slane %v14350_v39, %v2125_v5  ;;  %v16650_v35 = vand.u32 4294901760, %v14522_v25  ;;  %v16651_v39 = vand.u32 4294901760, %v14536_v23  ;;  %v3001_v14 = vsub.f32 %v14531_v54, %v16652_v10 }
 0x294   :  { %v14565_v36 = vsub.f32 %v14501_v28, %v16640_v11  ;;  %v2005_v24 = vsel %vm2003_vm4, %v1998_v52, %v2000_v63  ;;  %v2006_v41 = vsel %vm2003_vm4, %v1996_v47, %v1998_v52  ;;  %v14584_v60 = vsub.f32 %v14518_v37, %v16642_v2 }
 0x295   :  { %v14578_v11 = vpop.permute.xlu0 %2036  ;;  %v2025_v61 = vmul.f32 %v14428_v42, %v2006_v41  ;;  %v2026_v17 = vmul.f32 %v14431_v4, %v2005_v24  ;;  %v16645_v52 = vand.u32 4294901760, %v14515_v51  ;;  %16646 = vst [vmem:[#allocation65_spill] sm:$0xff] %v14596_v49  ;;  %v14599_v2 = vrot.slane %v14355_v30, %v2125_v5 }
 0x296   :  { %16641 = vst [vmem:[#allocation61_spill] sm:$0xff] %v14565_v36  ;;  %16643 = vst [vmem:[#allocation58_spill] sm:$0xff] %v14584_v60  ;;  %v16648_v41 = vand.u32 4294901760, %v14550_v13  ;;  %v3013_v42 = vsub.f32 %v14522_v25, %v16650_v35  ;;  %v14614_v7 = vsub.f32 %v14536_v23, %v16651_v39  ;;  %v16653_v35 = vand.u32 4294901760, %v14546_v58 }
 0x297   :  { %v2346_v45 = vsub.f32 %v14515_v51, %v16645_v52  ;;  %16647 = vst [vmem:[#allocation66_spill] sm:$0xff] %v14599_v2  ;;  %v2002_v4 = vpop.permute.xlu1 %2001  ;;  %v2243_v30 = vand.u32 4294901760, %v2025_v61  ;;  %v2918_v31 = vand.u32 4294901760, %v2026_v17  ;;  %v14628_v39 = vand.u32 4294901760, %v2317_v40 }
 0x298   :  { %v14604_v24 = vsub.f32 %v14550_v13, %v16648_v41  ;;  %v2007_v5 = vsel %vm2003_vm4, %v2002_v4, %v1996_v47  ;;  %v14626_v52 = vsub.f32 %v14546_v58, %v16653_v35  ;;  %v2004_v47 = vsel %vm2003_vm4, %v2000_v63, %v2002_v4 }
 0x299   :  { %v2041_v41 = vpop.permute.xlu0 %2040  ;;  %v2024_v23 = vmul.f32 %v14441_v33, %v2007_v5  ;;  %v2335_v25 = vand.u32 4294901760, %v2334_v12  ;;  %v2347_v27 = vand.u32 4294901760, %v2346_v45  ;;  %v16654_v51 = vand.u32 4294901760, %v14568_v38 }
 0x29a   :  { %16649 = vst [vmem:[#allocation68_spill] sm:$0xff] %v14604_v24  ;;  %v3014_v48 = vand.u32 4294901760, %v3013_v42  ;;  %v16655_v35 = vand.u32 4294901760, %v14565_v36  ;;  %v16656_v4 = vand.u32 4294901760, %v14436_v18  ;;  %v16657_v63 = vand.u32 4294901760, %v14468_v53 }
 0x29b   :  { %v14637_v54 = vsub.f32 %v14568_v38, %v16654_v51  ;;  %v2039_v21 = vpop.permute.xlu1 %2038  ;;  %v14650_v45 = vsub.f32 %v2025_v61, %v2243_v30  ;;  %v3002_v10 = vand.u32 4294901760, %v3001_v14  ;;  %v16659_v42 = vand.u32 4294901760, %v14584_v60 }
 0x29c   :  { %v14642_v40 = vsub.f32 %v14565_v36, %v16655_v35  ;;  %v14648_v12 = vpack.c.bf16 %v16657_v63, %v16656_v4  ;;  %v14660_v35 = vsub.f32 %v2026_v17, %v2918_v31  ;;  %v2027_v18 = vmul.f32 %v14446_v20, %v2004_v47 }
 0x29d   :  { %v14652_v5 = vpop.permute.xlu0 %2073  ;;  %v14658_v33 = vsub.f32 %v14584_v60, %v16659_v42  ;;  %v2245_v4 = vand.u32 4294901760, %v2024_v23  ;;  %v2046_v61 = vsel %vm2044_vm5, %v2039_v21, %v2041_v41  ;;  %v2047_v14 = vsel %vm2044_vm5, %v14578_v11, %v2039_v21 }
 0x29e   :  { %16658 = vst [vmem:[#allocation15_spill] sm:$0xff] %v14648_v12  ;;  %16660 = vst [vmem:[#allocation16_spill] sm:$0xff] %v14660_v35  ;;  %v14669_v63 = vpack.c.bf16 %v2347_v27, %v2335_v25  ;;  %v16661_v51 = vand.u32 4294901760, %v14604_v24  ;;  %v14676_v60 = vpack.c.bf16 %v3014_v48, %v3002_v10  ;;  %v16662_v20 = vand.u32 4294901760, %v14518_v37 }
 0x29f   :  { %v2043_v17 = vpop.permute.xlu1 %2042  ;;  %v16664_v25 = vand.u32 4294901760, %v14501_v28  ;;  %v16303_v48 = vand.u32 4294901760, %v14660_v35  ;;  %v2916_v10 = vand.u32 4294901760, %v2027_v18  ;;  %v2065_v47 = vmul.f32 %v14449_v57, %v2047_v14 }
 0x2a0   :  { %v14674_v42 = vsub.f32 %v14604_v24, %v16661_v51  ;;  %v14682_v36 = vpack.c.bf16 %v2918_v31, %v16662_v20  ;;  %v2045_v21 = vsel %vm2044_vm5, %v2041_v41, %v2043_v17  ;;  %v16299_v51 = vand.u32 4294901760, %v14650_v45 }
 0x2a1   :  { %v1885_v27 = vpop.permute.xlu0 %1884  ;;  %v14688_v58 = vpack.c.bf16 %v2243_v30, %v16664_v25  ;;  %v2066_v53 = vmul.f32 %v14452_v62, %v2046_v61  ;;  %v14695_v31 = vsub.f32 %v2024_v23, %v2245_v4  ;;  %v2048_v37 = vsel %vm2044_vm5, %v2043_v17, %v14578_v11 }
 0x2a2   :  { %16663 = vst [vmem:[#allocation67_spill] sm:$0xff] %v14682_v36  ;;  %v1894_v20 = vsel %vm1892_vm0, %v1885_v27, %v14331_v26  ;;  %v1895_v28 = vsel %vm1892_vm0, %v14313_v15, %v1885_v27  ;;  %v2067_v30 = vmul.f32 %v14462_v8, %v2045_v21  ;;  %v16666_v14 = vand.u32 4294901760, %v14637_v54 }
 0x2a3   :  { %16665 = vst [vmem:[#allocation71_spill] sm:$0xff] %v14688_v58  ;;  %v2076_v41 = vpop.permute.xlu1 %2075  ;;  %v1914_v61 = vmul.f32 %v14484_v46, %v1895_v28  ;;  %v1915_v23 = vmul.f32 %v14489_v43, %v1894_v20  ;;  %v2364_v15 = vsub.f32 %v14650_v45, %v16299_v51  ;;  %v14722_v27 = vsub.f32 %v2027_v18, %v2916_v10 }
 0x2a4   :  { %v14712_v25 = vsub.f32 %v14637_v54, %v16666_v14  ;;  %v2084_v26 = vsel %vm2081_vm6, %v14652_v5, %v2076_v41  ;;  %v2251_v20 = vand.u32 4294901760, %v2066_v53  ;;  %v2253_v28 = vand.u32 4294901760, %v2065_v47 }
 0x2a5   :  { %v2078_v11 = vpop.permute.xlu0 %2077  ;;  %v14725_v14 = vmul.f32 %v14472_v19, %v2048_v37  ;;  %v14730_v8 = vsub.f32 %v14660_v35, %v16303_v48  ;;  %v2231_v62 = vand.u32 4294901760, %v1914_v61  ;;  %v2906_v51 = vand.u32 4294901760, %v1915_v23 }
 0x2a6   :  { %v16667_v17 = vand.u32 4294901760, %v14550_v13  ;;  %v2926_v18 = vand.u32 4294901760, %v2067_v30  ;;  %v14738_v21 = vmul.f32 %v14480_v16, %v2084_v26  ;;  %v16669_v37 = vand.u32 4294901760, %v14568_v38 }
 0x2a7   :  { %v2080_v46 = vpop.permute.xlu1 %2079  ;;  %v16671_v48 = vand.u32 4294901760, %v14455_v34  ;;  %v2083_v57 = vsel %vm2081_vm6, %v2076_v41, %v2078_v11  ;;  %v2365_v13 = vand.u32 4294901760, %v2364_v15  ;;  %v14755_v16 = vsub.f32 %v2066_v53, %v2251_v20 }
 0x2a8   :  { %v14735_v43 = vpack.c.bf16 %v2245_v4, %v16667_v17  ;;  %v14742_v19 = vpack.c.bf16 %v2916_v10, %v16669_v37  ;;  %v16673_v17 = vand.u32 4294901760, %v14225_v1  ;;  %v2924_v38 = vand.u32 4294901760, %v14725_v14 }
 0x2a9   :  { %v14746_v35 = vpack.c.bf16 %v16671_v48, %v2906_v51  ;;  %v2111_v24 = vpop.permute.xlu0 %2110  ;;  %v16675_v48 = vand.u32 4294901760, %v14695_v31  ;;  %v14765_v41 = vsub.f32 %v2065_v47, %v2253_v28  ;;  %v2085_v1 = vsel %vm2081_vm6, %v2080_v46, %v14652_v5 }
 0x2aa   :  { %16668 = vst [vmem:[#allocation73_spill] sm:$0xff] %v14735_v43  ;;  %16670 = vst [vmem:[#allocation76_spill] sm:$0xff] %v14742_v19  ;;  %v14753_v26 = vpack.c.bf16 %v2253_v28, %v16673_v17  ;;  %v16676_v53 = vand.u32 4294901760, %v14465_v44  ;;  %v14775_v37 = vsub.f32 %v2067_v30, %v2926_v18  ;;  %v2257_v17 = vand.u32 4294901760, %v14738_v21 }
 0x2ab   :  { %16672 = vst [vmem:[#allocation81_spill] sm:$0xff] %v14746_v35  ;;  %v14763_v10 = vsub.f32 %v14695_v31, %v16675_v48  ;;  %12796 = vmatpush1.bf16.msra.mxu1 %v14746_v35  ;;  %v2082_v48 = vsel %vm2081_vm6, %v2078_v11, %v2080_v46  ;;  %v2103_v47 = vmul.f32 %v14526_v50, %v2083_v57  ;;  %v2113_v28 = vpop.permute.xlu1 %2112  ;;  %v16677_v30 = vand.u32 4294901760, %v14241_v3 }
 0x2ac   :  { %16674 = vst [vmem:[#allocation42_spill] sm:$0xff] %v14753_v26  ;;  %v14772_v15 = vpack.c.bf16 %v16676_v53, %v2231_v62  ;;  %12798 = vmatprep.subr.bf16.mxu1 %v14742_v19  ;;  %v14782_v4 = vsub.f32 %v1914_v61, %v2231_v62  ;;  %v2121_v44 = vsel %vm2118_vm7, %v2111_v24, %v2113_v28  ;;  %v16679_v34 = vand.u32 4294901760, %v14642_v40 }
 0x2ad   :  { %v2115_v5 = vpop.permute.xlu0 %2114  ;;  %v14789_v53 = vpack.c.bf16 %v2251_v20, %v16677_v30  ;;  %v14795_v57 = vsub.f32 %v1915_v23, %v2906_v51  ;;  %v2105_v11 = vmul.f32 %v14492_v56, %v2085_v1  ;;  %v16680_v61 = vand.u32 4294901760, %v14235_v55 }
 0x2ae   :  { %12698 = vmatprep.subr.bf16.mxu0 %v14772_v15  ;;  %v14793_v46 = vpack.c.bf16 %v2365_v13, %v16679_v34  ;;  %v2120_v62 = vsel %vm2118_vm7, %v2113_v28, %v2115_v5  ;;  %v16311_v3 = vand.u32 4294901760, %v14765_v41  ;;  %v2104_v20 = vmul.f32 %v14529_v6, %v2082_v48 }
 0x2af   :  { %16678 = vst [vmem:[#allocation57_spill] sm:$0xff] %v14789_v53  ;;  %12700 = vmatpush1.bf16.msra.mxu0 %v14648_v12  ;;  %v14803_v50 = vpack.c.bf16 %v2924_v38, %v16680_v61  ;;  %v2139_v40 = vmul.f32 %v14553_v0, %v2121_v44  ;;  %12800 = vmatpush1.bf16.msra.mxu1 %v14682_v36  ;;  %v16682_v23 = vand.u32 4294901760, %v14229_v29  ;;  %v2255_v1 = vand.u32 4294901760, %v2103_v47  ;;  %v2117_v28 = vpop.permute.xlu1 %2116 }
 0x2b0   :  { %12702 = vmatprep.subr.bf16.mxu0 %v14688_v58  ;;  %v2140_v51 = vmul.f32 %v14596_v49, %v2120_v62  ;;  %v14817_v34 = vsub.f32 %v14738_v21, %v2257_v17  ;;  %v2122_v48 = vsel %vm2118_vm7, %v2117_v28, %v2111_v24  ;;  %v2119_v44 = vsel %vm2118_vm7, %v2115_v5, %v2117_v28 }
 0x2b1   :  { %16681 = vst [vmem:[#allocation56_spill] sm:$0xff] %v14803_v50  ;;  %v14813_v13 = vpack.c.bf16 %v2926_v18, %v16682_v23  ;;  %12802 = vmatprep.subr.bf16.mxu1 %v14803_v50  ;;  %v2148_v62 = vpop.permute.xlu0 %2147  ;;  %v2928_v61 = vand.u32 4294901760, %v2105_v11  ;;  %v2142_v21 = vmul.f32 %v14558_v59, %v2122_v48  ;;  %v2141_v23 = vmul.f32 %v14599_v2, %v2119_v44  ;;  %v12301_v59 = vld [vmem:[%s16037_s3 + $0x20] ss:$0 sm:$0xff] }
 0x2b2   :  { %v2259_v30 = vand.u32 4294901760, %v2140_v51  ;;  %v14832_v24 = vsub.f32 %v14765_v41, %v16311_v3  ;;  %v2930_v55 = vand.u32 4294901760, %v2104_v20  ;;  %v2261_v5 = vand.u32 4294901760, %v2139_v40 }
 0x2b3   :  { %16683 = vst [vmem:[#allocation59_spill] sm:$0xff] %v14813_v13  ;;  %12704 = vmatpush1.bf16.msra.mxu0 %v14735_v43  ;;  %12804 = vmatpush1.bf16.msra.mxu1 %v14813_v13  ;;  %v14839_v18 = vsub.f32 %v14725_v14, %v2924_v38  ;;  %v16684_v48 = vand.u32 4294901760, %v14775_v37  ;;  %v2932_v29 = vand.u32 4294901760, %v2142_v21  ;;  %v2934_v2 = vand.u32 4294901760, %v2141_v23  ;;  %v2150_v3 = vpop.permute.xlu1 %2149  ;;  %v12302_v14 = vld [vmem:[%s16037_s3 + $0x28] ss:$0 sm:$0xff] }
 0x2b4   :  { %12706 = vmatprep.subr.bf16.mxu0 %v14789_v53  ;;  %v14836_v28 = vpack.c.bf16 %v2259_v30, %v2255_v1  ;;  %v2158_v49 = vsel %vm2155_vm8, %v2148_v62, %v2150_v3  ;;  %v16686_v56 = vand.u32 4294901760, %v14722_v27  ;;  %v16687_v13 = vand.u32 4294901760, %v14795_v57 }
 0x2b5   :  { %v14844_v44 = vsub.f32 %v14775_v37, %v16684_v48  ;;  %v2152_v38 = vpop.permute.xlu0 %2151  ;;  %v16685_v48 = vand.u32 4294901760, %v14782_v4  ;;  %v14864_v53 = vsub.f32 %v2105_v11, %v2928_v61  ;;  %v14866_v36 = vsub.f32 %v2103_v47, %v2255_v1  ;;  %v12303_v11 = vld [vmem:[%s16037_s3 + $0x30] ss:$0 sm:$0xff] }
 0x2b6   :  { %v3037_v0 = vsub.f32 %v14722_v27, %v16686_v56  ;;  %v3007_v50 = vsub.f32 %v14795_v57, %v16687_v13  ;;  %v14868_v43 = vpack.c.bf16 %v2934_v2, %v2930_v55  ;;  %v14871_v19 = vsub.f32 %v2104_v20, %v2930_v55  ;;  %v12304_v56 = vld [vmem:[%s16037_s3 + $0x38] ss:$0 sm:$0xff] }
 0x2b7   :  { %v2328_v6 = vsub.f32 %v14782_v4, %v16685_v48  ;;  %12708 = vmatpush1.bf16.msra.mxu0 %v14753_v26  ;;  %v14873_v58 = vpack.c.bf16 %v2261_v5, %v2257_v17  ;;  %v14878_v48 = vpack.c.bf16 %v2932_v29, %v2928_v61  ;;  %v2157_v47 = vsel %vm2155_vm8, %v2150_v3, %v2152_v38  ;;  %v2154_v17 = vpop.permute.xlu1 %2153 }
 0x2b8   :  { %16688 = vst [vmem:[#allocation60_spill] sm:$0xff] %v14868_v43  ;;  %12710 = vmatprep.subr.bf16.mxu0 %v14836_v28  ;;  %v14886_v13 = vsub.f32 %v2139_v40, %v2261_v5  ;;  %v2176_v20 = vmul.f32 %v12301_v59, %v2158_v49  ;;  %v2177_v55 = vmul.f32 %v12302_v14, %v2157_v47  ;;  %v16349_v1 = vand.u32 4294901760, %v14755_v16 }
 0x2b9   :  { %v2159_v61 = vsel %vm2155_vm8, %v2154_v17, %v2148_v62  ;;  %12806 = vmatprep.subr.bf16.mxu1 %v14878_v48  ;;  %v2156_v26 = vsel %vm2155_vm8, %v2152_v38, %v2154_v17  ;;  %v2329_v35 = vand.u32 4294901760, %v2328_v6  ;;  %v16337_v3 = vand.u32 4294901760, %v14839_v18 }
 0x2ba   :  { %v14895_v12 = vsub.f32 %v2140_v51, %v2259_v30  ;;  %v2179_v40 = vmul.f32 %v12304_v56, %v2159_v61  ;;  %v2178_v5 = vmul.f32 %v12303_v11, %v2156_v26  ;;  %v14897_v59 = vand.u32 4294901760, %v2177_v55  ;;  %12808 = vmatpush1.bf16.msra.mxu1 %v14868_v43 }
 0x2bb   :  { %12712 = vmatpush1.bf16.msra.mxu0 %v14873_v58  ;;  %v14901_v49 = vsub.f32 %v2142_v21, %v2932_v29  ;;  %v14903_v62 = vsub.f32 %v2141_v23, %v2934_v2  ;;  %v3008_v14 = vand.u32 4294901760, %v3007_v50  ;;  %v3038_v47 = vand.u32 4294901760, %v3037_v0 }
 0x2bc   :  { %16689 = vst [vmem:[#allocation17_spill] sm:$0xff] %v14897_v59  ;;  %v14905_v38 = vand.u32 4294901760, %v2176_v20  ;;  %v14907_v6 = vand.u32 4294901760, %v2179_v40  ;;  %v14909_v51 = vand.u32 4294901760, %v2178_v5  ;;  %2264 = vmatprep.subr.mxu0 %v14897_v59  ;;  %v2388_v26 = vsub.f32 %v14755_v16, %v16349_v1 }
 0x2bd   :  { %v16339_v30 = vand.u32 4294901760, %v14886_v13  ;;  %v16691_v29 = vand.u32 4294901760, %v14626_v52  ;;  %v2371_v50 = vand.u32 4294901760, %v14763_v10  ;;  %v3061_v0 = vsub.f32 %v14839_v18, %v16337_v3 }
 0x2be   :  { %16690 = vst [vmem:[#allocation62_spill] sm:$0xff] %v14907_v6  ;;  %v16347_v21 = vand.u32 4294901760, %v14871_v19  ;;  %2937 = vmatprep.subr.mxu1 %v14907_v6  ;;  %v3044_v23 = vand.u32 4294901760, %v14730_v8  ;;  %v16348_v56 = vand.u32 4294901760, %v14866_v36  ;;  %v16342_v11 = vand.u32 4294901760, %v14895_v12 }
 0x2bf   :  { %v12713_v2 = vpack.c.bf16 %v16691_v29, %v2329_v35  ;;  %2266 = vmatpush1.msra.mxu0 %v14905_v38  ;;  %v16338_v52 = vand.u32 4294901760, %v14903_v62  ;;  %2939 = vmatpush1.msra.mxu1 %v14909_v51  ;;  %v16692_v35 = vand.u32 4294901760, %v14614_v7  ;;  %v16693_v17 = vand.u32 4294901760, %v14712_v25 }
 0x2c0   :  { %v16341_v29 = vand.u32 4294901760, %v14864_v53  ;;  %v14936_v3 = vsub.f32 %v2177_v55, %v14897_v59  ;;  %12810 = vmatprep.subr.bf16.mxu1 %v14676_v60  ;;  %2319 = vmatmul.mubr.f32.vlgmr.msra.gmra.mrb[2].mxu0 %v14628_v39  ;;  %v2389_v8 = vand.u32 4294901760, %v2388_v26  ;;  %v16340_v7 = vand.u32 4294901760, %v14901_v49 }
 0x2c1   :  { %12714 = vmatprep.subr.bf16.mxu0 %v12713_v2  ;;  %v12811_v10 = vpack.c.bf16 %v16692_v35, %v3008_v14  ;;  %v12813_v61 = vpack.c.bf16 %v3038_v47, %v16693_v17  ;;  %v2412_v2 = vsub.f32 %v14895_v12, %v16342_v11  ;;  %v2418_v25 = vsub.f32 %v14886_v13, %v16339_v30 }
 0x2c2   :  { %v14948_v14 = vsub.f32 %v2179_v40, %v14907_v6  ;;  %12716 = vmatpush1.bf16.msra.mxu0 %v14669_v63  ;;  %2992 = vmatmul.mubr.f32.vlgmr.msra.gmra.mrb[2].mxu1 %v14628_v39  ;;  %v16694_v60 = vand.u32 4294901760, %v14674_v42  ;;  %v3062_v47 = vand.u32 4294901760, %v3061_v0  ;;  %v16695_v26 = vand.u32 4294901760, %v14658_v33 }
 0x2c3   :  { %12812 = vmatpush1.bf16.msra.mxu1 %v12811_v10  ;;  %12718 = vmatprep.subr.bf16.mxu0 %v14793_v46  ;;  %v2395_v17 = vand.u32 4294901760, %v14832_v24  ;;  %v2400_v40 = vsub.f32 %v14866_v36, %v16348_v56  ;;  %v3085_v39 = vsub.f32 %v14901_v49, %v16340_v7  ;;  %v3091_v63 = vsub.f32 %v14903_v62, %v16338_v52 }
 0x2c4   :  { %v12719_v55 = vpack.c.bf16 %v2371_v50, %v16694_v60  ;;  %v12815_v35 = vpack.c.bf16 %v3044_v23, %v16695_v26  ;;  %v14968_v42 = vsub.f32 %v2176_v20, %v14905_v38  ;;  %12814 = vmatprep.subr.bf16.mxu1 %v12813_v61  ;;  %v3068_v33 = vand.u32 4294901760, %v14844_v44  ;;  %2479 = vmatprep.mubr.f32.mxu0 %v16448_v9  ;;  %v16698_v61 = vld [vmem:[#allocation54_spill] sm:$0xff] }
 0x2c5   :  { %v3073_v46 = vsub.f32 %v14864_v53, %v16341_v29  ;;  %v14976_v24 = vsub.f32 %v2178_v5, %v14909_v51  ;;  %v16696_v50 = vand.u32 4294901760, %v14366_v32  ;;  %v2413_v23 = vand.u32 4294901760, %v2412_v2  ;;  %3152 = vmatprep.mubr.f32.mxu1 %v16448_v9 }
 0x2c6   :  { %v16346_v10 = vand.u32 4294901760, %v14936_v3  ;;  %v16697_v20 = vand.u32 4294901760, %v14817_v34  ;;  %12720 = vmatpush1.bf16.msra.mxu0 %v12719_v55  ;;  %v16699_v60 = vand.u32 4294901760, %v16698_v61  ;;  %v3086_v52 = vand.u32 4294901760, %v3085_v39  ;;  %v16702_v55 = vld [vmem:[#allocation63_spill] sm:$0xff] }
 0x2c7   :  { %v12721_v0 = vpack.c.bf16 %v2389_v8, %v16696_v50  ;;  %v16345_v5 = vand.u32 4294901760, %v14948_v14  ;;  %v3079_v32 = vsub.f32 %v14871_v19, %v16347_v21  ;;  %12816 = vmatpush1.bf16.msra.mxu1 %v12815_v35  ;;  %v16700_v8 = vld [vmem:[#allocation50_spill] sm:$0xff]  ;;  %v2401_v30 = vand.u32 4294901760, %v2400_v40 }
 0x2c8   :  { %v2406_v44 = vsub.f32 %v14817_v34, %v16697_v20  ;;  %v12817_v26 = vpack.c.bf16 %v3062_v47, %v16699_v60  ;;  %v16701_v2 = vand.u32 4294901760, %v16700_v8  ;;  %v16344_v7 = vand.u32 4294901760, %v14968_v42 }
 0x2c9   :  { %12722 = vmatprep.subr.bf16.mxu0 %v12721_v0  ;;  %v16703_v20 = vand.u32 4294901760, %v16702_v55  ;;  %v3074_v47 = vand.u32 4294901760, %v3073_v46  ;;  %v2419_v39 = vand.u32 4294901760, %v2418_v25  ;;  %v16343_v60 = vand.u32 4294901760, %v14976_v24 }
 0x2ca   :  { %v12723_v50 = vpack.c.bf16 %v2395_v17, %v16701_v2  ;;  %12818 = vmatprep.subr.bf16.mxu1 %v12817_v26  ;;  %v12725_v29 = vpack.c.bf16 %v2413_v23, %v2401_v30  ;;  %v3092_v11 = vand.u32 4294901760, %v3091_v63  ;;  %v2424_v35 = vsub.f32 %v14936_v3, %v16346_v10  ;;  %v16705_v2 = vld [vmem:[#allocation43_spill] sm:$0xff] }
 0x2cb   :  { %v12819_v61 = vpack.c.bf16 %v3068_v33, %v16703_v20  ;;  %v12821_v0 = vpack.c.bf16 %v3086_v52, %v3074_v47  ;;  %v2407_v17 = vand.u32 4294901760, %v2406_v44  ;;  %v3097_v40 = vsub.f32 %v14948_v14, %v16345_v5  ;;  %v2221_v44 = vld [vmem:[%s16039_s5] sm:$0xf]  ;;  %v16707_v20 = vld [vmem:[#allocation30_spill] sm:$0xff] }
 0x2cc   :  { %12724 = vmatpush1.bf16.msra.mxu0 %v12723_v50  ;;  %v3080_v33 = vand.u32 4294901760, %v3079_v32  ;;  %v2430_v30 = vsub.f32 %v14968_v42, %v16344_v7  ;;  %v2425_v46 = vand.u32 4294901760, %v2424_v35  ;;  %v3103_v52 = vsub.f32 %v14976_v24, %v16343_v60  ;;  %v16706_v50 = vld [vmem:[#allocation37_spill] sm:$0xff]  ;;  %v16728_v60 = vld [vmem:[#allocation56_spill] sm:$0xff]  ;;  %v16729_v7 = vld [vmem:[#allocation42_spill] sm:$0xff] }
 0x2cd   :  { %12820 = vmatpush1.bf16.msra.mxu1 %v12819_v61  ;;  %12726 = vmatprep.subr.bf16.mxu0 %v12725_v29  ;;  %v12727_v25 = vpack.c.bf16 %v2419_v39, %v2407_v17  ;;  %v13276_v23 = vmov 0   ;;  %v3098_v29 = vand.u32 4294901760, %v3097_v40  ;;  %v12825_v55 = vpack.c.bf16 %v16706_v50, %v16705_v2  ;;  %v16708_v61 = vld [vmem:[#allocation32_spill] sm:$0xff]  ;;  %v16709_v39 = vld [vmem:[#allocation14_spill] sm:$0xff]  ;;  %v16710_v35 = vld [vmem:[#allocation49_spill] sm:$0xff] }
 0x2ce   :  { %12822 = vmatprep.subr.bf16.mxu1 %v12821_v0  ;;  %v12823_v63 = vpack.c.bf16 %v3092_v11, %v3080_v33  ;;  %13161 = vset.pattern.permute.xlu0 %v13276_v23  ;;  %v2431_v26 = vand.u32 4294901760, %v2430_v30  ;;  %v3104_v32 = vand.u32 4294901760, %v3103_v52  ;;  %v16704_v11 = vld [vmem:[#allocation46_spill] sm:$0xff]  ;;  %v12731_v47 = vpack.c.bf16 %v16708_v61, %v16707_v20  ;;  %v16711_v17 = vld [vmem:[#allocation61_spill] sm:$0xff]  ;;  %v16715_v23 = vld [vmem:[#allocation35_spill] sm:$0xff] }
 0x2cf   :  { %2224 = vperm.xlu0 %13161, %v2221_v44   ;;  %v12729_v8 = vpack.c.bf16 %v16704_v11, %v14782_v4  ;;  %v12827_v0 = vpack.c.bf16 %v16710_v35, %v14795_v57  ;;  %v12733_v40 = vpack.c.bf16 %v14650_v45, %v16711_v17  ;;  %v12829_v33 = vpack.c.bf16 %v14722_v27, %v14637_v54 }
 0x2d0   :  { %12728 = vmatpush1.bf16.msra.mxu0 %v12727_v25  ;;  %v16712_v25 = vld [vmem:[#allocation68_spill] sm:$0xff]  ;;  %v12737_v44 = vpack.c.bf16 %v14755_v16, %v16715_v23  ;;  %v16731_v5 = vand.u32 4294901760, %v14782_v4  ;;  %v16732_v10 = vand.u32 4294901760, %v16704_v11  ;;  %v16733_v56 = vand.u32 4294901760, %v16705_v2  ;;  %v16737_v4 = vld [vmem:[#allocation31_spill] sm:$0xff] }
 0x2d1   :  { %12824 = vmatpush1.bf16.msra.mxu1 %v12823_v63  ;;  %2426 = vmatprep.subr.mxu0 %v2425_v46  ;;  %v12735_v30 = vpack.c.bf16 %v14695_v31, %v16712_v25  ;;  %v16713_v63 = vld [vmem:[#allocation58_spill] sm:$0xff]  ;;  %v16714_v46 = vld [vmem:[#allocation16_spill] sm:$0xff]  ;;  %v16734_v1 = vand.u32 4294901760, %v16706_v50  ;;  %v16740_v2 = vand.u32 4294901760, %v16711_v17 }
 0x2d2   :  { %3099 = vmatprep.subr.mxu1 %v3098_v29  ;;  %v12831_v52 = vpack.c.bf16 %v16714_v46, %v16713_v63  ;;  %v16716_v29 = vld [vmem:[#allocation44_spill] sm:$0xff]  ;;  %v12761_v21 = vpack.c.bf16 %v16732_v10, %v16731_v5  ;;  %v16738_v10 = vand.u32 4294901760, %v14795_v57  ;;  %v16739_v5 = vand.u32 4294901760, %v16710_v35 }
 0x2d3   :  { %v12857_v22 = vpack.c.bf16 %v16734_v1, %v16733_v56  ;;  %v16741_v1 = vand.u32 4294901760, %v14650_v45  ;;  %v16744_v57 = vand.u32 4294901760, %v16712_v25  ;;  %v16746_v45 = vand.u32 4294901760, %v16713_v63 }
 0x2d4   :  { %2432 = vmatpush1.msra.mxu0 %v2431_v26  ;;  %v12833_v26 = vpack.c.bf16 %v14839_v18, %v16716_v29  ;;  %v12859_v11 = vpack.c.bf16 %v16739_v5, %v16738_v10  ;;  %v16750_v35 = vand.u32 4294901760, %v16716_v29  ;;  %v16753_v63 = vand.u32 4294901760, %v14765_v41 }
 0x2d5   :  { %3105 = vmatpush1.msra.mxu1 %v3104_v32  ;;  %12730 = vmatprep.subr.bf16.mxu0 %v12729_v8  ;;  %v16717_v32 = vld [vmem:[#allocation36_spill] sm:$0xff]  ;;  %v12765_v56 = vpack.c.bf16 %v16741_v1, %v16740_v2  ;;  %v16756_v10 = vand.u32 4294901760, %v14866_v36  ;;  %v16757_v29 = vand.u32 4294901760, %v14895_v12  ;;  %v16766_v1 = vand.u32 4294901760, %v14968_v42 }
 0x2d6   :  { %12826 = vmatprep.subr.bf16.mxu1 %v12825_v55  ;;  %2481 = vmatmul.mubr.f32.vlgmr.msra.gmra.mrb[2].mxu0 %v16709_v39  ;;  %v12739_v8 = vpack.c.bf16 %v14765_v41, %v16717_v32  ;;  %v16718_v55 = vld [vmem:[#allocation40_spill] sm:$0xff]  ;;  %v16752_v25 = vand.u32 4294901760, %v16717_v32  ;;  %v16760_v41 = vand.u32 4294901760, %v14817_v34  ;;  %v16761_v32 = vand.u32 4294901760, %v14886_v13 }
 0x2d7   :  { %12732 = vmatpush1.bf16.msra.mxu0 %v12731_v47  ;;  %3154 = vmatmul.mubr.f32.vlgmr.msra.gmra.mrb[2].mxu1 %v16709_v39  ;;  %v12835_v47 = vpack.c.bf16 %v14775_v37, %v16718_v55  ;;  %v12773_v5 = vpack.c.bf16 %v16757_v29, %v16756_v10 }
 0x2d8   :  { %12828 = vmatpush1.bf16.msra.mxu1 %v12827_v0  ;;  %12734 = vmatprep.subr.bf16.mxu0 %v12733_v40  ;;  %v12741_v0 = vpack.c.bf16 %v14895_v12, %v14866_v36  ;;  %v12837_v40 = vpack.c.bf16 %v14901_v49, %v14864_v53  ;;  %v16763_v36 = vand.u32 4294901760, %v14903_v62 }
 0x2d9   :  { %12830 = vmatprep.subr.bf16.mxu1 %v12829_v33  ;;  %2587 = vmatprep.mubr.f32.mxu0 %v16448_v9  ;;  %v12743_v33 = vpack.c.bf16 %v14886_v13, %v14817_v34  ;;  %v16767_v34 = vand.u32 4294901760, %v14976_v24  ;;  %v16770_v13 = vld [vmem:[#allocation62_spill] sm:$0xff] }
 0x2da   :  { %3260 = vmatprep.mubr.f32.mxu1 %v16448_v9 }
 0x2db   :  { %12736 = vmatpush1.bf16.msra.mxu0 %v12735_v30  ;;  %v12839_v30 = vpack.c.bf16 %v14903_v62, %v14871_v19 }
 0x2dc   :  { %12832 = vmatpush1.bf16.msra.mxu1 %v12831_v52  ;;  %12738 = vmatprep.subr.bf16.mxu0 %v12737_v44  ;;  %v16719_v52 = vld [vmem:[#allocation33_spill] sm:$0xff] }
 0x2dd   :  { %12834 = vmatprep.subr.bf16.mxu1 %v12833_v26  ;;  %v16720_v44 = vld [vmem:[#allocation25_spill] sm:$0xff]  ;;  %v16721_v26 = vld [vmem:[#allocation15_spill] sm:$0xff] }
 0x2df   :  { %12740 = vmatpush1.bf16.msra.mxu0 %v12739_v8  ;;  %v16722_v8 = vld [vmem:[#allocation81_spill] sm:$0xff] }
 0x2e0   :  { %12836 = vmatpush1.bf16.msra.mxu1 %v12835_v47  ;;  %12742 = vmatprep.subr.bf16.mxu0 %v12741_v0  ;;  %v16723_v47 = vld [vmem:[#allocation71_spill] sm:$0xff]  ;;  %v16724_v0 = vld [vmem:[#allocation76_spill] sm:$0xff] }
 0x2e1   :  { %12838 = vmatprep.subr.bf16.mxu1 %v12837_v40  ;;  %v16725_v40 = vld [vmem:[#allocation73_spill] sm:$0xff] }
 0x2e3   :  { %12744 = vmatpush1.bf16.msra.mxu0 %v12743_v33  ;;  %v16726_v33 = vld [vmem:[#allocation67_spill] sm:$0xff] }
 0x2e4   :  { %12840 = vmatpush1.bf16.msra.mxu1 %v12839_v30  ;;  %2537 = vmatprep.subr.mxu0 %v14936_v3  ;;  %v16727_v30 = vld [vmem:[#allocation57_spill] sm:$0xff] }
 0x2e5   :  { %3210 = vmatprep.subr.mxu1 %v14948_v14 }
 0x2e7   :  { %2540 = vmatpush1.msra.mxu0 %v14968_v42 }
 0x2e8   :  { %3213 = vmatpush1.msra.mxu1 %v14976_v24  ;;  %12746 = vmatprep.subr.bf16.mxu0 %v14772_v15 }
 0x2e9   :  { %12842 = vmatprep.subr.bf16.mxu1 %v16719_v52  ;;  %2590 = vmatmul.mubr.f32.vlgmr.msra.gmra.mrb[2].mxu0 %v16720_v44 }
 0x2ea   :  { %12748 = vmatpush1.bf16.msra.mxu0 %v16721_v26  ;;  %3263 = vmatmul.mubr.f32.vlgmr.msra.gmra.mrb[2].mxu1 %v16720_v44  ;;  %v16730_v44 = vld [vmem:[#allocation59_spill] sm:$0xff] }
 0x2eb   :  { %12844 = vmatpush1.bf16.msra.mxu1 %v16722_v8  ;;  %12750 = vmatprep.subr.bf16.mxu0 %v16723_v47 }
 0x2ec   :  { %12846 = vmatprep.subr.bf16.mxu1 %v16724_v0  ;;  %2678 = vmatprep.mubr.f32.mxu0 %v16448_v9 }
 0x2ed   :  { %3351 = vmatprep.mubr.f32.mxu1 %v16448_v9 }
 0x2ee   :  { %12752 = vmatpush1.bf16.msra.mxu0 %v16725_v40 }
 0x2ef   :  { %12848 = vmatpush1.bf16.msra.mxu1 %v16726_v33  ;;  %12754 = vmatprep.subr.bf16.mxu0 %v16727_v30 }
 0x2f0   :  { %12850 = vmatprep.subr.bf16.mxu1 %v16728_v60 }
 0x2f2   :  { %12756 = vmatpush1.bf16.msra.mxu0 %v16729_v7 }
 0x2f3   :  { %12852 = vmatpush1.bf16.msra.mxu1 %v16730_v44  ;;  %12758 = vmatprep.subr.bf16.mxu0 %v14836_v28 }
 0x2f4   :  { %12854 = vmatprep.subr.bf16.mxu1 %v14878_v48 }
 0x2f6   :  { %12760 = vmatpush1.bf16.msra.mxu0 %v14873_v58 }
 0x2f7   :  { %12856 = vmatpush1.bf16.msra.mxu1 %v14868_v43  ;;  %2629 = vmatprep.subr.mxu0 %v14897_v59  ;;  %v16735_v43 = vand.u32 4294901760, %v16707_v20  ;;  %v16736_v59 = vand.u32 4294901760, %v16708_v61 }
 0x2f8   :  { %3302 = vmatprep.subr.mxu1 %v14907_v6 }
 0x2f9   :  { %v12763_v6 = vpack.c.bf16 %v16736_v59, %v16735_v43  ;;  %v16743_v43 = vand.u32 4294901760, %v14722_v27  ;;  %v16745_v59 = vand.u32 4294901760, %v14695_v31  ;;  %v16749_v27 = vand.u32 4294901760, %v14755_v16 }
 0x2fa   :  { %2631 = vmatpush1.msra.mxu0 %v14905_v38  ;;  %v16751_v31 = vand.u32 4294901760, %v14839_v18  ;;  %v16755_v16 = vand.u32 4294901760, %v14775_v37  ;;  %v16758_v18 = vand.u32 4294901760, %v14864_v53  ;;  %v12775_v37 = vpack.c.bf16 %v16761_v32, %v16760_v41 }
 0x2fb   :  { %3304 = vmatpush1.msra.mxu1 %v14909_v51  ;;  %12762 = vmatprep.subr.bf16.mxu0 %v12761_v21  ;;  %v16742_v21 = vand.u32 4294901760, %v14637_v54  ;;  %v12767_v50 = vpack.c.bf16 %v16745_v59, %v16744_v57  ;;  %v16748_v54 = vand.u32 4294901760, %v16715_v23  ;;  %v16754_v23 = vand.u32 4294901760, %v16718_v55  ;;  %v16773_v59 = vld [vmem:[#allocation28_spill] sm:$0xff] }
 0x2fc   :  { %12858 = vmatprep.subr.bf16.mxu1 %v12857_v22  ;;  %2682 = vmatmul.mubr.f32.vlgmr.msra.gmra.mrb[2].mxu0 %v16737_v4  ;;  %v12865_v17 = vpack.c.bf16 %v16751_v31, %v16750_v35  ;;  %v16762_v55 = vand.u32 4294901760, %v14871_v19  ;;  %v16764_v53 = vand.u32 4294901760, %v14936_v3  ;;  %v16768_v19 = vld [vmem:[#allocation60_spill] sm:$0xff] }
 0x2fd   :  { %12764 = vmatpush1.bf16.msra.mxu0 %v12763_v6  ;;  %3355 = vmatmul.mubr.f32.vlgmr.msra.gmra.mrb[2].mxu1 %v16737_v4  ;;  %v12861_v22 = vpack.c.bf16 %v16743_v43, %v16742_v21  ;;  %v16747_v6 = vand.u32 4294901760, %v16714_v46  ;;  %v12769_v61 = vpack.c.bf16 %v16749_v27, %v16748_v54  ;;  %v12771_v46 = vpack.c.bf16 %v16753_v63, %v16752_v25  ;;  %v16775_v63 = vld [vmem:[#allocation48_spill] sm:$0xff] }
 0x2fe   :  { %12860 = vmatpush1.bf16.msra.mxu1 %v12859_v11  ;;  %12766 = vmatprep.subr.bf16.mxu0 %v12765_v56  ;;  %v12867_v4 = vpack.c.bf16 %v16755_v16, %v16754_v23  ;;  %v16759_v11 = vand.u32 4294901760, %v14901_v49  ;;  %v12871_v12 = vpack.c.bf16 %v16763_v36, %v16762_v55  ;;  %v16765_v49 = vand.u32 4294901760, %v14948_v14 }
 0x2ff   :  { %12862 = vmatprep.subr.bf16.mxu1 %v12861_v22  ;;  %2806 = vmatprep.mubr.f32.mxu0 %v16448_v9  ;;  %v12863_v20 = vpack.c.bf16 %v16747_v6, %v16746_v45  ;;  %v16772_v22 = vld [vmem:[#allocation26_spill] sm:$0xff] }
 0x300   :  { %3479 = vmatprep.mubr.f32.mxu1 %v16448_v9  ;;  %v12869_v2 = vpack.c.bf16 %v16759_v11, %v16758_v18 }
 0x301   :  { %12768 = vmatpush1.bf16.msra.mxu0 %v12767_v50 }
 0x302   :  { %12864 = vmatpush1.bf16.msra.mxu1 %v12863_v20  ;;  %12770 = vmatprep.subr.bf16.mxu0 %v12769_v61 }
 0x303   :  { %12866 = vmatprep.subr.bf16.mxu1 %v12865_v17  ;;  %v16774_v17 = vld [vmem:[#allocation47_spill] sm:$0xff] }
 0x305   :  { %12772 = vmatpush1.bf16.msra.mxu0 %v12771_v46 }
 0x306   :  { %12868 = vmatpush1.bf16.msra.mxu1 %v12867_v4  ;;  %12774 = vmatprep.subr.bf16.mxu0 %v12773_v5 }
 0x307   :  { %12870 = vmatprep.subr.bf16.mxu1 %v12869_v2 }
 0x309   :  { %12776 = vmatpush1.bf16.msra.mxu0 %v12775_v37 }
 0x30a   :  { %12872 = vmatpush1.bf16.msra.mxu1 %v12871_v12  ;;  %2755 = vmatprep.subr.mxu0 %v16764_v53 }
 0x30b   :  { %3428 = vmatprep.subr.mxu1 %v16765_v49 }
 0x30d   :  { %2759 = vmatpush1.msra.mxu0 %v16766_v1 }
 0x30e   :  { %3432 = vmatpush1.msra.mxu1 %v16767_v34  ;;  %12778 = vmatprep.subr.bf16.mxu0 %v14772_v15  ;;  %v16769_v15 = vld [vmem:[#allocation17_spill] sm:$0xff] }
 0x30f   :  { %12874 = vmatprep.subr.bf16.mxu1 %v16719_v52  ;;  %2808 = vmatmul.mubr.f32.vlgmr.msra.gmra.mrb[2].mxu0 %v16709_v39  ;;  %v12261_v52 = vld [vmem:[%s16041_s7] sm:$0xf] }
 0x310   :  { %12780 = vmatpush1.bf16.msra.mxu0 %v16721_v26  ;;  %3481 = vmatmul.mubr.f32.vlgmr.msra.gmra.mrb[2].mxu1 %v16709_v39  ;;  %v3599_v26 = vld [vmem:[%s16040_s6] sm:$0xf] }
 0x311   :  { %12876 = vmatpush1.bf16.msra.mxu1 %v16722_v8  ;;  %12782 = vmatprep.subr.bf16.mxu0 %v16723_v47  ;;  %v3602_v8 = vsel %vm3600_vm9, %v3599_v26, 0 }
 0x312   :  { %12878 = vmatprep.subr.bf16.mxu1 %v16724_v0  ;;  %2896 = vmatprep.mubr.f32.mxu0 %v16448_v9  ;;  %v15259_v47 = vand.u32 4294901760, %v3602_v8 }
 0x313   :  { %3569 = vmatprep.mubr.f32.mxu1 %v16448_v9 }
 0x314   :  { %12784 = vmatpush1.bf16.msra.mxu0 %v16725_v40  ;;  %v15262_v40 = vsub.f32 %v3602_v8, %v15259_v47 }
 0x315   :  { %12880 = vmatpush1.bf16.msra.mxu1 %v16726_v33  ;;  %12786 = vmatprep.subr.bf16.mxu0 %v16727_v30 }
 0x316   :  { %12882 = vmatprep.subr.bf16.mxu1 %v16728_v60 }
 0x318   :  { %12788 = vmatpush1.bf16.msra.mxu0 %v16729_v7 }
 0x319   :  { %12884 = vmatpush1.bf16.msra.mxu1 %v16730_v44  ;;  %12790 = vmatprep.subr.bf16.mxu0 %v14836_v28  ;;  %v15265_v44 = vand.u32 4294901760, %v15262_v40 }
 0x31a   :  { %12886 = vmatprep.subr.bf16.mxu1 %v14878_v48 }
 0x31b   :  { %v3687_v54 = vsub.f32 %v15262_v40, %v15265_v44 }
 0x31c   :  { %12792 = vmatpush1.bf16.msra.mxu0 %v14873_v58 }
 0x31d   :  { %12888 = vmatpush1.bf16.msra.mxu1 %v16768_v19  ;;  %2847 = vmatprep.subr.mxu0 %v16769_v15  ;;  %v3688_v10 = vand.u32 4294901760, %v3687_v54 }
 0x31e   :  { %3520 = vmatprep.subr.mxu1 %v16770_v13 }
 0x320   :  { %2849 = vmatpush1.msra.mxu0 %v14905_v38 }
 0x321   :  { %3522 = vmatpush1.msra.mxu1 %v14909_v51  ;;  %2898 = vmatmul.mubr.f32.vlgmr.msra.gmra.mrb[2].mxu0 %v16709_v39 }
 0x322   :  { %3571 = vmatmul.mubr.f32.vlgmr.msra.gmra.mrb[2].mxu1 %v16709_v39  ;;  %3683 = vmatprep.mubr.f32.mxu0 %v16448_v9 }
 0x323   :  { %4148 = vmatprep.mubr.f32.mxu1 %v16448_v9 }
 0x34e   :  { %v2225_v28 = vpop.permute.xlu0 %2224 }
 0x3f4   :  { %v2899_v58 = vpop.f32.mrb[2].mxu0 }
 0x3f5   :  { %v3572_v48 = vpop.f32.mrb[2].mxu1  ;;  %v12889_v3 = vadd.f32 %v2899_v58, %v2225_v28  ;;  %v2901_v62 = vpop.f32.mrb[3].mxu0 }
 0x3f6   :  { %v12891_v7 = vadd.f32 %v3572_v48, %v2225_v28  ;;  %v3574_v14 = vpop.f32.mrb[3].mxu1  ;;  %v12890_v38 = vadd.f32 %v2901_v62, %v2225_v28 }
 0x3f7   :  { %v15180_v42 = vmax.f32 %v12889_v3, 0.0  ;;  %v12892_v60 = vadd.f32 %v3574_v14, %v2225_v28  ;;  %v12305_v28 = vld [vmem:[%s16040_s6 + $0x10] sm:$0xf] }
 0x3f8   :  { %v15182_v24 = vmax.f32 %v12891_v7, 0.0  ;;  %v15188_v51 = vmax.f32 %v12890_v38, 0.0  ;;  %v4548_v3 = vsel %vm3600_vm9, %v12305_v28, 0 }
 0x3f9   :  { %3583 = vrot.lane.b32.xlu1 %v15180_v42, %s13268_s0  ;;  %v15194_v39 = vmax.f32 %v12892_v60, 0.0  ;;  %v4551_v7 = vsel %vm3604_vm10, %v15180_v42, 0  ;;  %v15332_v38 = vand.u32 4294901760, %v4548_v3 }
 0x3fa   :  { %3587 = vrot.lane.b32.xlu0 %v15182_v24, %s13268_s0  ;;  %v4554_v13 = vsel %vm3604_vm10, %v15188_v51, 0  ;;  %v4557_v60 = vsel %vm3604_vm10, %v15182_v24, 0 }
 0x3fb   :  { %v15316_v58 = vand.u32 4294901760, %v4554_v13  ;;  %v4560_v48 = vsel %vm3604_vm10, %v15194_v39, 0  ;;  %v15347_v26 = vand.u32 4294901760, %v4557_v60 }
 0x3fc   :  { %v15324_v62 = vand.u32 4294901760, %v4560_v48 }
 0x3fd   :  { %3585 = vrot.lane.b32.xlu1 %v15188_v51, %s13268_s0  ;;  %v15330_v14 = vsub.f32 %v4554_v13, %v15316_v58 }
 0x3fe   :  { %5492 = vrot.lane.b32.xlu0 %v15180_v42, %s13269_s20 }
 0x401   :  { %3589 = vrot.lane.b32.xlu1 %v15194_v39, %s13268_s0 }
 0x402   :  { %5496 = vrot.lane.b32.xlu0 %v15182_v24, %s13269_s20 }
 0x405   :  { %5494 = vrot.lane.b32.xlu1 %v15188_v51, %s13269_s20 }
 0x406   :  { %6459 = vrot.lane.b32.xlu0 %v15180_v42, %s13270_s21 }
 0x409   :  { %5498 = vrot.lane.b32.xlu1 %v15194_v39, %s13269_s20 }
 0x40a   :  { %6463 = vrot.lane.b32.xlu0 %v15182_v24, %s13270_s21 }
 0x40d   :  { %6461 = vrot.lane.b32.xlu1 %v15188_v51, %s13270_s21 }
 0x40e   :  { %7426 = vrot.lane.b32.xlu0 %v15180_v42, %s13271_s22 }
 0x411   :  { %6465 = vrot.lane.b32.xlu1 %v15194_v39, %s13270_s21 }
 0x412   :  { %7430 = vrot.lane.b32.xlu0 %v15182_v24, %s13271_s22 }
 0x415   :  { %7428 = vrot.lane.b32.xlu1 %v15188_v51, %s13271_s22 }
 0x416   :  { %8393 = vrot.lane.b32.xlu0 %v15180_v42, %s13272_s23 }
 0x419   :  { %7432 = vrot.lane.b32.xlu1 %v15194_v39, %s13271_s22 }
 0x41a   :  { %8397 = vrot.lane.b32.xlu0 %v15182_v24, %s13272_s23 }
 0x41d   :  { %8395 = vrot.lane.b32.xlu1 %v15188_v51, %s13272_s23 }
 0x41e   :  { %9360 = vrot.lane.b32.xlu0 %v15180_v42, %s13273_s24 }
 0x421   :  { %8399 = vrot.lane.b32.xlu1 %v15194_v39, %s13272_s23 }
 0x422   :  { %9364 = vrot.lane.b32.xlu0 %v15182_v24, %s13273_s24 }
 0x425   :  { %9362 = vrot.lane.b32.xlu1 %v15188_v51, %s13273_s24 }
 0x426   :  { %10327 = vrot.lane.b32.xlu0 %v15180_v42, %s13274_s25 }
 0x429   :  { %9366 = vrot.lane.b32.xlu1 %v15194_v39, %s13273_s24 }
 0x42a   :  { %10331 = vrot.lane.b32.xlu0 %v15182_v24, %s13274_s25 }
 0x42d   :  { %10329 = vrot.lane.b32.xlu1 %v15188_v51, %s13274_s25 }
 0x42e   :  { %11294 = vrot.lane.b32.xlu0 %v15180_v42, %s13275_s26  ;;  %v4630_v42 = vsub.f32 %v4548_v3, %v15332_v38 }
 0x431   :  { %10333 = vrot.lane.b32.xlu1 %v15194_v39, %s13274_s25 }
 0x432   :  { %11298 = vrot.lane.b32.xlu0 %v15182_v24, %s13275_s26 }
 0x435   :  { %11296 = vrot.lane.b32.xlu1 %v15188_v51, %s13275_s26  ;;  %v15334_v51 = vand.u32 4294901760, %v4551_v7 }
 0x436   :  { %12264 = vperm.xlu0 %13161, %v12261_v52   ;;  %v4642_v52 = vand.u32 4294901760, %v15330_v14 }
 0x437   :  { %v15351_v24 = vsub.f32 %v4551_v7, %v15334_v51 }
 0x439   :  { %11300 = vrot.lane.b32.xlu1 %v15194_v39, %s13275_s26  ;;  %v15339_v39 = vsub.f32 %v4560_v48, %v15324_v62 }
 0x43b   :  { %v5107_v8 = vand.u32 4294901760, %v15339_v39 }
 0x46b   :  { %v3584_v0 = vpop.permute.xlu1 %3583 }
 0x46c   :  { %v3588_v33 = vpop.permute.xlu0 %3587 }
 0x46f   :  { %v3586_v30 = vpop.permute.xlu1 %3585 }
 0x470   :  { %v3592_v21 = vsel %vm1892_vm0, %v3586_v30, %v3588_v33  ;;  %v3593_v43 = vsel %vm1892_vm0, %v3584_v0, %v3586_v30  ;;  %v5108_v30 = vsub.f32 %v15339_v39, %v5107_v8  ;;  %v5493_v54 = vpop.permute.xlu0 %5492 }
 0x471   :  { %v3596_v57 = vmul.f32 %v3593_v43, %v16772_v22  ;;  %v3597_v50 = vmul.f32 %v3592_v21, %v16773_v59 }
 0x473   :  { %v3609_v45 = vsel %vm3604_vm10, %v3596_v57, 0  ;;  %v3612_v6 = vsel %vm3604_vm10, %v3597_v50, 0  ;;  %v3590_v20 = vpop.permute.xlu1 %3589  ;;  %v5109_v57 = vand.u32 4294901760, %v5108_v30 }
 0x474   :  { %v15277_v27 = vand.u32 4294901760, %v3609_v45  ;;  %v15279_v61 = vand.u32 4294901760, %v3612_v6  ;;  %v3591_v35 = vsel %vm1892_vm0, %v3588_v33, %v3590_v20  ;;  %v3594_v31 = vsel %vm1892_vm0, %v3590_v20, %v3584_v0 }
 0x475   :  { %v3595_v25 = vmul.f32 %v3594_v31, %v16774_v17  ;;  %v3598_v46 = vmul.f32 %v3591_v35, %v16775_v63  ;;  %v4643_v0 = vsub.f32 %v15330_v14, %v4642_v52  ;;  %v15361_v33 = vsub.f32 %v4557_v60, %v15347_v26  ;;  %v5497_v35 = vpop.permute.xlu0 %5496  ;;  %v16776_v31 = vld [vmem:[#allocation51_spill] sm:$0xff]  ;;  %v16777_v63 = vld [vmem:[#allocation69_spill] sm:$0xff] }
 0x476   :  { %v3696_v23 = vsub.f32 %v3609_v45, %v15277_v27  ;;  %3618 = vmatprep.subr.mxu0 %v15277_v27  ;;  %v4167_v29 = vsub.f32 %v3612_v6, %v15279_v61 }
 0x477   :  { %v3606_v16 = vsel %vm3604_vm10, %v3595_v25, 0  ;;  %v3615_v4 = vsel %vm3604_vm10, %v3598_v46, 0  ;;  %v4644_v21 = vand.u32 4294901760, %v4643_v0  ;;  %v5113_v22 = vand.u32 4294901760, %v15361_v33 }
 0x478   :  { %v15292_v5 = vand.u32 4294901760, %v3606_v16  ;;  %v4082_v18 = vand.u32 4294901760, %v3615_v4  ;;  %v3697_v11 = vand.u32 4294901760, %v3696_v23  ;;  %v4168_v37 = vand.u32 4294901760, %v4167_v29 }
 0x479   :  { %v5114_v45 = vsub.f32 %v15361_v33, %v5113_v22  ;;  %v6460_v0 = vpop.permute.xlu0 %6459 }
 0x47a   :  { %v3702_v2 = vsub.f32 %v3606_v16, %v15292_v5  ;;  %v4161_v41 = vsub.f32 %v3615_v4, %v4082_v18  ;;  %3620 = vmatpush1.msra.mxu0 %v15292_v5  ;;  %4083 = vmatprep.subr.mxu1 %v4082_v18  ;;  %v3698_v32 = vsub.f32 %v3696_v23, %v3697_v11  ;;  %v12306_v4 = vld [vmem:[%s16040_s6 + $0x4] sm:$0xf] }
 0x47b   :  { %3689 = vmatmul.mubr.f32.vlgmr.msra.gmra.mrb[4].mxu0 %v3688_v10  ;;  %4085 = vmatpush1.msra.mxu1 %v15279_v61  ;;  %v4169_v49 = vsub.f32 %v4167_v29, %v4168_v37  ;;  %v5115_v20 = vand.u32 4294901760, %v5114_v45  ;;  %v12307_v45 = vld [vmem:[%s16040_s6 + $0x8] sm:$0xf] }
 0x47c   :  { %4154 = vmatmul.mubr.f32.vlgmr.msra.gmra.mrb[4].mxu1 %v3688_v10  ;;  %3769 = vmatprep.mubr.f32.mxu0 %v16448_v9  ;;  %v3699_v55 = vand.u32 4294901760, %v3698_v32  ;;  %v3703_v36 = vand.u32 4294901760, %v3702_v2  ;;  %v4162_v12 = vand.u32 4294901760, %v4161_v41 }
 0x47d   :  { %4234 = vmatprep.mubr.f32.mxu1 %v16448_v9  ;;  %v4170_v15 = vand.u32 4294901760, %v4169_v49  ;;  %v6464_v30 = vpop.permute.xlu0 %6463 }
 0x47e   :  { %3700 = vmatprep.subr.mxu0 %v3699_v55  ;;  %v3704_v53 = vsub.f32 %v3702_v2, %v3703_v36  ;;  %v4163_v34 = vsub.f32 %v4161_v41, %v4162_v12 }
 0x480   :  { %v3705_v1 = vand.u32 4294901760, %v3704_v53  ;;  %v4164_v19 = vand.u32 4294901760, %v4163_v34 }
 0x482   :  { %3706 = vmatpush1.msra.mxu0 %v3705_v1  ;;  %4165 = vmatprep.subr.mxu1 %v4164_v19 }
 0x483   :  { %3771 = vmatmul.mubr.f32.vlgmr.msra.gmra.mrb[4].mxu0 %v15259_v47  ;;  %3779 = vmatprep.subr.mxu0 %v3696_v23 }
 0x484   :  { %3782 = vmatpush1.msra.mxu0 %v3702_v2  ;;  %4171 = vmatpush1.msra.mxu1 %v4170_v15  ;;  %v5511_v2 = vsel %vm3600_vm9, %v12306_v4, 0 }
 0x485   :  { %3855 = vmatprep.subr.mxu0 %v15277_v27  ;;  %4236 = vmatmul.mubr.f32.vlgmr.msra.gmra.mrb[4].mxu1 %v15259_v47 }
 0x486   :  { %4244 = vmatprep.subr.mxu1 %v4161_v41  ;;  %3845 = vmatprep.mubr.f32.mxu0 %v16448_v9  ;;  %v16779_v41 = vld [vmem:[#allocation52_spill] sm:$0xff] }
 0x487   :  { %4247 = vmatpush1.msra.mxu1 %v4167_v29  ;;  %4310 = vmatprep.mubr.f32.mxu1 %v16448_v9 }
 0x488   :  { %4320 = vmatprep.subr.mxu1 %v4082_v18 }
 0x48b   :  { %3848 = vmatmul.mubr.f32.vlgmr.msra.gmra.mrb[4].mxu0 %v15262_v40 }
 0x48c   :  { %3857 = vmatpush1.msra.mxu0 %v15292_v5  ;;  %3920 = vmatprep.mubr.f32.mxu0 %v16448_v9 }
 0x48d   :  { %3933 = vmatprep.subr.mxu0 %v3697_v11  ;;  %4313 = vmatmul.mubr.f32.vlgmr.msra.gmra.mrb[4].mxu1 %v15262_v40  ;;  %v15357_v40 = vand.u32 4294901760, %v4630_v42 }
 0x48e   :  { %4322 = vmatpush1.msra.mxu1 %v15279_v61  ;;  %4385 = vmatprep.mubr.f32.mxu1 %v16448_v9 }
 0x48f   :  { %4398 = vmatprep.subr.mxu1 %v4162_v12  ;;  %v4632_v43 = vsub.f32 %v4630_v42, %v15357_v40  ;;  %v15422_v12 = vand.u32 4294901760, %v5511_v2 }
 0x491   :  { %v4633_v50 = vand.u32 4294901760, %v4632_v43  ;;  %v5593_v19 = vsub.f32 %v5511_v2, %v15422_v12 }
 0x493   :  { %3924 = vmatmul.mubr.f32.vlgmr.msra.gmra.mrb[4].mxu0 %v15265_v44  ;;  %v15447_v48 = vand.u32 4294901760, %v5593_v19 }
 0x494   :  { %3937 = vmatpush1.msra.mxu0 %v3703_v36  ;;  %4000 = vmatprep.mubr.f32.mxu0 %v16448_v9 }
 0x495   :  { %4009 = vmatprep.subr.mxu0 %v15277_v27  ;;  %4389 = vmatmul.mubr.f32.vlgmr.msra.gmra.mrb[4].mxu1 %v15265_v44  ;;  %v4648_v44 = vand.u32 4294901760, %v15351_v24 }
 0x496   :  { %4402 = vmatpush1.msra.mxu1 %v4168_v37  ;;  %4465 = vmatprep.mubr.f32.mxu1 %v16448_v9 }
 0x497   :  { %4474 = vmatprep.subr.mxu1 %v4082_v18  ;;  %v4649_v59 = vsub.f32 %v15351_v24, %v4648_v44 }
 0x499   :  { %v4650_v6 = vand.u32 4294901760, %v4649_v59 }
 0x49b   :  { %4002 = vmatmul.mubr.f32.vlgmr.msra.gmra.mrb[4].mxu0 %v15259_v47 }
 0x49c   :  { %4011 = vmatpush1.msra.mxu0 %v15292_v5  ;;  %4074 = vmatprep.mubr.f32.mxu0 %v16448_v9  ;;  %v16778_v5 = vld [vmem:[#allocation64_spill] sm:$0xff] }
 0x49d   :  { %4563 = vmatprep.subr.mxu0 %v15316_v58  ;;  %4467 = vmatmul.mubr.f32.vlgmr.msra.gmra.mrb[4].mxu1 %v15259_v47 }
 0x49e   :  { %4476 = vmatpush1.msra.mxu1 %v15279_v61  ;;  %4539 = vmatprep.mubr.f32.mxu1 %v16448_v9 }
 0x49f   :  { %5028 = vmatprep.subr.mxu1 %v15324_v62 }
 0x4a3   :  { %4076 = vmatmul.mubr.f32.vlgmr.msra.gmra.mrb[4].mxu0 %v15259_v47 }
 0x4a4   :  { %4565 = vmatpush1.msra.mxu0 %v15334_v51  ;;  %4628 = vmatprep.mubr.f32.mxu0 %v16448_v9 }
 0x4a5   :  { %4645 = vmatprep.subr.mxu0 %v4644_v21  ;;  %4541 = vmatmul.mubr.f32.vlgmr.msra.gmra.mrb[4].mxu1 %v15259_v47  ;;  %v5495_v47 = vpop.permute.xlu1 %5494 }
 0x4a6   :  { %5030 = vmatpush1.msra.mxu1 %v15347_v26  ;;  %5093 = vmatprep.mubr.f32.mxu1 %v16448_v9  ;;  %v5502_v27 = vsel %vm1929_vm1, %v5493_v54, %v5495_v47  ;;  %v5501_v10 = vsel %vm1929_vm1, %v5495_v47, %v5497_v35  ;;  %v16782_v47 = vld [vmem:[#allocation74_spill] sm:$0xff] }
 0x4a7   :  { %5110 = vmatprep.subr.mxu1 %v5109_v57  ;;  %v5505_v17 = vmul.f32 %v5502_v27, %v16776_v31  ;;  %v5506_v32 = vmul.f32 %v5501_v10, %v16779_v41 }
 0x4a9   :  { %v5499_v61 = vpop.permute.xlu1 %5498  ;;  %v5517_v23 = vsel %vm3604_vm10, %v5505_v17, 0  ;;  %v5520_v53 = vsel %vm3604_vm10, %v5506_v32, 0 }
 0x4aa   :  { %v5500_v25 = vsel %vm1929_vm1, %v5497_v35, %v5499_v61  ;;  %v5503_v16 = vsel %vm1929_vm1, %v5499_v61, %v5493_v54  ;;  %v15405_v29 = vand.u32 4294901760, %v5517_v23  ;;  %v15436_v15 = vand.u32 4294901760, %v5520_v53  ;;  %v16783_v35 = vld [vmem:[#allocation72_spill] sm:$0xff] }
 0x4ab   :  { %4634 = vmatmul.mubr.f32.vlgmr.msra.gmra.mrb[4].mxu0 %v4633_v50  ;;  %v5507_v46 = vmul.f32 %v5500_v25, %v16777_v63  ;;  %v5504_v18 = vmul.f32 %v5503_v16, %v16778_v5  ;;  %v6478_v61 = vsel %vm3600_vm9, %v12307_v45, 0 }
 0x4ac   :  { %4651 = vmatpush1.msra.mxu0 %v4650_v6  ;;  %4714 = vmatprep.mubr.f32.mxu0 %v16448_v9  ;;  %v15418_v55 = vsub.f32 %v5517_v23, %v15405_v29  ;;  %v15451_v3 = vsub.f32 %v5520_v53, %v15436_v15 }
 0x4ad   :  { %4724 = vmatprep.subr.mxu0 %v15330_v14  ;;  %5099 = vmatmul.mubr.f32.vlgmr.msra.gmra.mrb[4].mxu1 %v4633_v50  ;;  %v5523_v11 = vsel %vm3604_vm10, %v5507_v46, 0  ;;  %v5514_v36 = vsel %vm3604_vm10, %v5504_v18, 0  ;;  %v15512_v46 = vand.u32 4294901760, %v6478_v61 }
 0x4ae   :  { %5116 = vmatpush1.msra.mxu1 %v5115_v20  ;;  %5179 = vmatprep.mubr.f32.mxu1 %v16448_v9  ;;  %v15414_v37 = vand.u32 4294901760, %v5523_v11  ;;  %v15426_v49 = vand.u32 4294901760, %v5514_v36  ;;  %v5605_v34 = vand.u32 4294901760, %v15418_v55  ;;  %v6076_v60 = vand.u32 4294901760, %v15451_v3 }
 0x4af   :  { %5189 = vmatprep.subr.mxu1 %v15339_v39 }
 0x4b0   :  { %v15429_v1 = vsub.f32 %v5523_v11, %v15414_v37  ;;  %v15440_v13 = vsub.f32 %v5514_v36, %v15426_v49 }
 0x4b2   :  { %v6070_v28 = vand.u32 4294901760, %v15429_v1  ;;  %v5611_v7 = vand.u32 4294901760, %v15440_v13 }
 0x4b3   :  { %4716 = vmatmul.mubr.f32.vlgmr.msra.gmra.mrb[4].mxu0 %v15332_v38 }
 0x4b4   :  { %4727 = vmatpush1.msra.mxu0 %v15351_v24  ;;  %4790 = vmatprep.mubr.f32.mxu0 %v16448_v9 }
 0x4b5   :  { %4800 = vmatprep.subr.mxu0 %v15316_v58  ;;  %5181 = vmatmul.mubr.f32.vlgmr.msra.gmra.mrb[4].mxu1 %v15332_v38 }
 0x4b6   :  { %5192 = vmatpush1.msra.mxu1 %v15361_v33  ;;  %5255 = vmatprep.mubr.f32.mxu1 %v16448_v9 }
 0x4b7   :  { %5265 = vmatprep.subr.mxu1 %v15324_v62 }
 0x4bb   :  { %4793 = vmatmul.mubr.f32.vlgmr.msra.gmra.mrb[4].mxu0 %v4630_v42 }
 0x4bc   :  { %4802 = vmatpush1.msra.mxu0 %v15334_v51  ;;  %4865 = vmatprep.mubr.f32.mxu0 %v16448_v9 }
 0x4bd   :  { %4878 = vmatprep.subr.mxu0 %v4642_v52  ;;  %5258 = vmatmul.mubr.f32.vlgmr.msra.gmra.mrb[4].mxu1 %v4630_v42  ;;  %v5612_v52 = vsub.f32 %v15440_v13, %v5611_v7 }
 0x4be   :  { %5267 = vmatpush1.msra.mxu1 %v15347_v26  ;;  %5330 = vmatprep.mubr.f32.mxu1 %v16448_v9 }
 0x4bf   :  { %5343 = vmatprep.subr.mxu1 %v5107_v8  ;;  %v5613_v24 = vand.u32 4294901760, %v5612_v52 }
 0x4c3   :  { %4869 = vmatmul.mubr.f32.vlgmr.msra.gmra.mrb[4].mxu0 %v15357_v40 }
 0x4c4   :  { %4882 = vmatpush1.msra.mxu0 %v4648_v44  ;;  %4945 = vmatprep.mubr.f32.mxu0 %v16448_v9  ;;  %v16780_v44 = vld [vmem:[#allocation70_spill] sm:$0xff] }
 0x4c5   :  { %4954 = vmatprep.subr.mxu0 %v15316_v58  ;;  %5334 = vmatmul.mubr.f32.vlgmr.msra.gmra.mrb[4].mxu1 %v15357_v40  ;;  %v5606_v58 = vsub.f32 %v15418_v55, %v5605_v34 }
 0x4c6   :  { %5347 = vmatpush1.msra.mxu1 %v5113_v22  ;;  %5410 = vmatprep.mubr.f32.mxu1 %v16448_v9  ;;  %v16781_v22 = vld [vmem:[#allocation75_spill] sm:$0xff] }
 0x4c7   :  { %5419 = vmatprep.subr.mxu1 %v15324_v62  ;;  %v6071_v62 = vsub.f32 %v15429_v1, %v6070_v28  ;;  %v5607_v14 = vand.u32 4294901760, %v5606_v58  ;;  %v7427_v58 = vpop.permute.xlu0 %7426 }
 0x4c9   :  { %v6072_v39 = vand.u32 4294901760, %v6071_v62 }
 0x4cb   :  { %4947 = vmatmul.mubr.f32.vlgmr.msra.gmra.mrb[4].mxu0 %v15332_v38  ;;  %v7431_v62 = vpop.permute.xlu0 %7430 }
 0x4cc   :  { %4956 = vmatpush1.msra.mxu0 %v15334_v51  ;;  %5019 = vmatprep.mubr.f32.mxu0 %v16448_v9  ;;  %v5595_v51 = vsub.f32 %v5593_v19, %v15447_v48 }
 0x4cd   :  { %5526 = vmatprep.subr.mxu0 %v15405_v29  ;;  %5412 = vmatmul.mubr.f32.vlgmr.msra.gmra.mrb[4].mxu1 %v15332_v38 }
 0x4ce   :  { %5421 = vmatpush1.msra.mxu1 %v15347_v26  ;;  %5484 = vmatprep.mubr.f32.mxu1 %v16448_v9  ;;  %v5596_v42 = vand.u32 4294901760, %v5595_v51  ;;  %v6077_v26 = vsub.f32 %v15451_v3, %v6076_v60 }
 0x4cf   :  { %5991 = vmatprep.subr.mxu1 %v15414_v37 }
 0x4d0   :  { %v6078_v8 = vand.u32 4294901760, %v6077_v26  ;;  %v12308_v26 = vld [vmem:[%s16040_s6 + $0xc] sm:$0xf] }
 0x4d3   :  { %5021 = vmatmul.mubr.f32.vlgmr.msra.gmra.mrb[4].mxu0 %v15332_v38 }
 0x4d4   :  { %5528 = vmatpush1.msra.mxu0 %v15426_v49  ;;  %5591 = vmatprep.mubr.f32.mxu0 %v16448_v9 }
 0x4d5   :  { %5608 = vmatprep.subr.mxu0 %v5607_v14  ;;  %5486 = vmatmul.mubr.f32.vlgmr.msra.gmra.mrb[4].mxu1 %v15332_v38  ;;  %v6462_v38 = vpop.permute.xlu1 %6461 }
 0x4d6   :  { %5993 = vmatpush1.msra.mxu1 %v15436_v15  ;;  %6056 = vmatprep.mubr.f32.mxu1 %v16448_v9  ;;  %v6469_v40 = vsel %vm1966_vm3, %v6460_v0, %v6462_v38  ;;  %v6468_v6 = vsel %vm1966_vm3, %v6462_v38, %v6464_v30  ;;  %v16786_v38 = vld [vmem:[#allocation80_spill] sm:$0xff] }
 0x4d7   :  { %6073 = vmatprep.subr.mxu1 %v6072_v39  ;;  %v6472_v21 = vmul.f32 %v6469_v40, %v16780_v44  ;;  %v6473_v31 = vmul.f32 %v6468_v6, %v16783_v35 }
 0x4d9   :  { %v6466_v33 = vpop.permute.xlu1 %6465  ;;  %v6484_v59 = vsel %vm3604_vm10, %v6472_v21, 0  ;;  %v6487_v23 = vsel %vm3604_vm10, %v6473_v31, 0 }
 0x4da   :  { %v6467_v43 = vsel %vm1966_vm3, %v6464_v30, %v6466_v33  ;;  %v6470_v50 = vsel %vm1966_vm3, %v6466_v33, %v6460_v0  ;;  %v15495_v20 = vand.u32 4294901760, %v6484_v59  ;;  %v15526_v5 = vand.u32 4294901760, %v6487_v23  ;;  %v16787_v30 = vld [vmem:[#allocation78_spill] sm:$0xff] }
 0x4db   :  { %5597 = vmatmul.mubr.f32.vlgmr.msra.gmra.mrb[4].mxu0 %v5596_v42  ;;  %v6474_v57 = vmul.f32 %v6467_v43, %v16781_v22  ;;  %v6471_v54 = vmul.f32 %v6470_v50, %v16782_v47  ;;  %v7445_v33 = vsel %vm3600_vm9, %v12308_v26, 0 }
 0x4dc   :  { %5614 = vmatpush1.msra.mxu0 %v5613_v24  ;;  %5677 = vmatprep.mubr.f32.mxu0 %v16448_v9  ;;  %v15508_v25 = vsub.f32 %v6484_v59, %v15495_v20  ;;  %v15541_v32 = vsub.f32 %v6487_v23, %v15526_v5 }
 0x4dd   :  { %5687 = vmatprep.subr.mxu0 %v15418_v55  ;;  %6062 = vmatmul.mubr.f32.vlgmr.msra.gmra.mrb[4].mxu1 %v5596_v42  ;;  %v6490_v27 = vsel %vm3604_vm10, %v6474_v57, 0  ;;  %v6481_v63 = vsel %vm3604_vm10, %v6471_v54, 0  ;;  %v15602_v57 = vand.u32 4294901760, %v7445_v33 }
 0x4de   :  { %6079 = vmatpush1.msra.mxu1 %v6078_v8  ;;  %6142 = vmatprep.mubr.f32.mxu1 %v16448_v9  ;;  %v15504_v17 = vand.u32 4294901760, %v6490_v27  ;;  %v15516_v16 = vand.u32 4294901760, %v6481_v63  ;;  %v6572_v10 = vand.u32 4294901760, %v15508_v25 }
 0x4df   :  { %6152 = vmatprep.subr.mxu1 %v15429_v1 }
 0x4e0   :  { %v15519_v4 = vsub.f32 %v6490_v27, %v15504_v17  ;;  %v15530_v18 = vsub.f32 %v6481_v63, %v15516_v16  ;;  %v6573_v2 = vsub.f32 %v15508_v25, %v6572_v10 }
 0x4e2   :  { %v7037_v11 = vand.u32 4294901760, %v15519_v4  ;;  %v6578_v55 = vand.u32 4294901760, %v15530_v18  ;;  %v6574_v36 = vand.u32 4294901760, %v6573_v2 }
 0x4e3   :  { %5679 = vmatmul.mubr.f32.vlgmr.msra.gmra.mrb[4].mxu0 %v15422_v12 }
 0x4e4   :  { %5690 = vmatpush1.msra.mxu0 %v15440_v13  ;;  %5753 = vmatprep.mubr.f32.mxu0 %v16448_v9 }
 0x4e5   :  { %5763 = vmatprep.subr.mxu0 %v15405_v29  ;;  %6144 = vmatmul.mubr.f32.vlgmr.msra.gmra.mrb[4].mxu1 %v15422_v12 }
 0x4e6   :  { %6155 = vmatpush1.msra.mxu1 %v15451_v3  ;;  %6218 = vmatprep.mubr.f32.mxu1 %v16448_v9 }
 0x4e7   :  { %6228 = vmatprep.subr.mxu1 %v15414_v37 }
 0x4eb   :  { %5756 = vmatmul.mubr.f32.vlgmr.msra.gmra.mrb[4].mxu0 %v5593_v19 }
 0x4ec   :  { %5765 = vmatpush1.msra.mxu0 %v15426_v49  ;;  %5828 = vmatprep.mubr.f32.mxu0 %v16448_v9 }
 0x4ed   :  { %5841 = vmatprep.subr.mxu0 %v5605_v34  ;;  %6221 = vmatmul.mubr.f32.vlgmr.msra.gmra.mrb[4].mxu1 %v5593_v19  ;;  %v6579_v34 = vsub.f32 %v15530_v18, %v6578_v55 }
 0x4ee   :  { %6230 = vmatpush1.msra.mxu1 %v15436_v15  ;;  %6293 = vmatprep.mubr.f32.mxu1 %v16448_v9 }
 0x4ef   :  { %6306 = vmatprep.subr.mxu1 %v6070_v28  ;;  %v6580_v13 = vand.u32 4294901760, %v6579_v34 }
 0x4f3   :  { %5832 = vmatmul.mubr.f32.vlgmr.msra.gmra.mrb[4].mxu0 %v15447_v48 }
 0x4f4   :  { %5845 = vmatpush1.msra.mxu0 %v5611_v7  ;;  %5908 = vmatprep.mubr.f32.mxu0 %v16448_v9  ;;  %v16784_v7 = vld [vmem:[#allocation77_spill] sm:$0xff] }
 0x4f5   :  { %5917 = vmatprep.subr.mxu0 %v15405_v29  ;;  %6297 = vmatmul.mubr.f32.vlgmr.msra.gmra.mrb[4].mxu1 %v15447_v48  ;;  %v6560_v29 = vsub.f32 %v6478_v61, %v15512_v46 }
 0x4f6   :  { %6310 = vmatpush1.msra.mxu1 %v6076_v60  ;;  %6373 = vmatprep.mubr.f32.mxu1 %v16448_v9  ;;  %v16785_v60 = vld [vmem:[#allocation18_spill] sm:$0xff] }
 0x4f7   :  { %6382 = vmatprep.subr.mxu1 %v15414_v37  ;;  %v15537_v41 = vand.u32 4294901760, %v6560_v29  ;;  %v7038_v37 = vsub.f32 %v15519_v4, %v7037_v11 }
 0x4f9   :  { %v6562_v53 = vsub.f32 %v6560_v29, %v15537_v41  ;;  %v7039_v1 = vand.u32 4294901760, %v7038_v37 }
 0x4fb   :  { %5910 = vmatmul.mubr.f32.vlgmr.msra.gmra.mrb[4].mxu0 %v15422_v12  ;;  %v6563_v19 = vand.u32 4294901760, %v6562_v53 }
 0x4fc   :  { %5919 = vmatpush1.msra.mxu0 %v15426_v49  ;;  %5982 = vmatprep.mubr.f32.mxu0 %v16448_v9  ;;  %v7043_v49 = vand.u32 4294901760, %v15541_v32 }
 0x4fd   :  { %6493 = vmatprep.subr.mxu0 %v15495_v20  ;;  %6375 = vmatmul.mubr.f32.vlgmr.msra.gmra.mrb[4].mxu1 %v15422_v12 }
 0x4fe   :  { %6384 = vmatpush1.msra.mxu1 %v15436_v15  ;;  %6447 = vmatprep.mubr.f32.mxu1 %v16448_v9  ;;  %v7044_v15 = vsub.f32 %v15541_v32, %v7043_v49 }
 0x4ff   :  { %6958 = vmatprep.subr.mxu1 %v15504_v17 }
 0x500   :  { %v7045_v28 = vand.u32 4294901760, %v7044_v15  ;;  %v12309_v15 = vld [vmem:[%s16040_s6 + $0x14] sm:$0xf] }
 0x503   :  { %5984 = vmatmul.mubr.f32.vlgmr.msra.gmra.mrb[4].mxu0 %v15422_v12 }
 0x504   :  { %6495 = vmatpush1.msra.mxu0 %v15516_v16  ;;  %6558 = vmatprep.mubr.f32.mxu0 %v16448_v9 }
 0x505   :  { %6575 = vmatprep.subr.mxu0 %v6574_v36  ;;  %6449 = vmatmul.mubr.f32.vlgmr.msra.gmra.mrb[4].mxu1 %v15422_v12  ;;  %v7429_v12 = vpop.permute.xlu1 %7428 }
 0x506   :  { %6960 = vmatpush1.msra.mxu1 %v15526_v5  ;;  %7023 = vmatprep.mubr.f32.mxu1 %v16448_v9  ;;  %v7436_v48 = vsel %vm2003_vm4, %v7427_v58, %v7429_v12  ;;  %v7435_v24 = vsel %vm2003_vm4, %v7429_v12, %v7431_v62 }
 0x507   :  { %7040 = vmatprep.subr.mxu1 %v7039_v1  ;;  %v7439_v14 = vmul.f32 %v7436_v48, %v16784_v7  ;;  %v7440_v44 = vmul.f32 %v7435_v24, %v16787_v30 }
 0x509   :  { %v7433_v3 = vpop.permute.xlu1 %7432  ;;  %v7451_v52 = vsel %vm3604_vm10, %v7439_v14, 0  ;;  %v7454_v59 = vsel %vm3604_vm10, %v7440_v44, 0 }
 0x50a   :  { %v7434_v51 = vsel %vm2003_vm4, %v7431_v62, %v7433_v3  ;;  %v7437_v42 = vsel %vm2003_vm4, %v7433_v3, %v7427_v58  ;;  %v15585_v8 = vand.u32 4294901760, %v7451_v52  ;;  %v15616_v47 = vand.u32 4294901760, %v7454_v59  ;;  %v16791_v62 = vld [vmem:[#allocation22_spill] sm:$0xff] }
 0x50b   :  { %6564 = vmatmul.mubr.f32.vlgmr.msra.gmra.mrb[4].mxu0 %v6563_v19  ;;  %v7441_v39 = vmul.f32 %v7434_v51, %v16785_v60  ;;  %v7438_v0 = vmul.f32 %v7437_v42, %v16786_v38  ;;  %v8412_v3 = vsel %vm3600_vm9, %v12309_v15, 0 }
 0x50c   :  { %6581 = vmatpush1.msra.mxu0 %v6580_v13  ;;  %6644 = vmatprep.mubr.f32.mxu0 %v16448_v9  ;;  %v15598_v43 = vsub.f32 %v7451_v52, %v15585_v8  ;;  %v15631_v31 = vsub.f32 %v7454_v59, %v15616_v47  ;;  %v16790_v13 = vld [vmem:[#allocation20_spill] sm:$0xff] }
 0x50d   :  { %6654 = vmatprep.subr.mxu0 %v15508_v25  ;;  %7029 = vmatmul.mubr.f32.vlgmr.msra.gmra.mrb[4].mxu1 %v6563_v19  ;;  %v7457_v40 = vsel %vm3604_vm10, %v7441_v39, 0  ;;  %v7448_v22 = vsel %vm3604_vm10, %v7438_v0, 0  ;;  %v8396_v2 = vpop.permute.xlu1 %8395  ;;  %v15692_v39 = vand.u32 4294901760, %v8412_v3 }
 0x50e   :  { %7046 = vmatpush1.msra.mxu1 %v7045_v28  ;;  %7109 = vmatprep.mubr.f32.mxu1 %v16448_v9  ;;  %v15594_v21 = vand.u32 4294901760, %v7457_v40  ;;  %v15606_v50 = vand.u32 4294901760, %v7448_v22  ;;  %v7539_v6 = vand.u32 4294901760, %v15598_v43 }
 0x50f   :  { %7119 = vmatprep.subr.mxu1 %v15519_v4 }
 0x510   :  { %v15609_v45 = vsub.f32 %v7457_v40, %v15594_v21  ;;  %v15620_v54 = vsub.f32 %v7448_v22, %v15606_v50  ;;  %v7540_v61 = vsub.f32 %v15598_v43, %v7539_v6 }
 0x511   :  { %v8400_v37 = vpop.permute.xlu1 %8399 }
 0x512   :  { %v8004_v27 = vand.u32 4294901760, %v15609_v45  ;;  %v7545_v25 = vand.u32 4294901760, %v15620_v54  ;;  %v7541_v63 = vand.u32 4294901760, %v7540_v61 }
 0x513   :  { %6646 = vmatmul.mubr.f32.vlgmr.msra.gmra.mrb[4].mxu0 %v15512_v46 }
 0x514   :  { %6657 = vmatpush1.msra.mxu0 %v15530_v18  ;;  %6720 = vmatprep.mubr.f32.mxu0 %v16448_v9 }
 0x515   :  { %6730 = vmatprep.subr.mxu0 %v15495_v20  ;;  %7111 = vmatmul.mubr.f32.vlgmr.msra.gmra.mrb[4].mxu1 %v15512_v46  ;;  %v9363_v61 = vpop.permute.xlu1 %9362 }
 0x516   :  { %7122 = vmatpush1.msra.mxu1 %v15541_v32  ;;  %7185 = vmatprep.mubr.f32.mxu1 %v16448_v9 }
 0x517   :  { %7195 = vmatprep.subr.mxu1 %v15504_v17 }
 0x51b   :  { %6723 = vmatmul.mubr.f32.vlgmr.msra.gmra.mrb[4].mxu0 %v6560_v29 }
 0x51c   :  { %6732 = vmatpush1.msra.mxu0 %v15516_v16  ;;  %6795 = vmatprep.mubr.f32.mxu0 %v16448_v9 }
 0x51d   :  { %6808 = vmatprep.subr.mxu0 %v6572_v10  ;;  %7188 = vmatmul.mubr.f32.vlgmr.msra.gmra.mrb[4].mxu1 %v6560_v29  ;;  %v7546_v10 = vsub.f32 %v15620_v54, %v7545_v25 }
 0x51e   :  { %7197 = vmatpush1.msra.mxu1 %v15526_v5  ;;  %7260 = vmatprep.mubr.f32.mxu1 %v16448_v9 }
 0x51f   :  { %7273 = vmatprep.subr.mxu1 %v7037_v11  ;;  %v7547_v18 = vand.u32 4294901760, %v7546_v10 }
 0x523   :  { %6799 = vmatmul.mubr.f32.vlgmr.msra.gmra.mrb[4].mxu0 %v15537_v41 }
 0x524   :  { %6812 = vmatpush1.msra.mxu0 %v6578_v55  ;;  %6875 = vmatprep.mubr.f32.mxu0 %v16448_v9  ;;  %v16788_v55 = vld [vmem:[#allocation23_spill] sm:$0xff] }
 0x525   :  { %6884 = vmatprep.subr.mxu0 %v15495_v20  ;;  %7264 = vmatmul.mubr.f32.vlgmr.msra.gmra.mrb[4].mxu1 %v15537_v41  ;;  %v7527_v20 = vsub.f32 %v7445_v33, %v15602_v57 }
 0x526   :  { %7277 = vmatpush1.msra.mxu1 %v7043_v49  ;;  %7340 = vmatprep.mubr.f32.mxu1 %v16448_v9  ;;  %v16789_v49 = vld [vmem:[#allocation24_spill] sm:$0xff] }
 0x527   :  { %7349 = vmatprep.subr.mxu1 %v15504_v17  ;;  %v15627_v35 = vand.u32 4294901760, %v7527_v20  ;;  %v8005_v17 = vsub.f32 %v15609_v45, %v8004_v27 }
 0x529   :  { %v7529_v23 = vsub.f32 %v7527_v20, %v15627_v35  ;;  %v8006_v4 = vand.u32 4294901760, %v8005_v17  ;;  %v9367_v17 = vpop.permute.xlu1 %9366 }
 0x52b   :  { %6877 = vmatmul.mubr.f32.vlgmr.msra.gmra.mrb[4].mxu0 %v15512_v46  ;;  %v7530_v29 = vand.u32 4294901760, %v7529_v23 }
 0x52c   :  { %6886 = vmatpush1.msra.mxu0 %v15516_v16  ;;  %6949 = vmatprep.mubr.f32.mxu0 %v16448_v9  ;;  %v8010_v16 = vand.u32 4294901760, %v15631_v31 }
 0x52d   :  { %7460 = vmatprep.subr.mxu0 %v15585_v8  ;;  %7342 = vmatmul.mubr.f32.vlgmr.msra.gmra.mrb[4].mxu1 %v15512_v46 }
 0x52e   :  { %7351 = vmatpush1.msra.mxu1 %v15526_v5  ;;  %7414 = vmatprep.mubr.f32.mxu1 %v16448_v9  ;;  %v8011_v5 = vsub.f32 %v15631_v31, %v8010_v16 }
 0x52f   :  { %7925 = vmatprep.subr.mxu1 %v15594_v21 }
 0x530   :  { %v8012_v11 = vand.u32 4294901760, %v8011_v5  ;;  %v12310_v5 = vld [vmem:[%s16040_s6 + $0x18] sm:$0xf] }
 0x533   :  { %6951 = vmatmul.mubr.f32.vlgmr.msra.gmra.mrb[4].mxu0 %v15512_v46 }
 0x534   :  { %7462 = vmatpush1.msra.mxu0 %v15606_v50  ;;  %7525 = vmatprep.mubr.f32.mxu0 %v16448_v9 }
 0x535   :  { %7542 = vmatprep.subr.mxu0 %v7541_v63  ;;  %7416 = vmatmul.mubr.f32.vlgmr.msra.gmra.mrb[4].mxu1 %v15512_v46  ;;  %v8394_v46 = vpop.permute.xlu0 %8393 }
 0x536   :  { %7927 = vmatpush1.msra.mxu1 %v15616_v47  ;;  %7990 = vmatprep.mubr.f32.mxu1 %v16448_v9  ;;  %v8404_v53 = vsel %vm2044_vm5, %v8400_v37, %v8394_v46  ;;  %v8403_v34 = vsel %vm2044_vm5, %v8394_v46, %v8396_v2 }
 0x537   :  { %8007 = vmatprep.subr.mxu1 %v8006_v4  ;;  %v8408_v1 = vmul.f32 %v8404_v53, %v16789_v49  ;;  %v8405_v28 = vmul.f32 %v8403_v34, %v16790_v13 }
 0x539   :  { %v8398_v41 = vpop.permute.xlu0 %8397  ;;  %v8424_v48 = vsel %vm3604_vm10, %v8408_v1, 0  ;;  %v8415_v51 = vsel %vm3604_vm10, %v8405_v28, 0 }
 0x53a   :  { %v8402_v32 = vsel %vm2044_vm5, %v8396_v2, %v8398_v41  ;;  %v8401_v58 = vsel %vm2044_vm5, %v8398_v41, %v8400_v37  ;;  %v15684_v14 = vand.u32 4294901760, %v8424_v48  ;;  %v15695_v52 = vand.u32 4294901760, %v8415_v51  ;;  %v16795_v37 = vld [vmem:[#allocation41_spill] sm:$0xff] }
 0x53b   :  { %7531 = vmatmul.mubr.f32.vlgmr.msra.gmra.mrb[4].mxu0 %v7530_v29  ;;  %v8406_v36 = vmul.f32 %v8402_v32, %v16788_v55  ;;  %v8407_v7 = vmul.f32 %v8401_v58, %v16791_v62  ;;  %v9379_v32 = vsel %vm3600_vm9, %v12310_v5, 0 }
 0x53c   :  { %7548 = vmatpush1.msra.mxu0 %v7547_v18  ;;  %7611 = vmatprep.mubr.f32.mxu0 %v16448_v9  ;;  %v15699_v26 = vsub.f32 %v8424_v48, %v15684_v14  ;;  %v15710_v0 = vsub.f32 %v8415_v51, %v15695_v52  ;;  %v16794_v18 = vld [vmem:[#allocation27_spill] sm:$0xff]  ;;  %v15782_v1 = vand.u32 4294901760, %v9379_v32 }
 0x53d   :  { %7621 = vmatprep.subr.mxu0 %v15598_v43  ;;  %7996 = vmatmul.mubr.f32.vlgmr.msra.gmra.mrb[4].mxu1 %v7530_v29  ;;  %v8418_v19 = vsel %vm3604_vm10, %v8406_v36, 0  ;;  %v8421_v42 = vsel %vm3604_vm10, %v8407_v7, 0 }
 0x53e   :  { %8013 = vmatpush1.msra.mxu1 %v8012_v11  ;;  %8076 = vmatprep.mubr.f32.mxu1 %v16448_v9  ;;  %v15674_v12 = vand.u32 4294901760, %v8418_v19  ;;  %v15706_v38 = vand.u32 4294901760, %v8421_v42  ;;  %v8971_v40 = vand.u32 4294901760, %v15699_v26  ;;  %v8512_v43 = vand.u32 4294901760, %v15710_v0 }
 0x53f   :  { %8086 = vmatprep.subr.mxu1 %v15609_v45  ;;  %v9461_v28 = vsub.f32 %v9379_v32, %v15782_v1 }
 0x540   :  { %v15689_v60 = vsub.f32 %v8418_v19, %v15674_v12  ;;  %v15721_v44 = vsub.f32 %v8421_v42, %v15706_v38 }
 0x541   :  { %v15807_v62 = vand.u32 4294901760, %v9461_v28 }
 0x542   :  { %v8506_v24 = vand.u32 4294901760, %v15689_v60 }
 0x543   :  { %7613 = vmatmul.mubr.f32.vlgmr.msra.gmra.mrb[4].mxu0 %v15602_v57 }
 0x544   :  { %7624 = vmatpush1.msra.mxu0 %v15620_v54  ;;  %7687 = vmatprep.mubr.f32.mxu0 %v16448_v9  ;;  %v8507_v33 = vsub.f32 %v15689_v60, %v8506_v24 }
 0x545   :  { %7697 = vmatprep.subr.mxu0 %v15585_v8  ;;  %8078 = vmatmul.mubr.f32.vlgmr.msra.gmra.mrb[4].mxu1 %v15602_v57 }
 0x546   :  { %8089 = vmatpush1.msra.mxu1 %v15631_v31  ;;  %8152 = vmatprep.mubr.f32.mxu1 %v16448_v9  ;;  %v8508_v22 = vand.u32 4294901760, %v8507_v33  ;;  %v10330_v33 = vpop.permute.xlu1 %10329 }
 0x547   :  { %8162 = vmatprep.subr.mxu1 %v15594_v21 }
 0x54b   :  { %7690 = vmatmul.mubr.f32.vlgmr.msra.gmra.mrb[4].mxu0 %v7527_v20 }
 0x54c   :  { %7699 = vmatpush1.msra.mxu0 %v15606_v50  ;;  %7762 = vmatprep.mubr.f32.mxu0 %v16448_v9 }
 0x54d   :  { %7775 = vmatprep.subr.mxu0 %v7539_v6  ;;  %8155 = vmatmul.mubr.f32.vlgmr.msra.gmra.mrb[4].mxu1 %v7527_v20  ;;  %v8513_v6 = vsub.f32 %v15710_v0, %v8512_v43 }
 0x54e   :  { %8164 = vmatpush1.msra.mxu1 %v15616_v47  ;;  %8227 = vmatprep.mubr.f32.mxu1 %v16448_v9 }
 0x54f   :  { %8240 = vmatprep.subr.mxu1 %v8004_v27  ;;  %v8514_v54 = vand.u32 4294901760, %v8513_v6 }
 0x553   :  { %7766 = vmatmul.mubr.f32.vlgmr.msra.gmra.mrb[4].mxu0 %v15627_v35 }
 0x554   :  { %7779 = vmatpush1.msra.mxu0 %v7545_v25  ;;  %7842 = vmatprep.mubr.f32.mxu0 %v16448_v9  ;;  %v16792_v25 = vld [vmem:[#allocation34_spill] sm:$0xff] }
 0x555   :  { %7851 = vmatprep.subr.mxu0 %v15585_v8  ;;  %8231 = vmatmul.mubr.f32.vlgmr.msra.gmra.mrb[4].mxu1 %v15627_v35  ;;  %v8494_v8 = vsub.f32 %v8412_v3, %v15692_v39 }
 0x556   :  { %8244 = vmatpush1.msra.mxu1 %v8010_v16  ;;  %8307 = vmatprep.mubr.f32.mxu1 %v16448_v9  ;;  %v16793_v16 = vld [vmem:[#allocation29_spill] sm:$0xff] }
 0x557   :  { %8316 = vmatprep.subr.mxu1 %v15594_v21  ;;  %v15717_v30 = vand.u32 4294901760, %v8494_v8  ;;  %v8972_v21 = vsub.f32 %v15699_v26, %v8971_v40 }
 0x559   :  { %v8496_v59 = vsub.f32 %v8494_v8, %v15717_v30  ;;  %v8973_v45 = vand.u32 4294901760, %v8972_v21  ;;  %v10334_v21 = vpop.permute.xlu1 %10333 }
 0x55b   :  { %7844 = vmatmul.mubr.f32.vlgmr.msra.gmra.mrb[4].mxu0 %v15602_v57  ;;  %v8497_v20 = vand.u32 4294901760, %v8496_v59 }
 0x55c   :  { %7853 = vmatpush1.msra.mxu0 %v15606_v50  ;;  %7916 = vmatprep.mubr.f32.mxu0 %v16448_v9  ;;  %v8977_v50 = vand.u32 4294901760, %v15721_v44 }
 0x55d   :  { %8427 = vmatprep.subr.mxu0 %v15674_v12  ;;  %8309 = vmatmul.mubr.f32.vlgmr.msra.gmra.mrb[4].mxu1 %v15602_v57 }
 0x55e   :  { %8318 = vmatpush1.msra.mxu1 %v15616_v47  ;;  %8381 = vmatprep.mubr.f32.mxu1 %v16448_v9  ;;  %v8978_v47 = vsub.f32 %v15721_v44, %v8977_v50 }
 0x55f   :  { %8892 = vmatprep.subr.mxu1 %v15684_v14 }
 0x560   :  { %v8979_v27 = vand.u32 4294901760, %v8978_v47  ;;  %v12311_v47 = vld [vmem:[%s16040_s6 + $0x1c] sm:$0xf] }
 0x563   :  { %7918 = vmatmul.mubr.f32.vlgmr.msra.gmra.mrb[4].mxu0 %v15602_v57 }
 0x564   :  { %8429 = vmatpush1.msra.mxu0 %v15695_v52  ;;  %8492 = vmatprep.mubr.f32.mxu0 %v16448_v9 }
 0x565   :  { %8509 = vmatprep.subr.mxu0 %v8508_v22  ;;  %8383 = vmatmul.mubr.f32.vlgmr.msra.gmra.mrb[4].mxu1 %v15602_v57  ;;  %v9361_v57 = vpop.permute.xlu0 %9360 }
 0x566   :  { %8894 = vmatpush1.msra.mxu1 %v15706_v38  ;;  %8957 = vmatprep.mubr.f32.mxu1 %v16448_v9  ;;  %v9371_v23 = vsel %vm2081_vm6, %v9367_v17, %v9361_v57  ;;  %v9370_v10 = vsel %vm2081_vm6, %v9361_v57, %v9363_v61 }
 0x567   :  { %8974 = vmatprep.subr.mxu1 %v8973_v45  ;;  %v9375_v4 = vmul.f32 %v9371_v23, %v16793_v16  ;;  %v9372_v11 = vmul.f32 %v9370_v10, %v16794_v18 }
 0x569   :  { %v9365_v35 = vpop.permute.xlu0 %9364  ;;  %v9391_v41 = vsel %vm3604_vm10, %v9375_v4, 0  ;;  %v9382_v53 = vsel %vm3604_vm10, %v9372_v11, 0 }
 0x56a   :  { %v9369_v31 = vsel %vm2081_vm6, %v9363_v61, %v9365_v35  ;;  %v9368_v2 = vsel %vm2081_vm6, %v9365_v35, %v9367_v17  ;;  %v15774_v36 = vand.u32 4294901760, %v9391_v41  ;;  %v15785_v34 = vand.u32 4294901760, %v9382_v53  ;;  %v16799_v17 = vld [vmem:[#allocation66_spill] sm:$0xff] }
 0x56b   :  { %8498 = vmatmul.mubr.f32.vlgmr.msra.gmra.mrb[4].mxu0 %v8497_v20  ;;  %v9373_v63 = vmul.f32 %v9369_v31, %v16792_v25  ;;  %v9374_v55 = vmul.f32 %v9368_v2, %v16795_v37  ;;  %v10346_v31 = vsel %vm3600_vm9, %v12311_v47, 0 }
 0x56c   :  { %8515 = vmatpush1.msra.mxu0 %v8514_v54  ;;  %8578 = vmatprep.mubr.f32.mxu0 %v16448_v9  ;;  %v15789_v15 = vsub.f32 %v9391_v41, %v15774_v36  ;;  %v15800_v58 = vsub.f32 %v9382_v53, %v15785_v34  ;;  %v16798_v54 = vld [vmem:[#allocation53_spill] sm:$0xff]  ;;  %v15872_v4 = vand.u32 4294901760, %v10346_v31 }
 0x56d   :  { %8588 = vmatprep.subr.mxu0 %v15689_v60  ;;  %8963 = vmatmul.mubr.f32.vlgmr.msra.gmra.mrb[4].mxu1 %v8497_v20  ;;  %v9385_v29 = vsel %vm3604_vm10, %v9373_v63, 0  ;;  %v9388_v19 = vsel %vm3604_vm10, %v9374_v55, 0 }
 0x56e   :  { %8980 = vmatpush1.msra.mxu1 %v8979_v27  ;;  %9043 = vmatprep.mubr.f32.mxu1 %v16448_v9  ;;  %v15764_v46 = vand.u32 4294901760, %v9385_v29  ;;  %v9938_v48 = vand.u32 4294901760, %v15789_v15  ;;  %v9479_v51 = vand.u32 4294901760, %v15800_v58  ;;  %v10428_v11 = vsub.f32 %v10346_v31, %v15872_v4 }
 0x56f   :  { %9053 = vmatprep.subr.mxu1 %v15699_v26 }
 0x570   :  { %v15779_v49 = vsub.f32 %v9385_v29, %v15764_v46  ;;  %v15897_v37 = vand.u32 4294901760, %v10428_v11 }
 0x572   :  { %v9473_v13 = vand.u32 4294901760, %v15779_v49 }
 0x573   :  { %8580 = vmatmul.mubr.f32.vlgmr.msra.gmra.mrb[4].mxu0 %v15692_v39 }
 0x574   :  { %8591 = vmatpush1.msra.mxu0 %v15710_v0  ;;  %8654 = vmatprep.mubr.f32.mxu0 %v16448_v9  ;;  %v9474_v3 = vsub.f32 %v15779_v49, %v9473_v13 }
 0x575   :  { %8664 = vmatprep.subr.mxu0 %v15674_v12  ;;  %9045 = vmatmul.mubr.f32.vlgmr.msra.gmra.mrb[4].mxu1 %v15692_v39 }
 0x576   :  { %9056 = vmatpush1.msra.mxu1 %v15721_v44  ;;  %9119 = vmatprep.mubr.f32.mxu1 %v16448_v9  ;;  %v9475_v60 = vand.u32 4294901760, %v9474_v3  ;;  %v11297_v3 = vpop.permute.xlu1 %11296 }
 0x577   :  { %9129 = vmatprep.subr.mxu1 %v15684_v14 }
 0x57b   :  { %8657 = vmatmul.mubr.f32.vlgmr.msra.gmra.mrb[4].mxu0 %v8494_v8 }
 0x57c   :  { %8666 = vmatpush1.msra.mxu0 %v15695_v52  ;;  %8729 = vmatprep.mubr.f32.mxu0 %v16448_v9 }
 0x57d   :  { %8742 = vmatprep.subr.mxu0 %v8506_v24  ;;  %9122 = vmatmul.mubr.f32.vlgmr.msra.gmra.mrb[4].mxu1 %v8494_v8  ;;  %v9480_v24 = vsub.f32 %v15800_v58, %v9479_v51 }
 0x57e   :  { %9131 = vmatpush1.msra.mxu1 %v15706_v38  ;;  %9194 = vmatprep.mubr.f32.mxu1 %v16448_v9 }
 0x57f   :  { %9207 = vmatprep.subr.mxu1 %v8971_v40  ;;  %v9481_v0 = vand.u32 4294901760, %v9480_v24 }
 0x583   :  { %8733 = vmatmul.mubr.f32.vlgmr.msra.gmra.mrb[4].mxu0 %v15717_v30 }
 0x584   :  { %8746 = vmatpush1.msra.mxu0 %v8512_v43  ;;  %8809 = vmatprep.mubr.f32.mxu0 %v16448_v9  ;;  %v16796_v43 = vld [vmem:[#allocation65_spill] sm:$0xff] }
 0x585   :  { %8818 = vmatprep.subr.mxu0 %v15674_v12  ;;  %9198 = vmatmul.mubr.f32.vlgmr.msra.gmra.mrb[4].mxu1 %v15717_v30  ;;  %v15796_v12 = vand.u32 4294901760, %v9388_v19 }
 0x586   :  { %9211 = vmatpush1.msra.mxu1 %v8977_v50  ;;  %9274 = vmatprep.mubr.f32.mxu1 %v16448_v9  ;;  %v16797_v50 = vld [vmem:[#allocation55_spill] sm:$0xff] }
 0x587   :  { %9283 = vmatprep.subr.mxu1 %v15684_v14  ;;  %v15811_v7 = vsub.f32 %v9388_v19, %v15796_v12  ;;  %v9939_v14 = vsub.f32 %v15789_v15, %v9938_v48 }
 0x589   :  { %v9944_v42 = vand.u32 4294901760, %v15811_v7  ;;  %v9940_v26 = vand.u32 4294901760, %v9939_v14  ;;  %v11301_v14 = vpop.permute.xlu1 %11300 }
 0x58b   :  { %8811 = vmatmul.mubr.f32.vlgmr.msra.gmra.mrb[4].mxu0 %v15692_v39 }
 0x58c   :  { %8820 = vmatpush1.msra.mxu0 %v15695_v52  ;;  %8883 = vmatprep.mubr.f32.mxu0 %v16448_v9  ;;  %v9463_v52 = vsub.f32 %v9461_v28, %v15807_v62 }
 0x58d   :  { %9394 = vmatprep.subr.mxu0 %v15764_v46  ;;  %9276 = vmatmul.mubr.f32.vlgmr.msra.gmra.mrb[4].mxu1 %v15692_v39 }
 0x58e   :  { %9285 = vmatpush1.msra.mxu1 %v15706_v38  ;;  %9348 = vmatprep.mubr.f32.mxu1 %v16448_v9  ;;  %v9464_v8 = vand.u32 4294901760, %v9463_v52  ;;  %v9945_v38 = vsub.f32 %v15811_v7, %v9944_v42 }
 0x58f   :  { %9859 = vmatprep.subr.mxu1 %v15774_v36 }
 0x590   :  { %v9946_v40 = vand.u32 4294901760, %v9945_v38  ;;  %v12312_v38 = vld [vmem:[%s16040_s6 + $0x20] sm:$0xf] }
 0x593   :  { %8885 = vmatmul.mubr.f32.vlgmr.msra.gmra.mrb[4].mxu0 %v15692_v39 }
 0x594   :  { %9396 = vmatpush1.msra.mxu0 %v15785_v34  ;;  %9459 = vmatprep.mubr.f32.mxu0 %v16448_v9 }
 0x595   :  { %9476 = vmatprep.subr.mxu0 %v9475_v60  ;;  %9350 = vmatmul.mubr.f32.vlgmr.msra.gmra.mrb[4].mxu1 %v15692_v39  ;;  %v10328_v39 = vpop.permute.xlu0 %10327 }
 0x596   :  { %9861 = vmatpush1.msra.mxu1 %v15796_v12  ;;  %9924 = vmatprep.mubr.f32.mxu1 %v16448_v9  ;;  %v10338_v59 = vsel %vm2118_vm7, %v10334_v21, %v10328_v39  ;;  %v10337_v6 = vsel %vm2118_vm7, %v10328_v39, %v10330_v33 }
 0x597   :  { %9941 = vmatprep.subr.mxu1 %v9940_v26  ;;  %v10342_v45 = vmul.f32 %v10338_v59, %v16797_v50  ;;  %v10339_v27 = vmul.f32 %v10337_v6, %v16798_v54 }
 0x599   :  { %v10332_v30 = vpop.permute.xlu0 %10331  ;;  %v10358_v35 = vsel %vm3604_vm10, %v10342_v45, 0  ;;  %v10349_v23 = vsel %vm3604_vm10, %v10339_v27, 0 }
 0x59a   :  { %v10336_v44 = vsel %vm2118_vm7, %v10330_v33, %v10332_v30  ;;  %v10335_v61 = vsel %vm2118_vm7, %v10332_v30, %v10334_v21  ;;  %v15864_v63 = vand.u32 4294901760, %v10358_v35  ;;  %v15875_v10 = vand.u32 4294901760, %v10349_v23  ;;  %v13167_v21 = vld [vmem:[%s16037_s3 + $0x30] ss:$0 sm:$0xff] }
 0x59b   :  { %9465 = vmatmul.mubr.f32.vlgmr.msra.gmra.mrb[4].mxu0 %v9464_v8  ;;  %v10340_v22 = vmul.f32 %v10336_v44, %v16796_v43  ;;  %v10341_v25 = vmul.f32 %v10335_v61, %v16799_v17  ;;  %v11313_v44 = vsel %vm3600_vm9, %v12312_v38, 0 }
 0x59c   :  { %9482 = vmatpush1.msra.mxu0 %v9481_v0  ;;  %9545 = vmatprep.mubr.f32.mxu0 %v16448_v9  ;;  %v15879_v5 = vsub.f32 %v10358_v35, %v15864_v63  ;;  %v15890_v2 = vsub.f32 %v10349_v23, %v15875_v10  ;;  %v13166_v0 = vld [vmem:[%s16037_s3 + $0x20] ss:$0 sm:$0xff]  ;;  %v15972_v50 = vand.u32 4294901760, %v11313_v44 }
 0x59d   :  { %9555 = vmatprep.subr.mxu0 %v15779_v49  ;;  %9930 = vmatmul.mubr.f32.vlgmr.msra.gmra.mrb[4].mxu1 %v9464_v8  ;;  %v10352_v20 = vsel %vm3604_vm10, %v10340_v22, 0  ;;  %v10355_v29 = vsel %vm3604_vm10, %v10341_v25, 0 }
 0x59e   :  { %9947 = vmatpush1.msra.mxu1 %v9946_v40  ;;  %10010 = vmatprep.mubr.f32.mxu1 %v16448_v9  ;;  %v15854_v57 = vand.u32 4294901760, %v10352_v20  ;;  %v10905_v41 = vand.u32 4294901760, %v15879_v5  ;;  %v10446_v53 = vand.u32 4294901760, %v15890_v2  ;;  %v11395_v54 = vsub.f32 %v11313_v44, %v15972_v50 }
 0x59f   :  { %10020 = vmatprep.subr.mxu1 %v15789_v15 }
 0x5a0   :  { %v15869_v16 = vsub.f32 %v10352_v20, %v15854_v57  ;;  %v11396_v31 = vand.u32 4294901760, %v11395_v54 }
 0x5a2   :  { %v10440_v18 = vand.u32 4294901760, %v15869_v16 }
 0x5a3   :  { %9547 = vmatmul.mubr.f32.vlgmr.msra.gmra.mrb[4].mxu0 %v15782_v1 }
 0x5a4   :  { %9558 = vmatpush1.msra.mxu0 %v15800_v58  ;;  %9621 = vmatprep.mubr.f32.mxu0 %v16448_v9  ;;  %v10441_v32 = vsub.f32 %v15869_v16, %v10440_v18 }
 0x5a5   :  { %9631 = vmatprep.subr.mxu0 %v15764_v46  ;;  %10012 = vmatmul.mubr.f32.vlgmr.msra.gmra.mrb[4].mxu1 %v15782_v1 }
 0x5a6   :  { %10023 = vmatpush1.msra.mxu1 %v15811_v7  ;;  %10086 = vmatprep.mubr.f32.mxu1 %v16448_v9  ;;  %v10442_v49 = vand.u32 4294901760, %v10441_v32 }
 0x5a7   :  { %10096 = vmatprep.subr.mxu1 %v15774_v36 }
 0x5ab   :  { %9624 = vmatmul.mubr.f32.vlgmr.msra.gmra.mrb[4].mxu0 %v9461_v28 }
 0x5ac   :  { %9633 = vmatpush1.msra.mxu0 %v15785_v34  ;;  %9696 = vmatprep.mubr.f32.mxu0 %v16448_v9 }
 0x5ad   :  { %9709 = vmatprep.subr.mxu0 %v9473_v13  ;;  %10089 = vmatmul.mubr.f32.vlgmr.msra.gmra.mrb[4].mxu1 %v9461_v28  ;;  %v10447_v13 = vsub.f32 %v15890_v2, %v10446_v53 }
 0x5ae   :  { %10098 = vmatpush1.msra.mxu1 %v15796_v12  ;;  %10161 = vmatprep.mubr.f32.mxu1 %v16448_v9 }
 0x5af   :  { %10174 = vmatprep.subr.mxu1 %v9938_v48  ;;  %v10448_v58 = vand.u32 4294901760, %v10447_v13  ;;  %v11295_v48 = vpop.permute.xlu0 %11294 }
 0x5b0   :  { %v11305_v52 = vsel %vm2155_vm8, %v11301_v14, %v11295_v48  ;;  %v11304_v24 = vsel %vm2155_vm8, %v11295_v48, %v11297_v3 }
 0x5b1   :  { %v11306_v40 = vmul.f32 %v13166_v0, %v11304_v24 }
 0x5b3   :  { %9700 = vmatmul.mubr.f32.vlgmr.msra.gmra.mrb[4].mxu0 %v15807_v62  ;;  %v11316_v56 = vsel %vm3604_vm10, %v11306_v40, 0 }
 0x5b4   :  { %9713 = vmatpush1.msra.mxu0 %v9479_v51  ;;  %9776 = vmatprep.mubr.f32.mxu0 %v16448_v9  ;;  %v13164_v51 = vld [vmem:[%s16037_s3 + $0x28] ss:$0 sm:$0xff]  ;;  %v15975_v45 = vand.u32 4294901760, %v11316_v56 }
 0x5b5   :  { %9785 = vmatprep.subr.mxu0 %v15764_v46  ;;  %10165 = vmatmul.mubr.f32.vlgmr.msra.gmra.mrb[4].mxu1 %v15807_v62  ;;  %v15886_v46 = vand.u32 4294901760, %v10355_v29  ;;  %v11299_v62 = vpop.permute.xlu0 %11298 }
 0x5b6   :  { %10178 = vmatpush1.msra.mxu1 %v9944_v42  ;;  %10241 = vmatprep.mubr.f32.mxu1 %v16448_v9  ;;  %v11303_v7 = vsel %vm2155_vm8, %v11297_v3, %v11299_v62  ;;  %v13165_v42 = vld [vmem:[%s16037_s3 + $0x38] ss:$0 sm:$0xff]  ;;  %v11302_v33 = vsel %vm2155_vm8, %v11299_v62, %v11301_v14  ;;  %s13277_s3 = smov [#allocation10]  }
 0x5b7   :  { %10250 = vmatprep.subr.mxu1 %v15774_v36  ;;  %v15901_v55 = vsub.f32 %v10355_v29, %v15886_v46  ;;  %v10906_v36 = vsub.f32 %v15879_v5, %v10905_v41  ;;  %v11307_v60 = vmul.f32 %v13164_v51, %v11303_v7  ;;  %v11309_v26 = vmul.f32 %v13165_v42, %v11305_v52  ;;  %s12291_s19 = sshll.u32 %s13277_s3, 4  ;;  %s12292_s19 = int_to_ptr.vmem [resolvable:$true] %s12291_s19 }
 0x5b8   :  { %v11308_v43 = vmul.f32 %v13167_v21, %v11302_v33  ;;  %s13234_s5 = scalar_lea.vmem %s12292_s19, 256  ;;  %p13239_p11 = scmp.lt.s32.totalorder %s12292_s19, %s12292_s19 }
 0x5b9   :  { %v10911_v19 = vand.u32 4294901760, %v15901_v55  ;;  %v10907_v15 = vand.u32 4294901760, %v10906_v36  ;;  %v11319_v8 = vsel %vm3604_vm10, %v11307_v60, 0  ;;  %v11325_v30 = vsel %vm3604_vm10, %v11309_v26, 0  ;;  %p13235_p10 = scmp.ne.s32.totalorder %s12292_s19, %s13234_s5  ;;  %p13240_p12 = scmp.lt.s32.totalorder %s13234_s5, %s13234_s5 }
 0x5ba   :  { %v15952_v39 = vand.u32 4294901760, %v11319_v8  ;;  %v15964_v22 = vand.u32 4294901760, %v11325_v30  ;;  %v11322_v6 = vsel %vm3604_vm10, %v11308_v43, 0 }
 0x5bb   :  { %9778 = vmatmul.mubr.f32.vlgmr.msra.gmra.mrb[4].mxu0 %v15782_v1  ;;  %v15983_v27 = vand.u32 4294901760, %v11322_v6  ;;  %p13241_p13 = por %p13240_p12, %p13239_p11 }
 0x5bc   :  { %9787 = vmatpush1.msra.mxu0 %v15785_v34  ;;  %9850 = vmatprep.mubr.f32.mxu0 %v16448_v9  ;;  %v10430_v34 = vsub.f32 %v10428_v11, %v15897_v37  ;;  %v11406_v59 = vsub.f32 %v11319_v8, %v15952_v39  ;;  %v11871_v20 = vsub.f32 %v11325_v30, %v15964_v22 }
 0x5bd   :  { %10361 = vmatprep.subr.mxu0 %v15854_v57  ;;  %10243 = vmatmul.mubr.f32.vlgmr.msra.gmra.mrb[4].mxu1 %v15782_v1  ;;  %v11877_v17 = vsub.f32 %v11322_v6, %v15983_v27  ;;  %p13242_p0 = pnand %p13241_p13, %p13235_p10 }
 0x5be   :  { %10252 = vmatpush1.msra.mxu1 %v15796_v12  ;;  %10315 = vmatprep.mubr.f32.mxu1 %v16448_v9  ;;  %v10431_v28 = vand.u32 4294901760, %v10430_v34  ;;  %v10912_v12 = vsub.f32 %v15901_v55, %v10911_v19  ;;  %v11407_v47 = vand.u32 4294901760, %v11406_v59  ;;  %v11872_v61 = vand.u32 4294901760, %v11871_v20 }
 0x5bf   :  { %10826 = vmatprep.subr.mxu1 %v15864_v63 }
 0x5c0   :  { %v11408_v35 = vsub.f32 %v11406_v59, %v11407_v47  ;;  %v11873_v25 = vsub.f32 %v11871_v20, %v11872_v61 }
 0x5c2   :  { %v11409_v23 = vand.u32 4294901760, %v11408_v35  ;;  %v11874_v29 = vand.u32 4294901760, %v11873_v25 }
 0x5c3   :  { %9852 = vmatmul.mubr.f32.vlgmr.msra.gmra.mrb[4].mxu0 %v15782_v1 }
 0x5c4   :  { %10363 = vmatpush1.msra.mxu0 %v15875_v10  ;;  %10426 = vmatprep.mubr.f32.mxu0 %v16448_v9 }
 0x5c5   :  { %10443 = vmatprep.subr.mxu0 %v10442_v49  ;;  %10317 = vmatmul.mubr.f32.vlgmr.msra.gmra.mrb[4].mxu1 %v15782_v1  ;;  %v10913_v1 = vand.u32 4294901760, %v10912_v12 }
 0x5c6   :  { %10828 = vmatpush1.msra.mxu1 %v15886_v46  ;;  %10891 = vmatprep.mubr.f32.mxu1 %v16448_v9 }
 0x5c7   :  { %10908 = vmatprep.subr.mxu1 %v10907_v15 }
 0x5cb   :  { %10432 = vmatmul.mubr.f32.vlgmr.msra.gmra.mrb[4].mxu0 %v10431_v28 }
 0x5cc   :  { %10449 = vmatpush1.msra.mxu0 %v10448_v58  ;;  %10512 = vmatprep.mubr.f32.mxu0 %v16448_v9 }
 0x5cd   :  { %10522 = vmatprep.subr.mxu0 %v15869_v16  ;;  %10897 = vmatmul.mubr.f32.vlgmr.msra.gmra.mrb[4].mxu1 %v10431_v28  ;;  %v11397_v16 = vsub.f32 %v11395_v54, %v11396_v31 }
 0x5ce   :  { %10914 = vmatpush1.msra.mxu1 %v10913_v1  ;;  %10977 = vmatprep.mubr.f32.mxu1 %v16448_v9 }
 0x5cf   :  { %10987 = vmatprep.subr.mxu1 %v15879_v5 }
 0x5d3   :  { %10514 = vmatmul.mubr.f32.vlgmr.msra.gmra.mrb[4].mxu0 %v15872_v4 }
 0x5d4   :  { %10525 = vmatpush1.msra.mxu0 %v15890_v2  ;;  %10588 = vmatprep.mubr.f32.mxu0 %v16448_v9 }
 0x5d5   :  { %10598 = vmatprep.subr.mxu0 %v15854_v57  ;;  %10979 = vmatmul.mubr.f32.vlgmr.msra.gmra.mrb[4].mxu1 %v15872_v4 }
 0x5d6   :  { %10990 = vmatpush1.msra.mxu1 %v15901_v55  ;;  %11053 = vmatprep.mubr.f32.mxu1 %v16448_v9 }
 0x5d7   :  { %11063 = vmatprep.subr.mxu1 %v15864_v63 }
 0x5db   :  { %10591 = vmatmul.mubr.f32.vlgmr.msra.gmra.mrb[4].mxu0 %v10428_v11 }
 0x5dc   :  { %10600 = vmatpush1.msra.mxu0 %v15875_v10  ;;  %10663 = vmatprep.mubr.f32.mxu0 %v16448_v9 }
 0x5dd   :  { %10676 = vmatprep.subr.mxu0 %v10440_v18  ;;  %11056 = vmatmul.mubr.f32.vlgmr.msra.gmra.mrb[4].mxu1 %v10428_v11  ;;  %v11398_v18 = vand.u32 4294901760, %v11397_v16 }
 0x5de   :  { %11065 = vmatpush1.msra.mxu1 %v15886_v46  ;;  %11128 = vmatprep.mubr.f32.mxu1 %v16448_v9 }
 0x5df   :  { %11141 = vmatprep.subr.mxu1 %v10905_v41 }
 0x5e3   :  { %10667 = vmatmul.mubr.f32.vlgmr.msra.gmra.mrb[4].mxu0 %v15897_v37 }
 0x5e4   :  { %10680 = vmatpush1.msra.mxu0 %v10446_v53  ;;  %10743 = vmatprep.mubr.f32.mxu0 %v16448_v9 }
 0x5e5   :  { %10752 = vmatprep.subr.mxu0 %v15854_v57  ;;  %11132 = vmatmul.mubr.f32.vlgmr.msra.gmra.mrb[4].mxu1 %v15897_v37  ;;  %v11412_v57 = vsub.f32 %v11316_v56, %v15975_v45 }
 0x5e6   :  { %11145 = vmatpush1.msra.mxu1 %v10911_v19  ;;  %11208 = vmatprep.mubr.f32.mxu1 %v16448_v9 }
 0x5e7   :  { %11217 = vmatprep.subr.mxu1 %v15864_v63  ;;  %v11413_v63 = vand.u32 4294901760, %v11412_v57 }
 0x5e9   :  { %v11414_v5 = vsub.f32 %v11412_v57, %v11413_v63 }
 0x5eb   :  { %10745 = vmatmul.mubr.f32.vlgmr.msra.gmra.mrb[4].mxu0 %v15872_v4 }
 0x5ec   :  { %10754 = vmatpush1.msra.mxu0 %v15875_v10  ;;  %10817 = vmatprep.mubr.f32.mxu0 %v16448_v9  ;;  %v11878_v10 = vand.u32 4294901760, %v11877_v17 }
 0x5ed   :  { %11328 = vmatprep.subr.mxu0 %v15952_v39  ;;  %11210 = vmatmul.mubr.f32.vlgmr.msra.gmra.mrb[4].mxu1 %v15872_v4 }
 0x5ee   :  { %11219 = vmatpush1.msra.mxu1 %v15886_v46  ;;  %11282 = vmatprep.mubr.f32.mxu1 %v16448_v9  ;;  %v11879_v11 = vsub.f32 %v11877_v17, %v11878_v10  ;;  %v11415_v46 = vand.u32 4294901760, %v11414_v5 }
 0x5ef   :  { %11793 = vmatprep.subr.mxu1 %v15964_v22 }
 0x5f0   :  { %v11880_v2 = vand.u32 4294901760, %v11879_v11 }
 0x5f3   :  { %10819 = vmatmul.mubr.f32.vlgmr.msra.gmra.mrb[4].mxu0 %v15872_v4 }
 0x5f4   :  { %11330 = vmatpush1.msra.mxu0 %v15975_v45  ;;  %11393 = vmatprep.mubr.f32.mxu0 %v16448_v9 }
 0x5f5   :  { %11410 = vmatprep.subr.mxu0 %v11409_v23  ;;  %11284 = vmatmul.mubr.f32.vlgmr.msra.gmra.mrb[4].mxu1 %v15872_v4  ;;  %v12265_v4 = vpop.permute.xlu0 %12264 }
 0x5f6   :  { %11795 = vmatpush1.msra.mxu1 %v15983_v27  ;;  %11858 = vmatprep.mubr.f32.mxu1 %v16448_v9 }
 0x5f7   :  { %11875 = vmatprep.subr.mxu1 %v11874_v29 }
 0x5fb   :  { %11399 = vmatmul.mubr.f32.vlgmr.msra.gmra.mrb[4].mxu0 %v11398_v18 }
 0x5fc   :  { %11416 = vmatpush1.msra.mxu0 %v11415_v46  ;;  %11479 = vmatprep.mubr.f32.mxu0 %v16448_v9 }
 0x5fd   :  { %11489 = vmatprep.subr.mxu0 %v11406_v59  ;;  %11864 = vmatmul.mubr.f32.vlgmr.msra.gmra.mrb[4].mxu1 %v11398_v18 }
 0x5fe   :  { %11881 = vmatpush1.msra.mxu1 %v11880_v2  ;;  %11944 = vmatprep.mubr.f32.mxu1 %v16448_v9 }
 0x5ff   :  { %11954 = vmatprep.subr.mxu1 %v11871_v20 }
 0x603   :  { %11481 = vmatmul.mubr.f32.vlgmr.msra.gmra.mrb[4].mxu0 %v15972_v50 }
 0x604   :  { %11492 = vmatpush1.msra.mxu0 %v11412_v57  ;;  %11555 = vmatprep.mubr.f32.mxu0 %v16448_v9 }
 0x605   :  { %11565 = vmatprep.subr.mxu0 %v15952_v39  ;;  %11946 = vmatmul.mubr.f32.vlgmr.msra.gmra.mrb[4].mxu1 %v15972_v50 }
 0x606   :  { %11957 = vmatpush1.msra.mxu1 %v11877_v17  ;;  %12020 = vmatprep.mubr.f32.mxu1 %v16448_v9 }
 0x607   :  { %12030 = vmatprep.subr.mxu1 %v15964_v22 }
 0x60b   :  { %11558 = vmatmul.mubr.f32.vlgmr.msra.gmra.mrb[4].mxu0 %v11395_v54 }
 0x60c   :  { %11567 = vmatpush1.msra.mxu0 %v15975_v45  ;;  %11630 = vmatprep.mubr.f32.mxu0 %v16448_v9 }
 0x60d   :  { %11643 = vmatprep.subr.mxu0 %v11407_v47  ;;  %12023 = vmatmul.mubr.f32.vlgmr.msra.gmra.mrb[4].mxu1 %v11395_v54 }
 0x60e   :  { %12032 = vmatpush1.msra.mxu1 %v15983_v27  ;;  %12095 = vmatprep.mubr.f32.mxu1 %v16448_v9 }
 0x60f   :  { %12108 = vmatprep.subr.mxu1 %v11872_v61 }
 0x613   :  { %11634 = vmatmul.mubr.f32.vlgmr.msra.gmra.mrb[4].mxu0 %v11396_v31 }
 0x614   :  { %11647 = vmatpush1.msra.mxu0 %v11413_v63  ;;  %11710 = vmatprep.mubr.f32.mxu0 %v16448_v9 }
 0x615   :  { %11719 = vmatprep.subr.mxu0 %v15952_v39  ;;  %12099 = vmatmul.mubr.f32.vlgmr.msra.gmra.mrb[4].mxu1 %v11396_v31 }
 0x616   :  { %12112 = vmatpush1.msra.mxu1 %v11878_v10  ;;  %12175 = vmatprep.mubr.f32.mxu1 %v16448_v9 }
 0x617   :  { %12184 = vmatprep.subr.mxu1 %v15964_v22 }
 0x61b   :  { %11712 = vmatmul.mubr.f32.vlgmr.msra.gmra.mrb[4].mxu0 %v15972_v50 }
 0x61c   :  { %11721 = vmatpush1.msra.mxu0 %v15975_v45  ;;  %11784 = vmatprep.mubr.f32.mxu0 %v16448_v9 }
 0x61d   :  { %12177 = vmatmul.mubr.f32.vlgmr.msra.gmra.mrb[4].mxu1 %v15972_v50 }
 0x61e   :  { %12186 = vmatpush1.msra.mxu1 %v15983_v27  ;;  %12249 = vmatprep.mubr.f32.mxu1 %v16448_v9 }
 0x623   :  { %11786 = vmatmul.mubr.f32.vlgmr.msra.gmra.mrb[4].mxu0 %v15972_v50 }
 0x625   :  { %12251 = vmatmul.mubr.f32.vlgmr.msra.gmra.mrb[4].mxu1 %v15972_v50 }
 0x6f6   :  { %v11787_v41 = vpop.f32.mrb[4].mxu0 }
 0x6f7   :  { %v12267_v32 = vadd.f32 %v12265_v4, %v11787_v41  ;;  %v11789_v37 = vpop.f32.mrb[5].mxu0 }
 0x6f8   :  { %v12268_v55 = vadd.f32 %v12265_v4, %v11789_v37  ;;  %v12252_v53 = vpop.f32.mrb[4].mxu1 }
 0x6f9   :  { %v12271_v36 = vmax.f32 %v12267_v32, 0.0  ;;  %v12269_v34 = vadd.f32 %v12265_v4, %v12252_v53  ;;  %v12254_v19 = vpop.f32.mrb[5].mxu1 }
 0x6fa   :  { %v12272_v49 = vmax.f32 %v12268_v55, 0.0  ;;  %v12270_v15 = vadd.f32 %v12265_v4, %v12254_v19 }
 0x6fb   :  { %v12273_v28 = vmax.f32 %v12269_v34, 0.0 }
 0x6fc   :  { %v12279_v13 = vcombine.low %v12271_v36, %v12272_v49  ;;  %v12274_v9 = vmax.f32 %v12270_v15, 0.0 }
 0x6fe   :  { %12283 = vst [vmem:[#allocation10] sm:$0xff] %v12279_v13  ;;  %v12280_v12 = vcombine.low %v12273_v28, %v12274_v9 }
 0x700   :  { %12284 = vst [vmem:[#allocation10 + $0x8] sm:$0xff] %v12280_v12 }
 0x701   :  { %13245 = shalt.err (!%p13242_p0)
}
 0x702   :  { %s13246_s21 = scalar_lea.hbm %s16042_s8, 256 }
 0x703   :  { %p13247_p1 = scmp.ne.s32.totalorder %s16042_s8, %s13246_s21  ;;  %p13250_p2 = scmp.lt.u32.totalorder %s13246_s21, %s16042_s8 }
 0x705   :  { %p13252_p3 = pnand %p13250_p2, %p13247_p1 }
 0x707   :  { %13255 = shalt.err (!%p13252_p3)
}
 0x708   :  { %12294 = dma.vmem_to_hbm [thread:$0]  %s12292_s19, 256, %s16042_s8, [#allocation6]  }
 0x709   :  { %13260 = dma.done.wait [#allocation6], 256  }
 0x70a   :  { %13261 = vsyncadd [#allocation6], 4294967040 }
 0x70b   :  { %12298 = vsyncpa [#allocation5], 1 }
 0x70c   :  { %12299 = vsyncpa [#allocation8], 1 }
 0x70d   :  { %12300 = vsyncpa [#allocation6], 1 }

</bundles_post_ra>
